<compile_context>
chip_gen: v7x
topology: tpu7x:2x2x1
jax: 0.10.0
libtpu: 0.0.40
codegen_flags: <defaults>
</compile_context>

<pallas_src>
import math
import numpy as np
import jax
import jax.numpy as jnp
from jax.experimental import pallas as pl
from jax.experimental.pallas import tpu as pltpu

# ------------------------- configuration (small) -------------------------
B = 2            # batch
CIN = 3          # image channels
H = W = 64       # image spatial size
PATCH = 8        # backbone total stride (stand-in)
HF, WF = H // PATCH, W // PATCH          # feature map 8 x 8
CBACK = 32       # backbone output channels
HIDDEN = 16      # bottleneck / transformer hidden dim
NPF = HIDDEN // 2                        # num_pos_feats of sine PE
TEMPERATURE = 10000.0
SCALE = 2.0 * math.pi
EPS = 1e-6

HW = HF * WF                              # 64 spatial tokens
M = HW * B                                # 128 rows, ordered (h, w, b)
K1 = CIN * PATCH * PATCH                  # 192 patch features
LANE = 128
CPAD = max(CBACK, LANE)                   # 128 (lane-dense intermediate)
HPAD = max(HIDDEN, LANE)                  # 128 (lane-dense output)
WB = WF * B                               # 16 (flattened (w, b) axis for PE)
CONST_ROWS = 32                           # packed constants slab rows


# ------------------------- fused Pallas kernel -------------------------
def _fused_kernel(patches_ref, wcat_ref, nm_ref, consts_ref, out_ref):
    f32 = jnp.float32

    # ---- backbone patch-conv (matmul + bias + ReLU) + bottleneck 1x1 conv ----
    # bf16 operands, f32 accumulation; weight/bias columns >= CBACK/HIDDEN are
    # zero-padded, so the intermediate and feat are lane-dense and lanes
    # >= HIDDEN of `feat` are exactly zero.
    w1 = wcat_ref[0:K1, :]                       # (K1, CPAD)    bf16
    w2 = wcat_ref[K1:K1 + CPAD, :]               # (CPAD, HPAD)  bf16
    b1 = consts_ref[0:1, :]                      # (1, CPAD)     f32
    b2 = consts_ref[1:2, :]                      # (1, HPAD)     f32
    h = jnp.dot(patches_ref[...], w1, preferred_element_type=f32)
    h = jnp.maximum(h + b1, 0.0)
    feat = jnp.dot(h.astype(jnp.bfloat16), w2, preferred_element_type=f32) + b2  # (M, HPAD)

    # ---- sine positional embedding (DETR/STARK PositionEmbeddingSine) ----
    # nm is not_mask laid out (HF, WF*B): column index = w*B + b.
    nm = nm_ref[...]                             # (HF, WB) f32
    tri = consts_ref[8:8 + HF, 0:HF]             # (HF, HF) lower triangular
    swrep = consts_ref[16:16 + WB, 0:2 * WB]     # (WB, 2WB) = [cumsum_w | per-batch total]
    y_t = jnp.dot(tri, nm, preferred_element_type=f32)     # cumsum over h  (HF, WB)
    xr = jnp.dot(nm, swrep, preferred_element_type=f32)    # (HF, 2WB) : one MXU push
    x_t = xr[:, 0:WB]                                       # per-batch cumsum over w
    den_x = xr[:, WB:2 * WB]                                 # per-batch totals (last-w value)
    y_n = y_t * (SCALE / (y_t[HF - 1:HF, :] + EPS))
    x_n = x_t * (SCALE / (den_x + EPS))

    # Single lane-dense phase-shift sine pass over the merged lane axis:
    #   lane l in [HIDDEN, 2*HIDDEN): angle = (y or x)/dim_t (+pi/2 on "cos" lanes)
    #   every other lane has inv_dt = phase = 0  ->  sin(0) = 0, so the padded
    #   and feat lanes of `pos` are exactly zero without an explicit mask.
    sel_y = consts_ref[2:3, :].reshape(1, 1, HPAD)
    inv_dt = consts_ref[3:4, :].reshape(1, 1, HPAD)
    phase = consts_ref[4:5, :].reshape(1, 1, HPAD)
    base = jnp.where(sel_y > 0.5, y_n[:, :, None], x_n[:, :, None])   # (HF, WB, HPAD)
    pos = jnp.sin(base * inv_dt + phase)                              # (HF, WB, HPAD)

    # Merged lane-dense output: lanes [0,HIDDEN)=feat, [HIDDEN,2*HIDDEN)=pos.
    # (HF, WB, HPAD) -> (M, HPAD) keeps the minor dim and collapses a leading
    # dim into a sublane-aligned (16 % 8 == 0) axis: layout-preserving.
    out_ref[...] = (feat + pos.reshape(M, HPAD)).astype(out_ref.dtype)


# ------------------------- wrapper -------------------------
def backbone_bottleneck_pe(img, mask, params):
    """img: (B, 3, H, W) f32 NCHW; mask: (B, H, W) bool (1 = padded pixel)."""
    wcat, consts = params

    # ---- patch extraction in adjusted (h, w, b) row order (conv-as-matmul) ----
    # allow_input_fusion lets XLA fuse this transpose into the pallas_call input.
    # TODO(synk): pull patch extraction fully into the kernel (strided in-kernel reads)
    x = img.reshape(B, CIN, HF, PATCH, WF, PATCH)
    x = jnp.transpose(x, (2, 4, 0, 1, 3, 5))            # (HF, WF, B, CIN, p, p)
    patches = x.reshape(M, K1).astype(jnp.bfloat16)

    # ---- mask nearest-downsample to feature resolution (glue) ----
    mask_feat = mask[:, ::PATCH, ::PATCH]               # F.interpolate(mode='nearest')
    not_mask = (~mask_feat).astype(jnp.float32)         # (B, HF, WF)
    nm_t = jnp.transpose(not_mask, (1, 2, 0)).reshape(HF, WB)   # [h, w*B+b]

    cost = pl.CostEstimate(
        flops=2 * M * K1 * CPAD + 2 * M * CPAD * HPAD
              + 2 * HF * HF * WB + 2 * HF * WB * (2 * WB),
        transcendentals=HF * WB * HPAD,
        bytes_accessed=(patches.size * 2 + wcat.size * 2
                        + nm_t.size * 4 + consts.size * 4 + M * HPAD * 4),
    )

    merged = pl.pallas_call(
        _fused_kernel,
        out_shape=jax.ShapeDtypeStruct((M, HPAD), jnp.float32),
        grid=(1,),
        in_specs=[
            pl.BlockSpec((M, K1), lambda i: (0, 0)),
            pl.BlockSpec((K1 + CPAD, LANE), lambda i: (0, 0)),
            pl.BlockSpec((HF, WB), lambda i: (0, 0)),
            pl.BlockSpec((CONST_ROWS, LANE), lambda i: (0, 0)),
        ],
        out_specs=pl.BlockSpec((M, HPAD), lambda i: (0, 0)),
        compiler_params=pltpu.CompilerParams(
            dimension_semantics=("arbitrary",),
            allow_input_fusion=[True, False, False, False],
        ),
        cost_estimate=cost,
    )(patches, wcat, nm_t, consts)

    # ---- adjust(): rows are already (h, w, b) -> single slice + reshape ----
    feat_vec = merged[:, :HIDDEN].reshape(HW, B, HIDDEN)
    pos_embed_vec = merged[:, HIDDEN:2 * HIDDEN].reshape(HW, B, HIDDEN)
    mask_vec = mask_feat.reshape(B, HW)
    return feat_vec, mask_vec, pos_embed_vec


# ------------------------- params & reference -------------------------
def init_params():
    key = jax.random.PRNGKey(0)
    k1, k2, k3, k4 = jax.random.split(key, 4)
    # backbone patch-conv weight (Cb, Cin, p, p) -> (K1, Cb) matmul layout
    w_conv = 0.02 * jax.random.normal(k1, (CBACK, CIN, PATCH, PATCH), jnp.float32)
    w1_raw = w_conv.reshape(CBACK, K1).T                         # (K1, CBACK)
    b1_raw = 0.01 * jax.random.normal(k2, (1, CBACK), jnp.float32)
    # bottleneck 1x1 conv weight (hidden, Cb, 1, 1) -> (Cb, hidden)
    w_bn = 0.05 * jax.random.normal(k3, (HIDDEN, CBACK, 1, 1), jnp.float32)
    w2_raw = w_bn.reshape(HIDDEN, CBACK).T                       # (CBACK, HIDDEN)
    b2_raw = 0.01 * jax.random.normal(k4, (1, HIDDEN), jnp.float32)

    # ---- single lane-dense bf16 weight slab [w1 ; w2] ----
    w1 = jnp.zeros((K1, CPAD), jnp.float32).at[:, :CBACK].set(w1_raw)
    w2 = jnp.zeros((CPAD, HPAD), jnp.float32).at[:CBACK, :HIDDEN].set(w2_raw)
    wcat = jnp.concatenate([w1, w2], axis=0).astype(jnp.bfloat16)   # (K1+CPAD, 128)

    # ---- single packed f32 constants slab (CONST_ROWS, 128) ----
    consts = np.zeros((CONST_ROWS, LANE), np.float32)
    consts[0, :CBACK] = np.asarray(b1_raw)[0]                    # row 0: conv bias
    consts[1, :HIDDEN] = np.asarray(b2_raw)[0]                   # row 1: bottleneck bias
    # rows 2-4: per-lane PE constants for the phase-shift sine pass.
    idx = np.arange(NPF)
    dim_t = TEMPERATURE ** ((2 * (idx // 2)).astype(np.float32) / NPF)
    for c in range(HIDDEN):
        lane = HIDDEN + c                                        # merged-output pos lane
        k = c % NPF                                              # channel within y / x half
        consts[2, lane] = 1.0 if c < NPF else 0.0                # sel_y
        consts[3, lane] = 1.0 / dim_t[k]                         # 1/dim_t
        consts[4, lane] = (math.pi / 2.0) if (k % 2 == 1) else 0.0   # cos == sin(+pi/2)
    # rows 8-15: lower-triangular cumsum-over-h matrix (lanes 0..HF)
    consts[8:8 + HF, :HF] = np.tril(np.ones((HF, HF), np.float32))
    # rows 16-31: fused [cumsum-over-w | per-batch replication] matrix, col = w*B+b
    wi = np.arange(WB) // B
    bi = np.arange(WB) % B
    sw = ((wi[:, None] <= wi[None, :]) & (bi[:, None] == bi[None, :])).astype(np.float32)
    rep = (bi[:, None] == bi[None, :]).astype(np.float32)
    consts[16:16 + WB, :WB] = sw
    consts[16:16 + WB, WB:2 * WB] = rep

    kernel_params = (wcat, jnp.asarray(consts))
    ref_params = (w1_raw, b1_raw, w2_raw, b2_raw)
    return kernel_params, ref_params


def _reference(img, mask, ref_params):
    """Pure-JAX f32 reference of the same forward pass (for a sanity check)."""
    w1, b1, w2, b2 = ref_params
    x = img.reshape(B, CIN, HF, PATCH, WF, PATCH)
    x = jnp.transpose(x, (0, 2, 4, 1, 3, 5)).reshape(B * HW, K1)
    h = jnp.maximum(x @ w1 + b1, 0.0)
    feat = (h @ w2 + b2).reshape(B, HW, HIDDEN)
    feat_vec = feat.transpose(1, 0, 2)

    mask_feat = mask[:, ::PATCH, ::PATCH]
    nm = (~mask_feat).astype(jnp.float32)
    y_e = jnp.cumsum(nm, axis=1)
    x_e = jnp.cumsum(nm, axis=2)
    y_e = y_e / (y_e[:, -1:, :] + EPS) * SCALE
    x_e = x_e / (x_e[:, :, -1:] + EPS) * SCALE
    dim_t = TEMPERATURE ** ((2 * (jnp.arange(NPF) // 2)).astype(jnp.float32) / NPF)
    vy = y_e[..., None] / dim_t
    vx = x_e[..., None] / dim_t
    even = (jnp.arange(NPF) % 2) == 0
    py = jnp.where(even, jnp.sin(vy), jnp.cos(vy))
    px = jnp.where(even, jnp.sin(vx), jnp.cos(vx))
    pos = jnp.concatenate([py, px], axis=-1)                     # (B, HF, WF, HIDDEN)
    pos_vec = pos.reshape(B, HW, HIDDEN).transpose(1, 0, 2)
    return feat_vec, mask_feat.reshape(B, HW), pos_vec


if __name__ == "__main__":
    key = jax.random.PRNGKey(0)
    img = jax.random.normal(key, (B, CIN, H, W), jnp.float32)
    # padding mask: 1 on padded pixels (right / bottom strips, batch-dependent)
    hh = jnp.arange(H)[None, :, None]
    ww = jnp.arange(W)[None, None, :]
    bb = jnp.arange(B)[:, None, None]
    mask = (hh >= (H - 8 * (bb + 1))) | (ww >= (W - 4 * (bb + 1)))   # (B, H, W) bool

    kernel_params, ref_params = init_params()
    fn = jax.jit(backbone_bottleneck_pe)
    feat_vec, mask_vec, pos_embed_vec = fn(img, mask, kernel_params)
    jax.block_until_ready((feat_vec, mask_vec, pos_embed_vec))

    assert feat_vec.shape == (HW, B, HIDDEN)
    assert mask_vec.shape == (B, HW)
    assert pos_embed_vec.shape == (HW, B, HIDDEN)
    assert mask_vec.dtype == jnp.bool_

    # light numeric sanity check (kernel uses bf16 matmul operands -> loose feat tol)
    ref_feat, ref_mask, ref_pos = _reference(img, mask, ref_params)
    np.testing.assert_allclose(np.asarray(pos_embed_vec), np.asarray(ref_pos),
                               atol=1e-3, rtol=1e-3)
    np.testing.assert_allclose(np.asarray(feat_vec), np.asarray(ref_feat),
                               atol=1e-2, rtol=1e-1)
    np.testing.assert_array_equal(np.asarray(mask_vec), np.asarray(ref_mask))

    print("KERNEL_OK")
</pallas_src>

<mosaic_0001>
module attributes {stable_mosaic.version = 11 : i64} {
  func.func @_fused_kernel(%arg0: i32, %arg1: memref<128x192xbf16, #tpu.memory_space<vmem>>, %arg2: memref<320x128xbf16, #tpu.memory_space<vmem>>, %arg3: memref<8x16xf32, #tpu.memory_space<vmem>>, %arg4: memref<32x128xf32, #tpu.memory_space<vmem>>, %arg5: memref<128x128xf32, #tpu.memory_space<vmem>>) attributes {dimension_semantics = [#tpu.dimension_semantics<arbitrary>], iteration_bounds = array<i64: 1>, scalar_prefetch = 0 : i64, scratch_operands = 0 : i64, tpu.core_type = #tpu.core_type<tc>, window_params = [{pipeline_mode = #tpu.pipeline_mode<synchronous>, transform_indices = @transform_0, window_bounds = array<i64: 128, 192>}, {pipeline_mode = #tpu.pipeline_mode<synchronous>, transform_indices = @transform_1, window_bounds = array<i64: 320, 128>}, {pipeline_mode = #tpu.pipeline_mode<synchronous>, transform_indices = @transform_2, window_bounds = array<i64: 8, 16>}, {pipeline_mode = #tpu.pipeline_mode<synchronous>, transform_indices = @transform_3, window_bounds = array<i64: 32, 128>}, {pipeline_mode = #tpu.pipeline_mode<synchronous>, transform_indices = @transform_4, window_bounds = array<i64: 128, 128>}]} {
    %c0 = arith.constant 0 : index
    %c0_0 = arith.constant 0 : index
    %0 = vector.load %arg2[%c0, %c0_0] : memref<320x128xbf16, #tpu.memory_space<vmem>>, vector<192x128xbf16>
    %c192 = arith.constant 192 : index
    %c0_1 = arith.constant 0 : index
    %1 = vector.load %arg2[%c192, %c0_1] : memref<320x128xbf16, #tpu.memory_space<vmem>>, vector<128x128xbf16>
    %c0_2 = arith.constant 0 : index
    %c0_3 = arith.constant 0 : index
    %2 = vector.load %arg4[%c0_2, %c0_3] : memref<32x128xf32, #tpu.memory_space<vmem>>, vector<1x128xf32>
    %c1 = arith.constant 1 : index
    %c0_4 = arith.constant 0 : index
    %3 = vector.load %arg4[%c1, %c0_4] : memref<32x128xf32, #tpu.memory_space<vmem>>, vector<1x128xf32>
    %c0_5 = arith.constant 0 : index
    %c0_6 = arith.constant 0 : index
    %4 = vector.load %arg1[%c0_5, %c0_6] : memref<128x192xbf16, #tpu.memory_space<vmem>>, vector<128x192xbf16>
    %cst = arith.constant dense<0.000000e+00> : vector<128x128xf32>
    %5 = tpu.matmul %4, %0, %cst {dimension_numbers = #tpu.dot_dimension_numbers<[1], [0], [0], [1], [0, 0, 1, 1], [], []>} : vector<128x192xbf16>, vector<192x128xbf16>, vector<128x128xf32> -> vector<128x128xf32>
    %6 = vector.broadcast %2 : vector<1x128xf32> to vector<128x128xf32>
    %7 = arith.addf %5, %6 : vector<128x128xf32>
    %cst_7 = arith.constant 0.000000e+00 : f32
    %8 = vector.broadcast %cst_7 : f32 to vector<128x128xf32>
    %9 = arith.maximumf %7, %8 : vector<128x128xf32>
    %10 = arith.truncf %9 : vector<128x128xf32> to vector<128x128xbf16>
    %cst_8 = arith.constant dense<0.000000e+00> : vector<128x128xf32>
    %11 = tpu.matmul %10, %1, %cst_8 {dimension_numbers = #tpu.dot_dimension_numbers<[1], [0], [0], [1], [0, 0, 1, 1], [], []>} : vector<128x128xbf16>, vector<128x128xbf16>, vector<128x128xf32> -> vector<128x128xf32>
    %12 = vector.broadcast %3 : vector<1x128xf32> to vector<128x128xf32>
    %13 = arith.addf %11, %12 : vector<128x128xf32>
    %c0_9 = arith.constant 0 : index
    %c0_10 = arith.constant 0 : index
    %14 = vector.load %arg3[%c0_9, %c0_10] : memref<8x16xf32, #tpu.memory_space<vmem>>, vector<8x16xf32>
    %c8 = arith.constant 8 : index
    %c0_11 = arith.constant 0 : index
    %15 = vector.load %arg4[%c8, %c0_11] : memref<32x128xf32, #tpu.memory_space<vmem>>, vector<8x8xf32>
    %c16 = arith.constant 16 : index
    %c0_12 = arith.constant 0 : index
    %16 = vector.load %arg4[%c16, %c0_12] : memref<32x128xf32, #tpu.memory_space<vmem>>, vector<16x32xf32>
    %cst_13 = arith.constant dense<0.000000e+00> : vector<8x16xf32>
    %17 = tpu.matmul %15, %14, %cst_13 {dimension_numbers = #tpu.dot_dimension_numbers<[1], [0], [0], [1], [0, 0, 1, 1], [], []>} : vector<8x8xf32>, vector<8x16xf32>, vector<8x16xf32> -> vector<8x16xf32>
    %cst_14 = arith.constant dense<0.000000e+00> : vector<8x32xf32>
    %18 = tpu.matmul %14, %16, %cst_14 {dimension_numbers = #tpu.dot_dimension_numbers<[1], [0], [0], [1], [0, 0, 1, 1], [], []>} : vector<8x16xf32>, vector<16x32xf32>, vector<8x32xf32> -> vector<8x32xf32>
    %19 = vector.extract_strided_slice %18 {offsets = [0, 0], sizes = [8, 16], strides = [1, 1]} : vector<8x32xf32> to vector<8x16xf32>
    %20 = vector.extract_strided_slice %18 {offsets = [0, 16], sizes = [8, 16], strides = [1, 1]} : vector<8x32xf32> to vector<8x16xf32>
    %21 = vector.extract_strided_slice %17 {offsets = [7, 0], sizes = [1, 16], strides = [1, 1]} : vector<8x16xf32> to vector<1x16xf32>
    %cst_15 = arith.constant 9.99999997E-7 : f32
    %22 = vector.broadcast %cst_15 : f32 to vector<1x16xf32>
    %23 = arith.addf %21, %22 : vector<1x16xf32>
    %cst_16 = arith.constant 6.28318548 : f32
    %24 = vector.broadcast %cst_16 : f32 to vector<1x16xf32>
    %25 = arith.divf %24, %23 : vector<1x16xf32>
    %26 = vector.broadcast %25 : vector<1x16xf32> to vector<8x16xf32>
    %27 = arith.mulf %17, %26 : vector<8x16xf32>
    %cst_17 = arith.constant 9.99999997E-7 : f32
    %28 = vector.broadcast %cst_17 : f32 to vector<8x16xf32>
    %29 = arith.addf %20, %28 : vector<8x16xf32>
    %cst_18 = arith.constant 6.28318548 : f32
    %30 = vector.broadcast %cst_18 : f32 to vector<8x16xf32>
    %31 = arith.divf %30, %29 : vector<8x16xf32>
    %32 = arith.mulf %19, %31 : vector<8x16xf32>
    %c2 = arith.constant 2 : index
    %c0_19 = arith.constant 0 : index
    %33 = vector.load %arg4[%c2, %c0_19] : memref<32x128xf32, #tpu.memory_space<vmem>>, vector<1x128xf32>
    %34 = vector.shape_cast %33 : vector<1x128xf32> to vector<1x1x128xf32>
    %c3 = arith.constant 3 : index
    %c0_20 = arith.constant 0 : index
    %35 = vector.load %arg4[%c3, %c0_20] : memref<32x128xf32, #tpu.memory_space<vmem>>, vector<1x128xf32>
    %36 = vector.shape_cast %35 : vector<1x128xf32> to vector<1x1x128xf32>
    %c4 = arith.constant 4 : index
    %c0_21 = arith.constant 0 : index
    %37 = vector.load %arg4[%c4, %c0_21] : memref<32x128xf32, #tpu.memory_space<vmem>>, vector<1x128xf32>
    %38 = vector.shape_cast %37 : vector<1x128xf32> to vector<1x1x128xf32>
    %cst_22 = arith.constant 5.000000e-01 : f32
    %39 = vector.broadcast %cst_22 : f32 to vector<1x1x128xf32>
    %40 = arith.cmpf ogt, %34, %39 : vector<1x1x128xf32>
    %41 = vector.shape_cast %27 : vector<8x16xf32> to vector<8x16x1xf32>
    %42 = vector.shape_cast %32 : vector<8x16xf32> to vector<8x16x1xf32>
    %43 = vector.shape_cast %40 : vector<1x1x128xi1> to vector<1x1x128xi1>
    %44 = vector.broadcast %43 : vector<1x1x128xi1> to vector<8x16x128xi1>
    %45 = vector.shape_cast %41 : vector<8x16x1xf32> to vector<8x16x1xf32>
    %46 = vector.broadcast %45 : vector<8x16x1xf32> to vector<8x16x128xf32>
    %47 = vector.shape_cast %42 : vector<8x16x1xf32> to vector<8x16x1xf32>
    %48 = vector.broadcast %47 : vector<8x16x1xf32> to vector<8x16x128xf32>
    %49 = arith.select %44, %46, %48 : vector<8x16x128xi1>, vector<8x16x128xf32>
    %50 = vector.broadcast %36 : vector<1x1x128xf32> to vector<8x16x128xf32>
    %51 = arith.mulf %49, %50 : vector<8x16x128xf32>
    %52 = vector.broadcast %38 : vector<1x1x128xf32> to vector<8x16x128xf32>
    %53 = arith.addf %51, %52 : vector<8x16x128xf32>
    %54 = math.sin %53 : vector<8x16x128xf32>
    %55 = vector.shape_cast %54 : vector<8x16x128xf32> to vector<128x128xf32>
    %56 = arith.addf %13, %55 : vector<128x128xf32>
    %c0_23 = arith.constant 0 : index
    %c0_24 = arith.constant 0 : index
    %57 = vector.load %arg5[%c0_23, %c0_24] : memref<128x128xf32, #tpu.memory_space<vmem>>, vector<128x128xf32>
    tpu.vector_store %arg5[%c0_23, %c0_24], %56 {strides = array<i32>} : memref<128x128xf32, #tpu.memory_space<vmem>>, vector<128x128xf32>,
    return
  }
  func.func @transform_0(%arg0: i32) -> (i32, i32) {
    %c0_i32 = arith.constant 0 : i32
    %c0_i32_0 = arith.constant 0 : i32
    %c0_i32_1 = arith.constant 0 : i32
    return %c0_i32, %c0_i32_0 : i32, i32
  }
  func.func @transform_1(%arg0: i32) -> (i32, i32) {
    %c0_i32 = arith.constant 0 : i32
    %c0_i32_0 = arith.constant 0 : i32
    %c0_i32_1 = arith.constant 0 : i32
    return %c0_i32, %c0_i32_0 : i32, i32
  }
  func.func @transform_2(%arg0: i32) -> (i32, i32) {
    %c0_i32 = arith.constant 0 : i32
    %c0_i32_0 = arith.constant 0 : i32
    %c0_i32_1 = arith.constant 0 : i32
    return %c0_i32, %c0_i32_0 : i32, i32
  }
  func.func @transform_3(%arg0: i32) -> (i32, i32) {
    %c0_i32 = arith.constant 0 : i32
    %c0_i32_0 = arith.constant 0 : i32
    %c0_i32_1 = arith.constant 0 : i32
    return %c0_i32, %c0_i32_0 : i32, i32
  }
  func.func @transform_4(%arg0: i32) -> (i32, i32) {
    %c0_i32 = arith.constant 0 : i32
    %c0_i32_0 = arith.constant 0 : i32
    %c0_i32_1 = arith.constant 0 : i32
    return %c0_i32, %c0_i32_0 : i32, i32
  }
}

</mosaic_0001>

<bundles_post_ra>
// kernel: backbone_bottleneck_pe.1
= control target key start
LH: loop header
LB: loop body
LE: loop exit
PB: predicated region body
PF: predicated region fallthrough
CT: control target
= control target key end

     0   :  { %v3003_v0 = vmov 0   ;;  %vm224_vm0 = vcmask 523264   ;;  %v3004_v37 = vmov 0.0   ;;  %vm3006_vm1 = vmmov 0   ;;  %s3007_s18 = smov 112   ;;  %s4770_s1 = inlined_call_operand.vmem [shape: bf16[320,128], index: 1, kind: input, shape index: {}]   ;;  %s4771_s0 = inlined_call_operand.vmem [shape: bf16[128,192], index: 0, kind: input, shape index: {}]   ;;  %s4772_s3 = inlined_call_operand.vmem [shape: f32[32,128], index: 3, kind: input, shape index: {}]   ;;  %s4773_s2 = inlined_call_operand.vmem [shape: f32[8,16], index: 2, kind: input, shape index: {}]   ;;  %s4774_s4 = inlined_call_operand.vmem [shape: f32[128,128], index: 4, kind: output, shape index: {}]  }
   0x1   :  { %249 = vmatprep.subr.bf16.mxu0 %v3003_v0  ;;  %v2886_v1 = vld [vmem:[%s4770_s1] sm:$0xff]   ;;  %v2887_v2 = vld [vmem:[%s4770_s1 + $0x8] sm:$0xff]   ;;  %v2888_v3 = vld [vmem:[%s4770_s1 + $0x10] sm:$0xff]   ;;  %vm523_vm2 = vcmask 64512   ;;  %vm597_vm3 = vcmask 130048  }
   0x2   :  { %250 = vmatpush1.bf16.msra.mxu0 %v2886_v1  ;;  %v2889_v4 = vld [vmem:[%s4770_s1 + $0x18] sm:$0xff]   ;;  %v2900_v5 = vld [vmem:[%s4771_s0 + $0x4] ss:$8 sps:$4 sm:$0xff]   ;;  %v2892_v8 = vld [vmem:[%s4770_s1 + $0x30] sm:$0xff]   ;;  %v3005_v1 = vmov 0.0|0.0  }
   0x3   :  { %251 = vmatprep.subr.bf16.mxu0 %v3003_v0  ;;  %v2890_v6 = vld [vmem:[%s4770_s1 + $0x20] sm:$0xff]   ;;  %2658 = vmatprep.mubr.msk.bf16.mxu0 %vm224_vm0, %v2900_v5  ;;  %v2891_v7 = vld [vmem:[%s4770_s1 + $0x28] sm:$0xff]   ;;  %v2893_v11 = vld [vmem:[%s4770_s1 + $0x38] sm:$0xff]  }
   0x4   :  { %v2922_v9 = vld [vmem:[%s4770_s1 + $0x60] sm:$0xff]   ;;  %v2923_v10 = vld [vmem:[%s4770_s1 + $0x68] sm:$0xff]   ;;  %v2924_v12 = vld [vmem:[%s4770_s1 + $0x70] sm:$0xff]  }
   0x5   :  { %2764 = vmatprep.subr.bf16.mxu1 %v2922_v9  ;;  %v2894_v13 = vld [vmem:[%s4770_s1 + $0x40] sm:$0xff]   ;;  %v2925_v14 = vld [vmem:[%s4770_s1 + $0x78] sm:$0xff]   ;;  %v2895_v15 = vld [vmem:[%s4770_s1 + $0x48] sm:$0xff]  }
   0x6   :  { %252 = vmatpush1.bf16.msra.mxu0 %v2887_v2  ;;  %2765 = vmatpush3.bf16.msra.mxu1 %v2922_v9  ;;  %v2896_v16 = vld [vmem:[%s4770_s1 + $0x50] sm:$0xff]   ;;  %v2897_v17 = vld [vmem:[%s4770_s1 + $0x58] sm:$0xff]   ;;  %v2898_v18 = vld [vmem:[%s4771_s0] ss:$8 sps:$4 sm:$0xff]  }
   0x7   :  { %253 = vmatprep.subr.bf16.mxu0 %v3003_v0  ;;  %2766 = vmatprep.subr.bf16.mxu1 %v2923_v10  ;;  %v2901_v19 = vld [vmem:[%s4771_s0 + $0x14] ss:$8 sps:$4 sm:$0xff]   ;;  %v2903_v20 = vld [vmem:[%s4771_s0 + $0x10] ss:$8 sps:$4 sm:$0xff]   ;;  %v2904_v21 = vld [vmem:[%s4771_s0 + $0x24] ss:$8 sps:$4 sm:$0xff]  }
   0x8   :  { %v2906_v22 = vld [vmem:[%s4771_s0 + $0x20] ss:$8 sps:$4 sm:$0xff]   ;;  %v2907_v23 = vld [vmem:[%s4771_s0 + $0x34] ss:$8 sps:$4 sm:$0xff]   ;;  %v2909_v24 = vld [vmem:[%s4771_s0 + $0x30] ss:$8 sps:$4 sm:$0xff]  }
   0x9   :  { %v2910_v25 = vld [vmem:[%s4771_s0 + $0x44] ss:$8 sps:$4 sm:$0xff]   ;;  %v2912_v26 = vld [vmem:[%s4771_s0 + $0x40] ss:$8 sps:$4 sm:$0xff]   ;;  %v2913_v27 = vld [vmem:[%s4771_s0 + $0x54] ss:$8 sps:$4 sm:$0xff]  }
   0xa   :  { %254 = vmatpush1.bf16.msra.mxu0 %v2888_v3  ;;  %2767 = vmatpush3.bf16.msra.mxu1 %v2923_v10  ;;  %v2915_v28 = vld [vmem:[%s4771_s0 + $0x50] ss:$8 sps:$4 sm:$0xff]   ;;  %v2916_v29 = vld [vmem:[%s4771_s0 + $0x64] ss:$8 sps:$4 sm:$0xff]   ;;  %v2918_v30 = vld [vmem:[%s4771_s0 + $0x60] ss:$8 sps:$4 sm:$0xff]  }
   0xb   :  { %255 = vmatprep.subr.bf16.mxu0 %v3003_v0  ;;  %2768 = vmatprep.subr.bf16.mxu1 %v2924_v12  ;;  %v2919_v31 = vld [vmem:[%s4771_s0 + $0x74] ss:$8 sps:$4 sm:$0xff]   ;;  %v2921_v32 = vld [vmem:[%s4771_s0 + $0x70] ss:$8 sps:$4 sm:$0xff]   ;;  %v2926_v33 = vld [vmem:[%s4770_s1 + $0x80] sm:$0xff]  }
   0xc   :  { %v2927_v34 = vld [vmem:[%s4770_s1 + $0x88] sm:$0xff]   ;;  %v2928_v35 = vld [vmem:[%s4770_s1 + $0x90] sm:$0xff]   ;;  %v2929_v36 = vld [vmem:[%s4770_s1 + $0x98] sm:$0xff]  }
   0xd   :  { %v3171_v38 = vld [vmem:[%s4772_s3] ss:$0 sm:$0xff] }
   0xe   :  { %256 = vmatpush1.bf16.msra.mxu0 %v2889_v4  ;;  %2769 = vmatpush3.bf16.msra.mxu1 %v2924_v12  ;;  %v3180_v57 = vld [vmem:[%s4773_s2] sm:$0xff] }
   0xf   :  { %257 = vmatprep.subr.bf16.mxu0 %v3003_v0  ;;  %2770 = vmatprep.subr.bf16.mxu1 %v2925_v14 }
  0x12   :  { %258 = vmatpush1.bf16.msra.mxu0 %v2890_v6  ;;  %2771 = vmatpush3.bf16.msra.mxu1 %v2925_v14 }
  0x13   :  { %259 = vmatprep.subr.bf16.mxu0 %v3003_v0  ;;  %2772 = vmatprep.subr.bf16.mxu1 %v2926_v33 }
  0x16   :  { %260 = vmatpush1.bf16.msra.mxu0 %v2891_v7  ;;  %2773 = vmatpush3.bf16.msra.mxu1 %v2926_v33 }
  0x17   :  { %261 = vmatprep.subr.bf16.mxu0 %v3003_v0  ;;  %2774 = vmatprep.subr.bf16.mxu1 %v2927_v34 }
  0x1a   :  { %262 = vmatpush1.bf16.msra.mxu0 %v2892_v8  ;;  %2775 = vmatpush3.bf16.msra.mxu1 %v2927_v34 }
  0x1b   :  { %263 = vmatprep.subr.bf16.mxu0 %v3003_v0  ;;  %2776 = vmatprep.subr.bf16.mxu1 %v2928_v35 }
  0x1e   :  { %264 = vmatpush1.bf16.msra.mxu0 %v2893_v11  ;;  %2777 = vmatpush3.bf16.msra.mxu1 %v2928_v35 }
  0x1f   :  { %265 = vmatprep.subr.bf16.mxu0 %v3003_v0  ;;  %2778 = vmatprep.subr.bf16.mxu1 %v2929_v36 }
  0x22   :  { %266 = vmatpush1.bf16.msra.mxu0 %v2894_v13  ;;  %2779 = vmatpush3.bf16.msra.mxu1 %v2929_v36 }
  0x23   :  { %267 = vmatprep.subr.bf16.mxu0 %v3003_v0  ;;  %2796 = vmatprep.subr.mxu1 %v3004_v37 }
  0x26   :  { %268 = vmatpush1.bf16.msra.mxu0 %v2895_v15 }
  0x27   :  { %269 = vmatprep.subr.bf16.mxu0 %v3003_v0 }
  0x2a   :  { %270 = vmatpush1.bf16.msra.mxu0 %v2896_v16 }
  0x2b   :  { %271 = vmatprep.subr.bf16.mxu0 %v3003_v0 }
  0x2e   :  { %272 = vmatpush1.bf16.msra.mxu0 %v2897_v17 }
  0x31   :  { %282 = vmatmul.mubr.bf16.vlgmr.msra.gmra.mrb[0].mxu0 %v2898_v18 }
  0x32   :  { %2659 = vmatprep.mubr.msk.bf16.mxu0 %vm224_vm0, %v2901_v19 }
  0x39   :  { %290 = vmatmul.mubr.bf16.gmra.mrb[4].mxu0 %v2903_v20 }
  0x3a   :  { %2660 = vmatprep.mubr.msk.bf16.mxu0 %vm224_vm0, %v2904_v21 }
  0x41   :  { %298 = vmatmul.mubr.bf16.gmra.mrb[8].mxu0 %v2906_v22 }
  0x42   :  { %2661 = vmatprep.mubr.msk.bf16.mxu0 %vm224_vm0, %v2907_v23 }
  0x49   :  { %306 = vmatmul.mubr.bf16.gmra.mrb[12].mxu0 %v2909_v24 }
  0x4a   :  { %2662 = vmatprep.mubr.msk.bf16.mxu0 %vm224_vm0, %v2910_v25 }
  0x51   :  { %314 = vmatmul.mubr.bf16.gmra.mrb[16].mxu0 %v2912_v26 }
  0x52   :  { %2663 = vmatprep.mubr.msk.bf16.mxu0 %vm224_vm0, %v2913_v27 }
  0x59   :  { %322 = vmatmul.mubr.bf16.gmra.mrb[20].mxu0 %v2915_v28 }
  0x5a   :  { %2664 = vmatprep.mubr.msk.bf16.mxu0 %vm224_vm0, %v2916_v29 }
  0x61   :  { %330 = vmatmul.mubr.bf16.gmra.mrb[24].mxu0 %v2918_v30 }
  0x62   :  { %2665 = vmatprep.mubr.msk.bf16.mxu0 %vm224_vm0, %v2919_v31 }
  0x69   :  { %338 = vmatmul.mubr.bf16.gmra.mrb[28].mxu0 %v2921_v32 }
 0x104   :  { %v283_v39 = vpop.f32.mrb[0].mxu0 }
 0x105   :  { %v284_v40 = vadd.f32 %v3171_v38, %v283_v39  ;;  %v285_v41 = vpop.f32.mrb[1].mxu0 }
 0x106   :  { %v286_v42 = vpop.f32.mrb[2].mxu0 }
 0x107   :  { %v287_v43 = vadd.f32 %v3171_v38, %v286_v42  ;;  %v288_v44 = vpop.f32.mrb[3].mxu0  ;;  %v346_v45 = vmax.f32 %v284_v40, 0.0 }
 0x109   :  { %v347_v46 = vmax.f32 %v287_v43, 0.0 }
 0x10b   :  { %v362_v47 = vpack.c.bf16 %v347_v46, %v346_v45 }
 0x10c   :  { %v291_v48 = vpop.f32.mrb[4].mxu0 }
 0x10d   :  { %v292_v49 = vadd.f32 %v3171_v38, %v291_v48  ;;  %v293_v50 = vpop.f32.mrb[5].mxu0  ;;  %2780 = vmatprep.mubr.bf16.mxu1 %v362_v47 }
 0x10e   :  { %v294_v51 = vpop.f32.mrb[6].mxu0 }
 0x10f   :  { %v295_v52 = vadd.f32 %v3171_v38, %v294_v51  ;;  %v296_v53 = vpop.f32.mrb[7].mxu0  ;;  %v348_v54 = vmax.f32 %v292_v49, 0.0 }
 0x110   :  { %v522_v53 = vld [vmem:[%s4772_s3 + $0x18] sm:$0xff] }
 0x111   :  { %v349_v55 = vmax.f32 %v295_v52, 0.0  ;;  %v521_v52 = vld [vmem:[%s4772_s3 + $0x10] sm:$0xff] }
 0x113   :  { %v363_v56 = vpack.c.bf16 %v349_v55, %v348_v54  ;;  %v2809_v54 = vpack.c.bf16 %v522_v53, %v521_v52 }
 0x114   :  { %v299_v58 = vpop.f32.mrb[8].mxu0 }
 0x115   :  { %v300_v59 = vadd.f32 %v3171_v38, %v299_v58  ;;  %v301_v60 = vpop.f32.mrb[9].mxu0  ;;  %2781 = vmatmul.mubr.bf16.vlgmr.msra.gmra.mrb[0].mxu1 %v363_v56 }
 0x116   :  { %v302_v61 = vpop.f32.mrb[10].mxu0  ;;  %2797 = vmatpush3.msra.mxu1 %v3180_v57  ;;  %v3218_v60 = vld [vmem:[%s4772_s3 + $0x1] ss:$0 sm:$0xff] }
 0x117   :  { %v303_v62 = vadd.f32 %v3171_v38, %v302_v61  ;;  %v304_v63 = vpop.f32.mrb[11].mxu0  ;;  %2808 = vmatprep.subr.bf16.mxu1 %v3005_v1  ;;  %v350_v2 = vmax.f32 %v300_v59, 0.0 }
 0x119   :  { %v351_v3 = vmax.f32 %v303_v62, 0.0 }
 0x11b   :  { %v364_v4 = vpack.c.bf16 %v351_v3, %v350_v2 }
 0x11c   :  { %v307_v5 = vpop.f32.mrb[12].mxu0 }
 0x11d   :  { %v308_v6 = vadd.f32 %v3171_v38, %v307_v5  ;;  %v309_v7 = vpop.f32.mrb[13].mxu0  ;;  %2784 = vmatprep.mubr.bf16.mxu1 %v364_v4 }
 0x11e   :  { %v310_v8 = vpop.f32.mrb[14].mxu0 }
 0x11f   :  { %v311_v9 = vadd.f32 %v3171_v38, %v310_v8  ;;  %v312_v10 = vpop.f32.mrb[15].mxu0  ;;  %v352_v11 = vmax.f32 %v308_v6, 0.0 }
 0x121   :  { %v353_v12 = vmax.f32 %v311_v9, 0.0 }
 0x123   :  { %v365_v13 = vpack.c.bf16 %v353_v12, %v352_v11 }
 0x124   :  { %v315_v14 = vpop.f32.mrb[16].mxu0 }
 0x125   :  { %v316_v15 = vadd.f32 %v3171_v38, %v315_v14  ;;  %v317_v16 = vpop.f32.mrb[17].mxu0  ;;  %2785 = vmatmul.mubr.bf16.gmra.mrb[4].mxu1 %v365_v13 }
 0x126   :  { %v318_v17 = vpop.f32.mrb[18].mxu0 }
 0x127   :  { %v319_v18 = vadd.f32 %v3171_v38, %v318_v17  ;;  %v320_v19 = vpop.f32.mrb[19].mxu0  ;;  %v354_v20 = vmax.f32 %v316_v15, 0.0 }
 0x129   :  { %v355_v21 = vmax.f32 %v319_v18, 0.0 }
 0x12b   :  { %v366_v22 = vpack.c.bf16 %v355_v21, %v354_v20 }
 0x12c   :  { %v323_v23 = vpop.f32.mrb[20].mxu0 }
 0x12d   :  { %v324_v24 = vadd.f32 %v3171_v38, %v323_v23  ;;  %v325_v25 = vpop.f32.mrb[21].mxu0  ;;  %2788 = vmatprep.mubr.bf16.mxu1 %v366_v22  ;;  %v674_v23 = vlaneseq }
 0x12e   :  { %v326_v26 = vpop.f32.mrb[22].mxu0 }
 0x12f   :  { %v327_v27 = vadd.f32 %v3171_v38, %v326_v26  ;;  %v328_v28 = vpop.f32.mrb[23].mxu0  ;;  %v356_v29 = vmax.f32 %v324_v24, 0.0 }
 0x131   :  { %v357_v30 = vmax.f32 %v327_v27, 0.0  ;;  %v675_v27 = vshrl.u32 %v674_v23, 7 }
 0x133   :  { %v367_v31 = vpack.c.bf16 %v357_v30, %v356_v29  ;;  %v3256_v28 = vsub.s32 7, %v675_v27 }
 0x134   :  { %v331_v32 = vpop.f32.mrb[24].mxu0 }
 0x135   :  { %v332_v33 = vadd.f32 %v3171_v38, %v331_v32  ;;  %v333_v34 = vpop.f32.mrb[25].mxu0  ;;  %2789 = vmatmul.mubr.bf16.gmra.mrb[8].mxu1 %v367_v31  ;;  %v3259_v32 = vsub.s32 0, %v675_v27 }
 0x136   :  { %v334_v35 = vpop.f32.mrb[26].mxu0 }
 0x137   :  { %v335_v36 = vadd.f32 %v3171_v38, %v334_v35  ;;  %v336_v39 = vpop.f32.mrb[27].mxu0  ;;  %v358_v40 = vmax.f32 %v332_v33, 0.0 }
 0x138   :  { %v704_v39 = vsub.s32 1, %v675_v27 }
 0x139   :  { %v359_v41 = vmax.f32 %v335_v36, 0.0 }
 0x13b   :  { %v368_v42 = vpack.c.bf16 %v359_v41, %v358_v40  ;;  %v715_v41 = vsub.s32 2, %v675_v27 }
 0x13c   :  { %v339_v43 = vpop.f32.mrb[28].mxu0 }
 0x13d   :  { %v340_v44 = vadd.f32 %v3171_v38, %v339_v43  ;;  %v341_v45 = vpop.f32.mrb[29].mxu0  ;;  %2792 = vmatprep.mubr.bf16.mxu1 %v368_v42  ;;  %v726_v43 = vsub.s32 3, %v675_v27 }
 0x13e   :  { %v342_v46 = vpop.f32.mrb[30].mxu0  ;;  %v737_v45 = vsub.s32 4, %v675_v27 }
 0x13f   :  { %v343_v47 = vadd.f32 %v3171_v38, %v342_v46  ;;  %v344_v48 = vpop.f32.mrb[31].mxu0  ;;  %v360_v49 = vmax.f32 %v340_v44, 0.0  ;;  %v520_v38 = vld [vmem:[%s4772_s3 + $0x8] sm:$0xff] }
 0x141   :  { %v361_v50 = vmax.f32 %v343_v47, 0.0  ;;  %v748_v47 = vsub.s32 5, %v675_v27 }
 0x143   :  { %v369_v51 = vpack.c.bf16 %v361_v50, %v360_v49  ;;  %v759_v49 = vsub.s32 6, %v675_v27 }
 0x145   :  { %2793 = vmatmul.mubr.bf16.gmra.mrb[12].mxu1 %v369_v51 }
 0x146   :  { %2798 = vmatprep.mubr.msk.f32.mxu1 %vm3006_vm1, %v3004_v37 }
 0x14d   :  { %2799 = vmatmul.mubr.msk.f32.vlgmr.msra.gmra.mrb[16].mxu1 %vm523_vm2, %v520_v38 }
 0x14e   :  { %2810 = vmatpush3.bf16.msra.mxu1 %v2809_v54  ;;  %2805 = vmatprep.mubr.msk.f32.mxu1 %vm3006_vm1, %v3004_v37 }
 0x151   :  { %2806 = vmatmul.mubr.msk.f32.vlgmr.msra.gmra.mrb[18].mxu1 %vm597_vm3, %v3180_v57 }
 0x1e8   :  { %v3207_v55 = vpop.f32.mrb[0].mxu1 }
 0x1e9   :  { %v3209_v56 = vpop.f32.mrb[1].mxu1 }
 0x1ea   :  { %v3211_v58 = vpop.f32.mrb[2].mxu1 }
 0x1eb   :  { %v3213_v59 = vpop.f32.mrb[3].mxu1 }
 0x1f8   :  { %v2786_v61 = vpop.f32.mrb[4].mxu1 }
 0x1f9   :  { %v3221_v62 = vadd.f32 %v2786_v61, %v3218_v60  ;;  %v472_v37 = vpop.f32.mrb[5].mxu1 }
 0x1fa   :  { %v3224_v57 = vadd.f32 %v3218_v60, %v472_v37  ;;  %v2787_v63 = vpop.f32.mrb[6].mxu1 }
 0x1fb   :  { %4789 = vst [vmem:[#allocation2_spill] sm:$0xff] %v3221_v62  ;;  %v3227_v1 = vadd.f32 %v2787_v63, %v3218_v60  ;;  %v475_v2 = vpop.f32.mrb[7].mxu1 }
 0x1fc   :  { %v3230_v3 = vadd.f32 %v3218_v60, %v475_v2 }
 0x1fd   :  { %4790 = vst [vmem:[#allocation3_spill] sm:$0xff] %v3227_v1 }
 0x208   :  { %v2790_v4 = vpop.f32.mrb[8].mxu1 }
 0x209   :  { %v3233_v5 = vadd.f32 %v2790_v4, %v3218_v60  ;;  %v488_v6 = vpop.f32.mrb[9].mxu1 }
 0x20a   :  { %v3236_v7 = vadd.f32 %v3218_v60, %v488_v6  ;;  %v2791_v8 = vpop.f32.mrb[10].mxu1 }
 0x20b   :  { %4791 = vst [vmem:[#allocation4_spill] sm:$0xff] %v3233_v5  ;;  %v3239_v9 = vadd.f32 %v2791_v8, %v3218_v60  ;;  %v491_v10 = vpop.f32.mrb[11].mxu1 }
 0x20c   :  { %4792 = vst [vmem:[#allocation5_spill] sm:$0xff] %v3236_v7  ;;  %v3242_v11 = vadd.f32 %v3218_v60, %v491_v10 }
 0x20d   :  { %4793 = vst [vmem:[#allocation6_spill] sm:$0xff] %v3239_v9 }
 0x20e   :  { %4794 = vst [vmem:[#allocation7_spill] sm:$0xff] %v3242_v11 }
 0x218   :  { %v2794_v12 = vpop.f32.mrb[12].mxu1 }
 0x219   :  { %v3245_v13 = vadd.f32 %v2794_v12, %v3218_v60  ;;  %v504_v14 = vpop.f32.mrb[13].mxu1 }
 0x21a   :  { %v3248_v15 = vadd.f32 %v3218_v60, %v504_v14  ;;  %v2795_v16 = vpop.f32.mrb[14].mxu1 }
 0x21b   :  { %4795 = vst [vmem:[#allocation8_spill] sm:$0xff] %v3245_v13  ;;  %v3251_v17 = vadd.f32 %v2795_v16, %v3218_v60  ;;  %v507_v18 = vpop.f32.mrb[15].mxu1 }
 0x21c   :  { %4796 = vst [vmem:[#allocation9_spill] sm:$0xff] %v3248_v15  ;;  %v3254_v19 = vadd.f32 %v3218_v60, %v507_v18 }
 0x21d   :  { %4797 = vst [vmem:[#allocation10_spill] sm:$0xff] %v3251_v17 }
 0x21e   :  { %4798 = vst [vmem:[#allocation11_spill] sm:$0xff] %v3254_v19 }
 0x220   :  { %v593_v20 = vpop.f32.mrb[16].mxu1 }
 0x221   :  { %v671_v21 = vadd.f32 1e-06, %v593_v20  ;;  %v2800_v22 = vpop.f32.mrb[17].mxu1 }
 0x223   :  { %2930 = vrcp.f32 %v671_v21 }
 0x224   :  { %v667_v24 = vpop.f32.mrb[18].mxu1 }
 0x225   :  { %v679_v25 = vadd.f32 1e-06, %v667_v24  ;;  %v2807_v26 = vpop.f32.mrb[19].mxu1 }
 0x226   :  { %v687_v26 = vld [vmem:[%s4772_s3 + $0x2] sm:$0x1] }
 0x227   :  { %2932 = vrcp.f32 %v679_v25  ;;  %vm690_vm4 = vcmp.gt.f32.partialorder %v687_v26, 0.5 }
 0x22d   :  { %v2931_v29 = vpop.eup %2930 }
 0x22e   :  { %v673_v30 = vmul.f32 6.2831855, %v2931_v29  ;;  %v867_v29 = vsel %vm690_vm4, 1, %v3003_v0  ;;  %v3306_v0 = vld [vmem:[%s4772_s3 + $0x4] ss:$0 sm:$0xff] }
 0x230   :  { %v677_v31 = vrot.slane %v673_v30, %v3256_v28  ;;  %v871_v30 = vrot.slane %v867_v29, %v3259_v32 }
 0x231   :  { %v2933_v33 = vpop.eup %2932 }
 0x232   :  { %v678_v34 = vmul.f32 %v677_v31, %v593_v20  ;;  %v681_v35 = vmul.f32 6.2831855, %v2933_v33  ;;  %vm3294_vm5 = vcmp.eq.s32.totalorder %v871_v30, 1 }
 0x234   :  { %683 = vrot.lane.b32.xlu0 %v681_v35, %s3007_s18  ;;  %v694_v36 = vrot.slane %v678_v34, %v3259_v32  ;;  %v705_v40 = vrot.slane %v678_v34, %v704_v39  ;;  %v716_v42 = vrot.slane %v678_v34, %v715_v41  ;;  %v727_v44 = vrot.slane %v678_v34, %v726_v43  ;;  %v3301_v35 = vld [vmem:[%s4772_s3 + $0x3] ss:$0 sm:$0xff] }
 0x235   :  { %v738_v46 = vrot.slane %v678_v34, %v737_v45  ;;  %v749_v48 = vrot.slane %v678_v34, %v748_v47  ;;  %v760_v50 = vrot.slane %v678_v34, %v759_v49  ;;  %v771_v51 = vrot.slane %v678_v34, %v3256_v28 }
 0x236   :  { %700 = vbcast.lane.b32.xlu1 %v694_v36, 264 }
 0x238   :  { %696 = vbcast.lane.b32.xlu0 %v694_v36, 256 }
 0x23a   :  { %707 = vbcast.lane.b32.xlu1 %v705_v40, 256 }
 0x23c   :  { %711 = vbcast.lane.b32.xlu0 %v705_v40, 264 }
 0x23e   :  { %718 = vbcast.lane.b32.xlu1 %v716_v42, 256 }
 0x240   :  { %722 = vbcast.lane.b32.xlu0 %v716_v42, 264 }
 0x242   :  { %729 = vbcast.lane.b32.xlu1 %v727_v44, 256 }
 0x244   :  { %733 = vbcast.lane.b32.xlu0 %v727_v44, 264 }
 0x246   :  { %740 = vbcast.lane.b32.xlu1 %v738_v46, 256 }
 0x248   :  { %744 = vbcast.lane.b32.xlu0 %v738_v46, 264 }
 0x24a   :  { %751 = vbcast.lane.b32.xlu1 %v749_v48, 256 }
 0x24c   :  { %755 = vbcast.lane.b32.xlu0 %v749_v48, 264 }
 0x24e   :  { %762 = vbcast.lane.b32.xlu1 %v760_v50, 256 }
 0x250   :  { %766 = vbcast.lane.b32.xlu0 %v760_v50, 264 }
 0x252   :  { %773 = vbcast.lane.b32.xlu1 %v771_v51, 256 }
 0x254   :  { %777 = vbcast.lane.b32.xlu0 %v771_v51, 264 }
 0x2a6   :  { %v684_v52 = vpop.permute.xlu0 %683 }
 0x2a7   :  { %v686_v53 = vmul.f32 %v684_v52, %v667_v24 }
 0x2a8   :  { %v701_v8 = vpop.permute.xlu1 %700 }
 0x2a9   :  { %v782_v38 = vrot.slane %v686_v53, %v3259_v32  ;;  %v793_v54 = vrot.slane %v686_v53, %v704_v39  ;;  %v804_v61 = vrot.slane %v686_v53, %v715_v41  ;;  %v815_v37 = vrot.slane %v686_v53, %v726_v43 }
 0x2aa   :  { %v826_v63 = vrot.slane %v686_v53, %v737_v45  ;;  %v837_v2 = vrot.slane %v686_v53, %v748_v47  ;;  %v848_v4 = vrot.slane %v686_v53, %v759_v49  ;;  %v859_v6 = vrot.slane %v686_v53, %v3256_v28  ;;  %v697_v10 = vpop.permute.xlu0 %696 }
 0x2ab   :  { %788 = vbcast.lane.b32.xlu0 %v782_v38, 264  ;;  %784 = vbcast.lane.b32.xlu1 %v782_v38, 256 }
 0x2ac   :  { %v708_v12 = vpop.permute.xlu1 %707 }
 0x2ae   :  { %v712_v14 = vpop.permute.xlu0 %711 }
 0x2af   :  { %799 = vbcast.lane.b32.xlu0 %v793_v54, 264  ;;  %795 = vbcast.lane.b32.xlu1 %v793_v54, 256 }
 0x2b0   :  { %v3265_v16 = vpop.permute.xlu1 %718 }
 0x2b2   :  { %v3267_v18 = vpop.permute.xlu0 %722 }
 0x2b3   :  { %810 = vbcast.lane.b32.xlu0 %v804_v61, 264  ;;  %806 = vbcast.lane.b32.xlu1 %v804_v61, 256 }
 0x2b4   :  { %v3269_v20 = vpop.permute.xlu1 %729 }
 0x2b6   :  { %v3271_v21 = vpop.permute.xlu0 %733 }
 0x2b7   :  { %821 = vbcast.lane.b32.xlu0 %v815_v37, 264  ;;  %817 = vbcast.lane.b32.xlu1 %v815_v37, 256 }
 0x2b8   :  { %v3273_v22 = vpop.permute.xlu1 %740 }
 0x2ba   :  { %v3275_v23 = vpop.permute.xlu0 %744 }
 0x2bb   :  { %832 = vbcast.lane.b32.xlu0 %v826_v63, 264  ;;  %828 = vbcast.lane.b32.xlu1 %v826_v63, 256 }
 0x2bc   :  { %v3277_v24 = vpop.permute.xlu1 %751 }
 0x2be   :  { %v3279_v25 = vpop.permute.xlu0 %755 }
 0x2bf   :  { %843 = vbcast.lane.b32.xlu0 %v837_v2, 264  ;;  %839 = vbcast.lane.b32.xlu1 %v837_v2, 256  ;;  %4799 = vst [vmem:[#allocation12_spill] sm:$0xff] %v3279_v25 }
 0x2c0   :  { %v3284_v27 = vpop.permute.xlu1 %762 }
 0x2c1   :  { %4800 = vst [vmem:[#allocation13_spill] sm:$0xff] %v3284_v27 }
 0x2c2   :  { %v3286_v28 = vpop.permute.xlu0 %766 }
 0x2c3   :  { %854 = vbcast.lane.b32.xlu0 %v848_v4, 264  ;;  %850 = vbcast.lane.b32.xlu1 %v848_v4, 256  ;;  %4801 = vst [vmem:[#allocation14_spill] sm:$0xff] %v3286_v28 }
 0x2c4   :  { %v3290_v31 = vpop.permute.xlu1 %773 }
 0x2c5   :  { %4802 = vst [vmem:[#allocation15_spill] sm:$0xff] %v3290_v31 }
 0x2c6   :  { %v3292_v33 = vpop.permute.xlu0 %777 }
 0x2c7   :  { %865 = vbcast.lane.b32.xlu0 %v859_v6, 264  ;;  %861 = vbcast.lane.b32.xlu1 %v859_v6, 256  ;;  %4803 = vst [vmem:[#allocation16_spill] sm:$0xff] %v3292_v33 }
 0x31d   :  { %v785_v36 = vpop.permute.xlu1 %784  ;;  %v789_v39 = vpop.permute.xlu0 %788 }
 0x31e   :  { %v873_v32 = vsel %vm3294_vm5, %v697_v10, %v785_v36  ;;  %v874_v40 = vsel %vm3294_vm5, %v701_v8, %v789_v39 }
 0x31f   :  { %v893_v41 = vmul.f32 %v3301_v35, %v873_v32  ;;  %v894_v42 = vmul.f32 %v3301_v35, %v874_v40 }
 0x321   :  { %v3315_v43 = vadd.f32 %v3306_v0, %v893_v41  ;;  %v3318_v44 = vadd.f32 %v3306_v0, %v894_v42  ;;  %v796_v45 = vpop.permute.xlu1 %795  ;;  %v800_v61 = vpop.permute.xlu0 %799 }
 0x322   :  { %v875_v46 = vsel %vm3294_vm5, %v708_v12, %v796_v45  ;;  %v876_v6 = vsel %vm3294_vm5, %v712_v14, %v800_v61 }
 0x323   :  { %v4776_v47 = vand.u32 2147483647, %v3315_v43  ;;  %v932_v48 = vand.u32 2139095040, %v3315_v43  ;;  %v4775_v49 = vand.u32 2147483647, %v3318_v44  ;;  %v1036_v50 = vand.u32 2139095040, %v3318_v44 }
 0x324   :  { %v895_v52 = vmul.f32 %v3301_v35, %v875_v46  ;;  %v3338_v40 = vmul.f32 %v3301_v35, %v876_v6  ;;  %vm931_vm3 = vcmp.lt.s32.totalorder %v3315_v43, 0  ;;  %vm1035_vm4 = vcmp.lt.s32.totalorder %v3318_v44, 0 }
 0x325   :  { %v933_v51 = vshrl.u32 %v932_v48, 23  ;;  %v936_v53 = vand.u32 8388607, %v4776_v47  ;;  %v1037_v38 = vshrl.u32 %v1036_v50, 23  ;;  %v1040_v54 = vand.u32 8388607, %v4775_v49 }
 0x326   :  { %v3332_v63 = vadd.f32 %v3306_v0, %v895_v52  ;;  %v4783_v48 = vmov 683565275  }
 0x327   :  { %v2679_v37 = vadd.s32 4294967169, %v933_v51  ;;  %v2683_v2 = vadd.s32 4294967169, %v1037_v38  ;;  %v937_v8 = vor.u32 8388608, %v936_v53  ;;  %v1041_v10 = vor.u32 8388608, %v1040_v54 }
 0x328   :  { %v1140_v26 = vand.u32 2139095040, %v3332_v63  ;;  %v4781_v53 = vmov 2475754826   ;;  %v4777_v54 = vmov 2131351028  }
 0x329   :  { %v939_v4 = vadd.s32 1, %v2679_v37  ;;  %v1043_v12 = vadd.s32 1, %v2683_v2  ;;  %v3340_v41 = vshll.u32 %v937_v8, 8  ;;  %v3344_v14 = vshll.u32 %v1041_v10, 8 }
 0x32a   :  { %v1141_v30 = vshrl.u32 %v1140_v26, 23  ;;  %v4779_v37 = vmov 2102212464  }
 0x32b   :  { %vm940_vm6 = vcmp.gt.s32.totalorder %v939_v4, 0  ;;  %vm1044_vm7 = vcmp.gt.s32.totalorder %v1043_v12, 0 }
 0x32c   :  { %v941_v29 = vsel %vm940_vm6, %v939_v4, 0  ;;  %v1045_v32 = vsel %vm1044_vm7, %v1043_v12, 0  ;;  %v3348_v52 = vadd.s32 4294967169, %v1141_v30  ;;  %v4785_v4 = vmov 920167782  }
 0x32d   :  { %v942_v36 = vshrl.u32 %v941_v29, 5  ;;  %v943_v39 = vand.u32 31, %v941_v29  ;;  %v3342_v42 = vshrl.u32 %v1045_v32, 5  ;;  %v1047_v51 = vand.u32 31, %v1045_v32 }
 0x32e   :  { %v4787_v30 = vmov 1326507024  }
 0x32f   :  { %v944_v46 = vsub.s32 32, %v943_v39  ;;  %v946_v50 = vshll.u32 %v4783_v48, %v943_v39  ;;  %v949_v38 = vshll.u32 %v4781_v53, %v943_v39  ;;  %v952_v61 = vshll.u32 %v4777_v54, %v943_v39 }
 0x330   :  { %v955_v2 = vshll.u32 %v4779_v37, %v943_v39  ;;  %v958_v6 = vshll.u32 %v4785_v4, %v943_v39  ;;  %vm961_vm8 = vcmp.lt.s32.totalorder %v942_v36, 1  ;;  %vm962_vm9 = vcmp.lt.s32.totalorder %v942_v36, 2 }
 0x331   :  { %v947_v8 = vshrl.u32 %v4781_v53, %v944_v46  ;;  %v950_v10 = vshrl.u32 %v4777_v54, %v944_v46  ;;  %v953_v12 = vshrl.u32 %v4779_v37, %v944_v46  ;;  %v945_v26 = vshrl.u32 %v4783_v48, %v944_v46 }
 0x332   :  { %v956_v29 = vshrl.u32 %v4785_v4, %v944_v46  ;;  %v959_v32 = vshrl.u32 %v4787_v30, %v944_v46  ;;  %v1048_v17 = vsub.s32 32, %v1047_v51  ;;  %vm963_vm10 = vcmp.lt.s32.totalorder %v942_v36, 3 }
 0x333   :  { %v948_v49 = vor.u32 %v947_v8, %v946_v50  ;;  %v951_v47 = vor.u32 %v950_v10, %v949_v38  ;;  %v954_v45 = vor.u32 %v953_v12, %v952_v61  ;;  %vm964_vm11 = vcmp.lt.s32.totalorder %v942_v36, 4 }
 0x334   :  { %v957_v39 = vor.u32 %v956_v29, %v955_v2  ;;  %v960_v13 = vor.u32 %v959_v32, %v958_v6  ;;  %v4806_v46 = vmov 683565275   ;;  %v4807_v61 = vmov 2475754826  }
 0x335   :  { %v965_v54 = vsel %vm961_vm8, %v945_v26, %v948_v49  ;;  %v966_v37 = vsel %vm964_vm11, %v954_v45, 2102212464  ;;  %v969_v53 = vsel %vm961_vm8, %v948_v49, %v951_v47  ;;  %v973_v48 = vsel %vm961_vm8, %v951_v47, %v954_v45 }
 0x336   :  { %v967_v4 = vsel %vm963_vm10, %v951_v47, %v966_v37  ;;  %v970_v19 = vsel %vm964_vm11, %v957_v39, 920167782  ;;  %v974_v15 = vsel %vm964_vm11, %v960_v13, 1326507024  ;;  %v1050_v30 = vshll.u32 %v4806_v46, %v1047_v51 }
 0x337   :  { %v971_v50 = vsel %vm963_vm10, %v954_v45, %v970_v19  ;;  %v975_v38 = vsel %vm963_vm10, %v957_v39, %v974_v15  ;;  %v1051_v8 = vshrl.u32 %v4807_v61, %v1048_v17  ;;  %v1053_v2 = vshll.u32 %v4807_v61, %v1047_v51 }
 0x338   :  { %v968_v6 = vsel %vm962_vm9, %v965_v54, %v967_v4  ;;  %v972_v10 = vsel %vm962_vm9, %v969_v53, %v971_v50  ;;  %v976_v12 = vsel %vm962_vm9, %v973_v48, %v975_v38  ;;  %v4808_v49 = vmov 2131351028  }
 0x339   :  { %v1054_v26 = vshrl.u32 %v4808_v49, %v1048_v17  ;;  %v3371_v47 = vmul.u32.u64.low %v3340_v41, %v976_v12  ;;  %v3372_v37 = vmul.u32.u64.high %v3340_v41, %v976_v12, %v3371_v47  ;;  %v1052_v15 = vor.u32 %v1051_v8, %v1050_v30 }
 0x33a   :  { %v3375_v13 = vmul.u32.u64.low %v3340_v41, %v972_v10  ;;  %v3376_v19 = vmul.u32.u64.high %v3340_v41, %v972_v10, %v3375_v13  ;;  %v1056_v29 = vshll.u32 %v4808_v49, %v1047_v51  ;;  %v4809_v32 = vmov 2102212464  }
 0x33b   :  { %v1055_v45 = vor.u32 %v1054_v26, %v1053_v2  ;;  %v1057_v54 = vshrl.u32 %v4809_v32, %v1048_v17  ;;  %v1049_v53 = vshrl.u32 %v4806_v46, %v1048_v17  ;;  %v1059_v36 = vshll.u32 %v4809_v32, %v1047_v51 }
 0x33c   :  { %v4810_v48 = vmov 920167782   ;;  %v4811_v39 = vmov 1326507024   ;;  %v984_v38 = vmul.u32 %v3340_v41, %v968_v6  ;;  %vm1065_vm12 = vcmp.lt.s32.totalorder %v3342_v42, 1 }
 0x33d   :  { %v1060_v4 = vshrl.u32 %v4810_v48, %v1048_v17  ;;  %v1063_v50 = vshrl.u32 %v4811_v39, %v1048_v17  ;;  %v1058_v12 = vor.u32 %v1057_v54, %v1056_v29  ;;  %v1062_v10 = vshll.u32 %v4810_v48, %v1047_v51 }
 0x33e   :  { %vm986_vm13 = vc.u32 %v3372_v37, %v3375_v13  ;;  %v987_v30 = vadd.s32 1, %v3376_v19  ;;  %vm1066_vm14 = vcmp.lt.s32.totalorder %v3342_v42, 2  ;;  %vm1067_vm15 = vcmp.lt.s32.totalorder %v3342_v42, 3 }
 0x33f   :  { %v1061_v8 = vor.u32 %v1060_v4, %v1059_v36  ;;  %v1064_v2 = vor.u32 %v1063_v50, %v1062_v10  ;;  %vm1068_vm0 = vcmp.lt.s32.totalorder %v3342_v42, 4  ;;  %v1073_v17 = vsel %vm1065_vm12, %v1052_v15, %v1055_v45 }
 0x340   :  { %v988_v41 = vsel %vm986_vm13, %v987_v30, %v3376_v19  ;;  %v1070_v6 = vsel %vm1068_vm0, %v1058_v12, 2102212464  ;;  %v1077_v51 = vsel %vm1065_vm12, %v1055_v45, %v1058_v12  ;;  %v1069_v29 = vsel %vm1065_vm12, %v1049_v53, %v1052_v15 }
 0x341   :  { %v1074_v26 = vsel %vm1068_vm0, %v1061_v8, 920167782  ;;  %v989_v47 = vadd.s32 %v988_v41, %v984_v38  ;;  %v1078_v9 = vsel %vm1068_vm0, %v1064_v2, 1326507024  ;;  %v1071_v33 = vsel %vm1067_vm15, %v1055_v45, %v1070_v6 }
 0x342   :  { %v1075_v54 = vsel %vm1067_vm15, %v1058_v12, %v1074_v26  ;;  %v1079_v4 = vsel %vm1067_vm15, %v1061_v8, %v1078_v9  ;;  %v1147_v50 = vadd.s32 1, %v3348_v52  ;;  %v4812_v45 = vand.u32 2147483647, %v3332_v63 }
 0x343   :  { %v1076_v36 = vsel %vm1066_vm14, %v1073_v17, %v1075_v54  ;;  %v990_v10 = vadd.s32 536870912, %v989_v47  ;;  %v1080_v31 = vsel %vm1066_vm14, %v1077_v51, %v1079_v4  ;;  %v1072_v52 = vsel %vm1066_vm14, %v1069_v29, %v1071_v33  ;;  %v3419_v51 = vpop.permute.xlu1 %806 }
 0x344   :  { %v3399_v19 = vmul.u32.u64.low %v3344_v14, %v1076_v36  ;;  %v3400_v30 = vmul.u32.u64.high %v3344_v14, %v1076_v36, %v3399_v19  ;;  %v3404_v15 = vmul.u32.u64.low %v3344_v14, %v1080_v31  ;;  %v3405_v53 = vmul.u32.u64.high %v3344_v14, %v1080_v31, %v3404_v15 }
 0x345   :  { %v1144_v38 = vand.u32 8388607, %v4812_v45  ;;  %vm1148_vm1 = vcmp.gt.s32.totalorder %v1147_v50, 0  ;;  %v991_v9 = vshrl.u32 %v990_v10, 30  ;;  %v3414_v41 = vadd.f32 %v3306_v0, %v3338_v40 }
 0x346   :  { %v1149_v12 = vsel %vm1148_vm1, %v1147_v50, 0  ;;  %v1091_v17 = vadd.s32 1, %v3400_v30  ;;  %v1088_v31 = vmul.u32 %v3344_v14, %v1072_v52  ;;  %vm1090_vm2 = vc.u32 %v3405_v53, %v3399_v19 }
 0x347   :  { %v1151_v8 = vand.u32 31, %v1149_v12  ;;  %v992_v2 = vshll.u32 %v991_v9, 30  ;;  %v1145_v6 = vor.u32 8388608, %v1144_v38  ;;  %v985_v54 = vadd.s32 %v3375_v13, %v3372_v37 }
 0x348   :  { %v1092_v33 = vsel %vm1090_vm2, %v1091_v17, %v3400_v30  ;;  %v1244_v10 = vand.u32 2139095040, %v3414_v41  ;;  %v3437_v15 = vshrl.u32 %v1149_v12, 5  ;;  %v1015_v45 = vsub.s32 4, %v991_v9 }
 0x349   :  { %v1152_v26 = vsub.s32 32, %v1151_v8  ;;  %v3421_v42 = vsub.s32 %v989_v47, %v992_v2  ;;  %v1093_v29 = vadd.s32 %v1092_v33, %v1088_v31  ;;  %v3433_v50 = vshll.u32 %v1145_v6, 8 }
 0x34a   :  { %v1154_v52 = vshll.u32 %v4806_v46, %v1151_v8  ;;  %v1157_v31 = vshll.u32 %v4807_v61, %v1151_v8  ;;  %v1160_v6 = vshll.u32 %v4808_v49, %v1151_v8  ;;  %v1163_v36 = vshll.u32 %v4809_v32, %v1151_v8 }
 0x34b   :  { %v995_v40 = vsub.s32 0, %v3421_v42  ;;  %v1094_v4 = vadd.s32 536870912, %v1093_v29  ;;  %v1155_v47 = vshrl.u32 %v4807_v61, %v1152_v26  ;;  %v1158_v37 = vshrl.u32 %v4808_v49, %v1152_v26 }
 0x34c   :  { %v1161_v13 = vshrl.u32 %v4809_v32, %v1152_v26  ;;  %v1164_v2 = vshrl.u32 %v4810_v48, %v1152_v26  ;;  %v1167_v33 = vshrl.u32 %v4811_v39, %v1152_v26  ;;  %v1245_v14 = vshrl.u32 %v1244_v10, 23 }
 0x34d   :  { %v2680_v30 = vmin.u32 %v995_v40, %v3421_v42  ;;  %v1095_v38 = vshrl.u32 %v1094_v4, 30  ;;  %v1156_v12 = vor.u32 %v1155_v47, %v1154_v52  ;;  %v1159_v11 = vor.u32 %v1158_v37, %v1157_v31 }
 0x34e   :  { %v1162_v28 = vor.u32 %v1161_v13, %v1160_v6  ;;  %v1166_v4 = vshll.u32 %v4810_v48, %v1151_v8  ;;  %v3450_v7 = vsel %vm931_vm3, %v1015_v45, %v991_v9  ;;  %v1153_v27 = vshrl.u32 %v4806_v46, %v1152_v26 }
 0x34f   :  { %v997_v17 = vclz %v2680_v30  ;;  %v1096_v40 = vshll.u32 %v1095_v38, 30  ;;  %v1165_v1 = vor.u32 %v1164_v2, %v1163_v36  ;;  %v1119_v47 = vsub.s32 4, %v1095_v38 }
 0x350   :  { %v1168_v52 = vor.u32 %v1167_v33, %v1166_v4  ;;  %vm1169_vm7 = vcmp.lt.s32.totalorder %v3437_v15, 1  ;;  %v4813_v10 = vand.u32 2147483647, %v3315_v43  ;;  %vm1171_vm9 = vcmp.lt.s32.totalorder %v3437_v15, 3 }
 0x351   :  { %v2681_v5 = vadd.s32 4294967294, %v997_v17  ;;  %v3453_v30 = vsub.s32 %v1093_v29, %v1096_v40  ;;  %vm1172_vm10 = vcmp.lt.s32.totalorder %v3437_v15, 4  ;;  %v4816_v36 = vand.u32 2147483647, %v3318_v44 }
 0x352   :  { %vm3459_vm8 = vcmp.le.f32.partialorder %v4813_v10, 0.7853982  ;;  %v1174_v45 = vsel %vm1172_vm10, %v1162_v28, 2102212464  ;;  %v1177_v2 = vsel %vm1169_vm7, %v1156_v12, %v1159_v11  ;;  %v1178_v31 = vsel %vm1172_vm10, %v1165_v1, 920167782 }
 0x353   :  { %vm2682_vm6 = vcmp.lt.s32.totalorder %v2681_v5, 0  ;;  %v1099_v37 = vsub.s32 0, %v3453_v30  ;;  %vm3468_vm11 = vcmp.le.f32.partialorder %v4816_v36, 0.7853982  ;;  %v1181_v6 = vsel %vm1169_vm7, %v1159_v11, %v1162_v28 }
 0x354   :  { %v1000_v9 = vsel %vm2682_vm6, 0, %v2681_v5  ;;  %v1179_v4 = vsel %vm1171_vm9, %v1162_v28, %v1178_v31  ;;  %v1182_v10 = vsel %vm1172_vm10, %v1168_v52, 1326507024  ;;  %vm1170_vm12 = vcmp.lt.s32.totalorder %v3437_v15, 2 }
 0x355   :  { %v1001_v26 = vsub.s32 32, %v1000_v9  ;;  %v1005_v29 = vsub.s32 4294967266, %v1000_v9  ;;  %v1002_v5 = vshll.u32 %v3421_v42, %v1000_v9  ;;  %v2684_v17 = vmin.u32 %v1099_v37, %v3453_v30 }
 0x356   :  { %v1173_v25 = vsel %vm1169_vm7, %v1153_v27, %v1156_v12  ;;  %v1175_v42 = vsel %vm1171_vm9, %v1159_v11, %v1174_v45  ;;  %v1180_v62 = vsel %vm1170_vm12, %v1177_v2, %v1179_v4  ;;  %v1120_v31 = vsel %vm1035_vm4, %v1119_v47, %v1095_v38 }
 0x357   :  { %v1003_v33 = vshrl.u32 %v985_v54, %v1001_v26  ;;  %v1006_v40 = vadd.s32 127, %v1005_v29  ;;  %v1101_v36 = vclz %v2684_v17  ;;  %v1183_v54 = vsel %vm1171_vm9, %v1165_v1, %v1182_v10 }
 0x358   :  { %v1184_v29 = vsel %vm1170_vm12, %v1181_v6, %v1183_v54  ;;  %v3488_v28 = vmul.u32.u64.low %v3433_v50, %v1180_v62  ;;  %v3489_v52 = vmul.u32.u64.high %v3433_v50, %v1180_v62, %v3488_v28  ;;  %v1089_v11 = vadd.s32 %v3399_v19, %v3405_v53 }
 0x359   :  { %v1004_v9 = vor.u32 %v1003_v33, %v1002_v5  ;;  %v1007_v37 = vshll.u32 %v1006_v40, 23  ;;  %v2685_v26 = vadd.s32 4294967294, %v1101_v36  ;;  %v1176_v15 = vsel %vm1170_vm12, %v1173_v25, %v1175_v42 }
 0x35a   :  { %v3494_v27 = vmul.u32.u64.low %v3433_v50, %v1184_v29  ;;  %v3495_v12 = vmul.u32.u64.high %v3433_v50, %v1184_v29, %v3494_v27  ;;  %v2691_v1 = vadd.s32 4294967169, %v1245_v14  ;;  %v1018_v62 = vsel %vm3459_vm8, 0, %v3450_v7 }
 0x35b   :  { %v1008_v17 = vor.u32 4788187, %v1007_v37  ;;  %vm2686_vm13 = vcmp.lt.s32.totalorder %v2685_v26, 0  ;;  %v1011_v2 = vcvt.s32.f32 %v1004_v9  ;;  %v1122_v38 = vsel %vm3468_vm11, 0, %v1120_v31 }
 0x35c   :  { %v1104_v5 = vsel %vm2686_vm13, 0, %v2685_v26  ;;  %v1195_v47 = vadd.s32 1, %v3489_v52  ;;  %v1192_v19 = vmul.u32 %v3433_v50, %v1176_v15  ;;  %vm1194_vm14 = vc.u32 %v3495_v12, %v3488_v28 }
 0x35d   :  { %v1009_v45 = vand.u32 2147483647, %v1008_v17  ;;  %v1105_v6 = vsub.s32 32, %v1104_v5  ;;  %v1109_v33 = vsub.s32 4294967266, %v1104_v5  ;;  %v1251_v25 = vadd.s32 1, %v2691_v1 }
 0x35e   :  { %v1106_v53 = vshll.u32 %v3453_v30, %v1104_v5  ;;  %v1196_v7 = vsel %vm1194_vm14, %v1195_v47, %v3489_v52  ;;  %v1022_v36 = vadd.s32 3, %v1018_v62  ;;  %v4819_v54 = vand.u32 2147483647, %v3414_v41 }
 0x35f   :  { %v1012_v40 = vmul.f32 %v1011_v2, %v1009_v45  ;;  %v1107_v14 = vshrl.u32 %v1089_v11, %v1105_v6  ;;  %v1110_v4 = vadd.s32 127, %v1109_v33  ;;  %v1197_v42 = vadd.s32 %v1196_v7, %v1192_v19 }
 0x360   :  { %vm1252_vm15 = vcmp.gt.s32.totalorder %v1251_v25, 0  ;;  %v1248_v26 = vand.u32 8388607, %v4819_v54  ;;  %v1126_v17 = vadd.s32 3, %v1122_v38  ;;  %v3515_v27 = vadd.f32 %v3218_v60, %v3209_v56 }
 0x361   :  { %v1013_v10 = vxor.u32 2147483648, %v1012_v40  ;;  %v1108_v9 = vor.u32 %v1107_v14, %v1106_v53  ;;  %v1111_v37 = vshll.u32 %v1110_v4, 23  ;;  %v1253_v29 = vsel %vm1252_vm15, %v1251_v25, 0 }
 0x362   :  { %v1198_v31 = vadd.s32 536870912, %v1197_v42  ;;  %v1255_v30 = vand.u32 31, %v1253_v29  ;;  %v4820_v15 = vsel %vm3294_vm5, %v3265_v16, %v3419_v51  ;;  %v3526_v45 = vand.u32 3, %v1022_v36 }
 0x363   :  { %v1014_v50 = vsel %vm931_vm3, %v1013_v10, %v1012_v40  ;;  %v1112_v11 = vor.u32 4788187, %v1111_v37  ;;  %v897_v1 = vmul.f32 %v3301_v35, %v4820_v15  ;;  %v3532_v56 = vadd.f32 %v3218_v60, %v3213_v59 }
 0x364   :  { %v1017_v52 = vsel %vm3459_vm8, %v3315_v43, %v1014_v50  ;;  %v3528_v2 = vshrl.u32 %v1198_v31, 30  ;;  %v1256_v62 = vsub.s32 32, %v1255_v30  ;;  %v1115_v5 = vcvt.s32.f32 %v1108_v9 }
 0x365   :  { %2934 = vcosq.f32 %v1017_v52  ;;  %v1113_v8 = vand.u32 2147483647, %v1112_v11  ;;  %v3534_v6 = vand.u32 3, %v1126_v17  ;;  %v1249_v16 = vor.u32 8388608, %v1248_v26 }
 0x366   :  { %2936 = vsinq.f32 %v1017_v52  ;;  %v1200_v33 = vshll.u32 %v3528_v2, 30  ;;  %v1259_v51 = vshrl.u32 %v4807_v61, %v1256_v62  ;;  %v1262_v47 = vshrl.u32 %v4808_v49, %v1256_v62 }
 0x367   :  { %v1116_v38 = vmul.f32 %v1115_v5, %v1113_v8  ;;  %v1265_v40 = vshrl.u32 %v4809_v32, %v1256_v62  ;;  %v3541_v19 = vadd.f32 %v3306_v0, %v897_v1  ;;  %vm1028_vm0 = vcmp.eq.s32.totalorder %v3526_v45, 2 }
 0x368   :  { %v3545_v59 = vadd.s32 %v3488_v28, %v3495_v12  ;;  %v3547_v25 = vsub.s32 %v1197_v42, %v1200_v33  ;;  %v1258_v53 = vshll.u32 %v4806_v46, %v1255_v30  ;;  %v1268_v14 = vshrl.u32 %v4810_v48, %v1256_v62 }
 0x369   :  { %vm1025_vm1 = vcmp.eq.s32.totalorder %v3526_v45, 0  ;;  %v1117_v4 = vxor.u32 2147483648, %v1116_v38  ;;  %v3552_v7 = vshrl.u32 %v1253_v29, 5  ;;  %v1261_v10 = vshll.u32 %v4807_v61, %v1255_v30 }
 0x36a   :  { %v1264_v36 = vshll.u32 %v4808_v49, %v1255_v30  ;;  %vm1024_vm2 = vcmp.lt.s32.totalorder %v3526_v45, 2  ;;  %v1203_v28 = vsub.s32 0, %v3547_v25  ;;  %v1260_v12 = vor.u32 %v1259_v51, %v1258_v53 }
 0x36b   :  { %v1267_v42 = vshll.u32 %v4809_v32, %v1255_v30  ;;  %v3559_v9 = vshll.u32 %v1249_v16, 8  ;;  %vm1021_vm3 = vweird.f32 %v3315_v43  ;;  %v1118_v37 = vsel %vm1035_vm4, %v1117_v4, %v1116_v38 }
 0x36c   :  { %v1263_v54 = vor.u32 %v1262_v47, %v1261_v10  ;;  %v1266_v26 = vor.u32 %v1265_v40, %v1264_v36  ;;  %v1271_v29 = vshrl.u32 %v4811_v39, %v1256_v62  ;;  %v1121_v50 = vsel %vm3468_vm11, %v3318_v44, %v1118_v37 }
 0x36d   :  { %v2688_v17 = vmin.u32 %v1203_v28, %v3547_v25  ;;  %v1269_v31 = vor.u32 %v1268_v14, %v1267_v42  ;;  %v1270_v52 = vshll.u32 %v4810_v48, %v1255_v30  ;;  %2938 = vcosq.f32 %v1121_v50 }
 0x36e   :  { %v1223_v11 = vsub.s32 4, %v3528_v2  ;;  %v1257_v15 = vshrl.u32 %v4806_v46, %v1256_v62  ;;  %vm1273_vm4 = vcmp.lt.s32.totalorder %v3552_v7, 1  ;;  %2940 = vsinq.f32 %v1121_v50 }
 0x36f   :  { %v2935_v1 = vpop.eup %2934  ;;  %vm1139_vm6 = vcmp.lt.s32.totalorder %v3332_v63, 0  ;;  %v1205_v8 = vclz %v2688_v17  ;;  %v1272_v5 = vor.u32 %v1271_v29, %v1270_v52  ;;  %vm1274_vm7 = vcmp.lt.s32.totalorder %v3552_v7, 2 }
 0x370   :  { %v2937_v13 = vpop.eup %2936  ;;  %v1029_v33 = vxor.u32 2147483648, %v2935_v1  ;;  %vm1275_vm8 = vcmp.lt.s32.totalorder %v3552_v7, 3  ;;  %vm1276_vm9 = vcmp.lt.s32.totalorder %v3552_v7, 4  ;;  %v1281_v30 = vsel %vm1273_vm4, %v1260_v12, %v1263_v54 }
 0x371   :  { %v1026_v62 = vxor.u32 2147483648, %v2937_v13  ;;  %v2689_v16 = vadd.s32 4294967294, %v1205_v8  ;;  %v1278_v51 = vsel %vm1276_vm9, %v1266_v26, 2102212464  ;;  %v1282_v38 = vsel %vm1276_vm9, %v1269_v31, 920167782 }
 0x372   :  { %v1030_v47 = vsel %vm1028_vm0, %v1029_v33, %v2937_v13  ;;  %v4821_v40 = vand.u32 2147483647, %v3332_v63  ;;  %v1277_v14 = vsel %vm1273_vm4, %v1257_v15, %v1260_v12  ;;  %v1283_v4 = vsel %vm1275_vm8, %v1266_v26, %v1282_v38 }
 0x373   :  { %v1285_v10 = vsel %vm1273_vm4, %v1263_v54, %v1266_v26  ;;  %v1027_v36 = vsel %vm1025_vm1, %v2935_v1, %v1026_v62  ;;  %vm1129_vm11 = vcmp.eq.s32.totalorder %v3534_v6, 0  ;;  %vm2690_vm12 = vcmp.lt.s32.totalorder %v2689_v16, 0 }
 0x374   :  { %vm3583_vm10 = vcmp.le.f32.partialorder %v4821_v40, 0.7853982  ;;  %v1284_v28 = vsel %vm1274_vm7, %v1281_v30, %v1283_v4  ;;  %v1286_v42 = vsel %vm1276_vm9, %v1272_v5, 1326507024  ;;  %v1031_v37 = vsel %vm1024_vm2, %v1027_v36, %v1030_v47  ;;  %v811_v5 = vpop.permute.xlu0 %810 }
 0x375   :  { %vm1128_vm13 = vcmp.lt.s32.totalorder %v3534_v6, 2  ;;  %v1208_v12 = vsel %vm2690_vm12, 0, %v2689_v16  ;;  %v1279_v29 = vsel %vm1275_vm8, %v1263_v54, %v1278_v51  ;;  %v1287_v26 = vsel %vm1275_vm8, %v1269_v31, %v1286_v42 }
 0x376   :  { %v1032_v50 = vsel %vm1021_vm3, nan, %v1031_v37  ;;  %vm1125_vm14 = vweird.f32 %v3318_v44  ;;  %v1209_v17 = vsub.s32 32, %v1208_v12  ;;  %v1210_v52 = vshll.u32 %v3547_v25, %v1208_v12 }
 0x377   :  { %v1213_v15 = vsub.s32 4294967266, %v1208_v12  ;;  %v2593_v45 = vadd.f32 %v1032_v50, %v3515_v27  ;;  %v1288_v1 = vsel %vm1274_vm7, %v1285_v10, %v1287_v26  ;;  %v2939_v30 = vpop.eup %2938  ;;  %vm1132_vm15 = vcmp.eq.s32.totalorder %v3534_v6, 2  ;;  %v818_v6 = vpop.permute.xlu1 %817 }
 0x378   :  { %v3613_v8 = vmul.u32.u64.low %v3559_v9, %v1284_v28  ;;  %v3614_v54 = vmul.u32.u64.high %v3559_v9, %v1284_v28, %v3613_v8  ;;  %v1211_v31 = vshrl.u32 %v3545_v59, %v1209_v17  ;;  %v1224_v27 = vsel %vm1139_vm6, %v1223_v11, %v3528_v2  ;;  %v2941_v62 = vpop.eup %2940 }
 0x379   :  { %v1214_v43 = vadd.s32 127, %v1213_v15  ;;  %v3618_v13 = vmul.u32.u64.low %v3559_v9, %v1288_v1  ;;  %v3619_v33 = vmul.u32.u64.high %v3559_v9, %v1288_v1, %v3618_v13  ;;  %2609 = vst [vmem:[%s4774_s4] sm:$0xff] %v2593_v45  ;;  %v1280_v25 = vsel %vm1274_vm7, %v1277_v14, %v1279_v29 }
 0x37a   :  { %v1348_v59 = vand.u32 2139095040, %v3541_v19  ;;  %v1133_v16 = vxor.u32 2147483648, %v2939_v30  ;;  %v1212_v51 = vor.u32 %v1211_v31, %v1210_v52  ;;  %v878_v47 = vsel %vm3294_vm5, %v3267_v18, %v811_v5 }
 0x37b   :  { %v1215_v38 = vshll.u32 %v1214_v43, 23  ;;  %v1130_v40 = vxor.u32 2147483648, %v2941_v62  ;;  %v1299_v4 = vadd.s32 1, %v3614_v54  ;;  %v1345_v10 = vand.u32 2147483647, %v3541_v19 }
 0x37c   :  { %v1349_v36 = vshrl.u32 %v1348_v59, 23  ;;  %v1134_v2 = vsel %vm1132_vm15, %v1133_v16, %v2941_v62  ;;  %v1226_v7 = vsel %vm3583_vm10, 0, %v1224_v27  ;;  %v1296_v14 = vmul.u32 %v3559_v9, %v1280_v25 }
 0x37d   :  { %v1216_v11 = vor.u32 4788187, %v1215_v38  ;;  %v1131_v28 = vsel %vm1129_vm11, %v2939_v30, %v1130_v40  ;;  %vm1298_vm0 = vc.u32 %v3619_v33, %v3613_v8  ;;  %v898_v18 = vmul.f32 %v3301_v35, %v878_v47 }
 0x37e   :  { %v2695_v42 = vadd.s32 4294967169, %v1349_v36  ;;  %v1135_v37 = vsel %vm1128_vm13, %v1131_v28, %v1134_v2  ;;  %v1219_v29 = vcvt.s32.f32 %v1212_v51  ;;  %v1300_v26 = vsel %vm1298_vm0, %v1299_v4, %v3614_v54 }
 0x37f   :  { %v1217_v12 = vand.u32 2147483647, %v1216_v11  ;;  %v1136_v50 = vsel %vm1125_vm14, nan, %v1135_v37  ;;  %v1301_v17 = vadd.s32 %v1300_v26, %v1296_v14  ;;  %v1230_v45 = vadd.s32 3, %v1226_v7 }
 0x380   :  { %v1355_v9 = vadd.s32 1, %v2695_v42  ;;  %v2594_v52 = vadd.f32 %v1136_v50, %v3532_v56  ;;  %v1352_v1 = vand.u32 8388607, %v1345_v10  ;;  %v3655_v44 = vadd.f32 %v3306_v0, %v898_v18 }
 0x381   :  { %v1220_v15 = vmul.f32 %v1219_v29, %v1217_v12  ;;  %v1302_v5 = vadd.s32 536870912, %v1301_v17  ;;  %v3659_v56 = vadd.f32 %v3207_v55, %v3218_v60  ;;  %v3663_v27 = vand.u32 3, %v1230_v45 }
 0x382   :  { %vm1356_vm1 = vcmp.gt.s32.totalorder %v1355_v9, 0  ;;  %2610 = vst [vmem:[%s4774_s4 + $0x8] sm:$0xff] %v2594_v52  ;;  %vm1243_vm2 = vcmp.lt.s32.totalorder %v3414_v41, 0  ;;  %v1353_v25 = vor.u32 8388608, %v1352_v1  ;;  %v879_v59 = vsel %vm3294_vm5, %v3269_v20, %v818_v6 }
 0x383   :  { %v1221_v54 = vxor.u32 2147483648, %v1220_v15  ;;  %v1357_v31 = vsel %vm1356_vm1, %v1355_v9, 0  ;;  %v1303_v43 = vshrl.u32 %v1302_v5, 30  ;;  %v3673_v55 = vadd.s32 %v3613_v8, %v3619_v33 }
 0x384   :  { %v1359_v13 = vand.u32 31, %v1357_v31  ;;  %v1358_v51 = vshrl.u32 %v1357_v31, 5  ;;  %v1449_v38 = vand.u32 2147483647, %v3655_v44  ;;  %v1452_v47 = vand.u32 2139095040, %v3655_v44 }
 0x385   :  { %v1222_v30 = vsel %vm1139_vm6, %v1221_v54, %v1220_v15  ;;  %v1304_v60 = vshll.u32 %v1303_v43, 30  ;;  %v1327_v4 = vsub.s32 4, %v1303_v43  ;;  %vm1236_vm3 = vcmp.eq.s32.totalorder %v3663_v27, 2 }
 0x386   :  { %v1225_v62 = vsel %vm3583_vm10, %v3332_v63, %v1222_v30  ;;  %v1360_v16 = vsub.s32 32, %v1359_v13  ;;  %v1362_v20 = vshll.u32 %v4806_v46, %v1359_v13  ;;  %v1368_v8 = vshll.u32 %v4808_v49, %v1359_v13 }
 0x387   :  { %2942 = vcosq.f32 %v1225_v62  ;;  %v3677_v40 = vsub.s32 %v1301_v17, %v1304_v60  ;;  %v1365_v11 = vshll.u32 %v4807_v61, %v1359_v13  ;;  %v1371_v7 = vshll.u32 %v4809_v32, %v1359_v13 }
 0x388   :  { %2944 = vsinq.f32 %v1225_v62  ;;  %v1363_v53 = vshrl.u32 %v4807_v61, %v1360_v16  ;;  %v1366_v36 = vshrl.u32 %v4808_v49, %v1360_v16  ;;  %v1369_v33 = vshrl.u32 %v4809_v32, %v1360_v16 }
 0x389   :  { %v1307_v2 = vsub.s32 0, %v3677_v40  ;;  %v1372_v14 = vshrl.u32 %v4810_v48, %v1360_v16  ;;  %v3689_v18 = vshll.u32 %v1353_v25, 8  ;;  %v899_v37 = vmul.f32 %v3301_v35, %v879_v59 }
 0x38a   :  { %v1364_v28 = vor.u32 %v1363_v53, %v1362_v20  ;;  %v1370_v42 = vor.u32 %v1369_v33, %v1368_v8  ;;  %vm1233_vm4 = vcmp.eq.s32.totalorder %v3663_v27, 0  ;;  %v1367_v29 = vor.u32 %v1366_v36, %v1365_v11 }
 0x38b   :  { %v2692_v12 = vmin.u32 %v1307_v2, %v3677_v40  ;;  %v1373_v26 = vor.u32 %v1372_v14, %v1371_v7  ;;  %v1375_v50 = vshrl.u32 %v4811_v39, %v1360_v16  ;;  %vm1232_vm6 = vcmp.lt.s32.totalorder %v3663_v27, 2 }
 0x38c   :  { %v1361_v17 = vshrl.u32 %v4806_v46, %v1360_v16  ;;  %v1374_v9 = vshll.u32 %v4810_v48, %v1359_v13  ;;  %v1453_v52 = vshrl.u32 %v1452_v47, 23  ;;  %v3700_v15 = vand.u32 8388607, %v1449_v38 }
 0x38d   :  { %vm1229_vm7 = vweird.f32 %v3332_v63  ;;  %v1309_v35 = vclz %v2692_v12  ;;  %v3705_v45 = vsel %vm1243_vm2, %v1327_v4, %v1303_v43  ;;  %vm1377_vm8 = vcmp.lt.s32.totalorder %v1358_v51, 1 }
 0x38e   :  { %vm1380_vm9 = vcmp.lt.s32.totalorder %v1358_v51, 4  ;;  %v1376_v1 = vor.u32 %v1375_v50, %v1374_v9  ;;  %vm1379_vm10 = vcmp.lt.s32.totalorder %v1358_v51, 3  ;;  %v1381_v5 = vsel %vm1377_vm8, %v1361_v17, %v1364_v28 }
 0x38f   :  { %v1382_v6 = vsel %vm1380_vm9, %v1370_v42, 2102212464  ;;  %v2693_v54 = vadd.s32 4294967294, %v1309_v35  ;;  %v1386_v13 = vsel %vm1380_vm9, %v1373_v26, 920167782  ;;  %v1389_v30 = vsel %vm1377_vm8, %v1367_v29, %v1370_v42 }
 0x390   :  { %v1383_v31 = vsel %vm1379_vm10, %v1367_v29, %v1382_v6  ;;  %v1385_v59 = vsel %vm1377_vm8, %v1364_v28, %v1367_v29  ;;  %v1387_v62 = vsel %vm1379_vm10, %v1370_v42, %v1386_v13  ;;  %v1390_v60 = vsel %vm1380_vm9, %v1376_v1, 1326507024 }
 0x391   :  { %v2943_v25 = vpop.eup %2942  ;;  %v2699_v16 = vadd.s32 4294967169, %v1453_v52  ;;  %vm2694_vm11 = vcmp.lt.s32.totalorder %v2693_v54, 0  ;;  %vm1378_vm12 = vcmp.lt.s32.totalorder %v1358_v51, 2  ;;  %v1391_v4 = vsel %vm1379_vm10, %v1373_v26, %v1390_v60 }
 0x392   :  { %v2945_v47 = vpop.eup %2944  ;;  %v1237_v43 = vxor.u32 2147483648, %v2943_v25  ;;  %v1312_v53 = vsel %vm2694_vm11, 0, %v2693_v54  ;;  %v1384_v36 = vsel %vm1378_vm12, %v1381_v5, %v1383_v31  ;;  %v1392_v8 = vsel %vm1378_vm12, %v1389_v30, %v1391_v4 }
 0x393   :  { %v1234_v20 = vxor.u32 2147483648, %v2945_v47  ;;  %v1313_v2 = vsub.s32 32, %v1312_v53  ;;  %v1317_v11 = vsub.s32 4294967266, %v1312_v53  ;;  %v1388_v7 = vsel %vm1378_vm12, %v1385_v59, %v1387_v62 }
 0x394   :  { %v1238_v33 = vsel %vm1236_vm3, %v1237_v43, %v2945_v47  ;;  %v3715_v28 = vmul.u32.u64.low %v3689_v18, %v1392_v8  ;;  %v3716_v42 = vmul.u32.u64.high %v3689_v18, %v1392_v8, %v3715_v28  ;;  %v1459_v12 = vadd.s32 1, %v2699_v16 }
 0x395   :  { %v1235_v14 = vsel %vm1233_vm4, %v2943_v25, %v1234_v20  ;;  %v1314_v29 = vshll.u32 %v3677_v40, %v1312_v53  ;;  %v1315_v26 = vshrl.u32 %v3673_v55, %v1313_v2  ;;  %v1318_v50 = vadd.s32 127, %v1317_v11 }
 0x396   :  { %v1239_v51 = vsel %vm1232_vm6, %v1235_v14, %v1238_v33  ;;  %v3725_v9 = vmul.u32.u64.low %v3689_v18, %v1388_v7  ;;  %v3726_v52 = vmul.u32.u64.high %v3689_v18, %v1388_v7, %v3725_v9  ;;  %vm1460_vm13 = vcmp.gt.s32.totalorder %v1459_v12, 0 }
 0x397   :  { %v1240_v17 = vsel %vm1229_vm7, nan, %v1239_v51  ;;  %v1316_v1 = vor.u32 %v1315_v26, %v1314_v29  ;;  %v1319_v5 = vshll.u32 %v1318_v50, 23  ;;  %v1461_v27 = vsel %vm1460_vm13, %v1459_v12, 0 }
 0x398   :  { %v2595_v35 = vadd.f32 %v1240_v17, %v3659_v56  ;;  %v4824_v6 = vand.u32 2147483647, %v3414_v41  ;;  %v1457_v63 = vor.u32 8388608, %v3700_v15  ;;  %v1463_v55 = vand.u32 31, %v1461_v27 }
 0x399   :  { %v3738_v54 = vadd.f32 %v3306_v0, %v899_v37  ;;  %v1320_v56 = vor.u32 4788187, %v1319_v5  ;;  %v1400_v13 = vmul.u32 %v3689_v18, %v1384_v36  ;;  %vm1402_vm15 = vc.u32 %v3716_v42, %v3725_v9 }
 0x39a   :  { %vm3732_vm14 = vcmp.le.f32.partialorder %v4824_v6, 0.7853982  ;;  %2611 = vst [vmem:[%s4774_s4 + $0x10] sm:$0xff] %v2595_v35  ;;  %v1323_v30 = vcvt.s32.f32 %v1316_v1  ;;  %v1403_v15 = vadd.s32 1, %v3726_v52  ;;  %v1462_v25 = vshrl.u32 %v1461_v27, 5 }
 0x39b   :  { %v1330_v31 = vsel %vm3732_vm14, 0, %v3705_v45  ;;  %v1464_v0 = vsub.s32 32, %v1463_v55  ;;  %v1321_v37 = vand.u32 2147483647, %v1320_v56  ;;  %v1466_v59 = vshll.u32 %v4806_v46, %v1463_v55 }
 0x39c   :  { %v1469_v62 = vshll.u32 %v4807_v61, %v1463_v55  ;;  %v1472_v60 = vshll.u32 %v4808_v49, %v1463_v55  ;;  %v1404_v16 = vsel %vm1402_vm15, %v1403_v15, %v3726_v52  ;;  %v1475_v47 = vshll.u32 %v4809_v32, %v1463_v55 }
 0x39d   :  { %v1467_v45 = vshrl.u32 %v4807_v61, %v1464_v0  ;;  %v1470_v18 = vshrl.u32 %v4808_v49, %v1464_v0  ;;  %v1324_v43 = vmul.f32 %v1323_v30, %v1321_v37  ;;  %v1405_v4 = vadd.s32 %v1404_v16, %v1400_v13 }
 0x39e   :  { %v1473_v20 = vshrl.u32 %v4809_v32, %v1464_v0  ;;  %v1476_v53 = vshrl.u32 %v4810_v48, %v1464_v0  ;;  %v1478_v33 = vshll.u32 %v4810_v48, %v1463_v55  ;;  %v1479_v2 = vshrl.u32 %v4811_v39, %v1464_v0 }
 0x39f   :  { %v1468_v36 = vor.u32 %v1467_v45, %v1466_v59  ;;  %v1471_v8 = vor.u32 %v1470_v18, %v1469_v62  ;;  %v1325_v11 = vxor.u32 2147483648, %v1324_v43  ;;  %v1406_v7 = vadd.s32 536870912, %v1405_v4 }
 0x3a0   :  { %v1474_v14 = vor.u32 %v1473_v20, %v1472_v60  ;;  %v1477_v28 = vor.u32 %v1476_v53, %v1475_v47  ;;  %v1334_v12 = vadd.s32 3, %v1330_v31  ;;  %v1465_v51 = vshrl.u32 %v4806_v46, %v1464_v0  ;;  %v822_v47 = vpop.permute.xlu0 %821 }
 0x3a1   :  { %v1480_v29 = vor.u32 %v1479_v2, %v1478_v33  ;;  %v1497_v26 = vshll.u32 %v1457_v63, 8  ;;  %v1326_v50 = vsel %vm1243_vm2, %v1325_v11, %v1324_v43  ;;  %v1407_v17 = vshrl.u32 %v1406_v7, 30  ;;  %v2998_v43 = vld [vmem:[%s4772_s3 + $0x1] ss:$0 sm:$0xff] }
 0x3a2   :  { %vm1481_vm0 = vcmp.lt.s32.totalorder %v1462_v25, 1  ;;  %vm1484_vm1 = vcmp.lt.s32.totalorder %v1462_v25, 4  ;;  %v1329_v52 = vsel %vm3732_vm14, %v3414_v41, %v1326_v50  ;;  %vm1482_vm3 = vcmp.lt.s32.totalorder %v1462_v25, 2 }
 0x3a3   :  { %v1489_v35 = vsel %vm1481_vm0, %v1468_v36, %v1471_v8  ;;  %v1490_v1 = vsel %vm1484_vm1, %v1477_v28, 920167782  ;;  %2946 = vcosq.f32 %v1329_v52  ;;  %v1408_v5 = vshll.u32 %v1407_v17, 30 }
 0x3a4   :  { %vm1483_vm4 = vcmp.lt.s32.totalorder %v1462_v25, 3  ;;  %v1486_v27 = vsel %vm1484_vm1, %v1474_v14, 2102212464  ;;  %2948 = vsinq.f32 %v1329_v52  ;;  %v1493_v63 = vsel %vm1481_vm0, %v1471_v8, %v1474_v14 }
 0x3a5   :  { %v1491_v6 = vsel %vm1483_vm4, %v1474_v14, %v1490_v1  ;;  %v1494_v55 = vsel %vm1484_vm1, %v1480_v29, 1326507024  ;;  %v3767_v56 = vsub.s32 %v1405_v4, %v1408_v5  ;;  %v1485_v31 = vsel %vm1481_vm0, %v1465_v51, %v1468_v36 }
 0x3a6   :  { %v1492_v13 = vsel %vm1482_vm3, %v1489_v35, %v1491_v6  ;;  %v1495_v30 = vsel %vm1483_vm4, %v1477_v28, %v1494_v55  ;;  %v1487_v15 = vsel %vm1483_vm4, %v1471_v8, %v1486_v27  ;;  %v1335_v59 = vand.u32 3, %v1334_v12 }
 0x3a7   :  { %v1496_v40 = vsel %vm1482_vm3, %v1493_v63, %v1495_v30  ;;  %v3771_v0 = vmul.u32.u64.low %v1497_v26, %v1492_v13  ;;  %v3772_v37 = vmul.u32.u64.high %v1497_v26, %v1492_v13, %v3771_v0  ;;  %v1411_v62 = vsub.s32 0, %v3767_v56 }
 0x3a8   :  { %v3776_v60 = vmul.u32.u64.low %v1497_v26, %v1496_v40  ;;  %v3777_v16 = vmul.u32.u64.high %v1497_v26, %v1496_v40, %v3776_v60  ;;  %v1431_v45 = vsub.s32 4, %v1407_v17  ;;  %v1556_v18 = vand.u32 2139095040, %v3738_v54 }
 0x3a9   :  { %v468_v4 = vadd.f32 %v2998_v43, %v3211_v58  ;;  %v2696_v20 = vmin.u32 %v1411_v62, %v3767_v56  ;;  %v1488_v53 = vsel %vm1482_vm3, %v1485_v31, %v1487_v15  ;;  %vm1333_vm2 = vweird.f32 %v3414_v41  ;;  %v3814_v31 = vld [vmem:[%s4772_s3 + $0x3] ss:$0 sm:$0xff] }
 0x3aa   :  { %vm1347_vm6 = vcmp.lt.s32.totalorder %v3541_v19, 0  ;;  %v1507_v36 = vadd.s32 1, %v3772_v37  ;;  %v1553_v8 = vand.u32 2147483647, %v3738_v54  ;;  %v1557_v33 = vshrl.u32 %v1556_v18, 23 }
 0x3ab   :  { %vm1336_vm7 = vcmp.lt.s32.totalorder %v1335_v59, 2  ;;  %vm3792_vm8 = vcmp.le.f32.partialorder %v1345_v10, 0.7853982  ;;  %v1413_v58 = vclz %v2696_v20  ;;  %v880_v25 = vsel %vm3294_vm5, %v3271_v21, %v822_v47 }
 0x3ac   :  { %v1432_v11 = vsel %vm1347_vm6, %v1431_v45, %v1407_v17  ;;  %v1504_v7 = vmul.u32 %v1497_v26, %v1488_v53  ;;  %vm1506_vm9 = vc.u32 %v3777_v16, %v3771_v0  ;;  %v2703_v14 = vadd.s32 4294967169, %v1557_v33  ;;  %v3823_v45 = vpop.permute.xlu1 %828 }
 0x3ad   :  { %v2947_v28 = vpop.eup %2946  ;;  %vm1337_vm10 = vcmp.eq.s32.totalorder %v1335_v59, 0  ;;  %vm1340_vm11 = vcmp.eq.s32.totalorder %v1335_v59, 2  ;;  %v2697_v10 = vadd.s32 4294967294, %v1413_v58  ;;  %v1508_v12 = vsel %vm1506_vm9, %v1507_v36, %v3772_v37 }
 0x3ae   :  { %v2949_v51 = vpop.eup %2948  ;;  %v1341_v29 = vxor.u32 2147483648, %v2947_v28  ;;  %v1509_v50 = vadd.s32 %v1508_v12, %v1504_v7  ;;  %v1560_v21 = vand.u32 8388607, %v1553_v8  ;;  %v1563_v52 = vadd.s32 1, %v2703_v14 }
 0x3af   :  { %v1338_v35 = vxor.u32 2147483648, %v2949_v51  ;;  %v1401_v26 = vadd.s32 %v3725_v9, %v3716_v42  ;;  %vm2698_vm12 = vcmp.lt.s32.totalorder %v2697_v10, 0  ;;  %v1434_v17 = vsel %vm3792_vm8, 0, %v1432_v11 }
 0x3b0   :  { %v1342_v1 = vsel %vm1340_vm11, %v1341_v29, %v2949_v51  ;;  %v1416_v5 = vsel %vm2698_vm12, 0, %v2697_v10  ;;  %v1510_v27 = vadd.s32 536870912, %v1509_v50  ;;  %vm1564_vm13 = vcmp.gt.s32.totalorder %v1563_v52, 0 }
 0x3b1   :  { %v1339_v6 = vsel %vm1337_vm10, %v2947_v28, %v1338_v35  ;;  %v1417_v63 = vsub.s32 32, %v1416_v5  ;;  %v1421_v55 = vsub.s32 4294967266, %v1416_v5  ;;  %v900_v13 = vmul.f32 %v3814_v31, %v880_v25  ;;  %v3844_v25 = vld [vmem:[%s4772_s3 + $0x4] ss:$0 sm:$0xff] }
 0x3b2   :  { %v1343_v42 = vsel %vm1336_vm7, %v1339_v6, %v1342_v1  ;;  %v3818_v9 = vshrl.u32 %v1510_v27, 30  ;;  %v1561_v30 = vor.u32 8388608, %v1560_v21  ;;  %v1565_v15 = vsel %vm1564_vm13, %v1563_v52, 0 }
 0x3b3   :  { %v1344_v40 = vsel %vm1333_vm2, nan, %v1343_v42  ;;  %v1418_v37 = vshll.u32 %v3767_v56, %v1416_v5  ;;  %v1419_v62 = vshrl.u32 %v1401_v26, %v1417_v63  ;;  %v1422_v60 = vadd.s32 127, %v1421_v55 }
 0x3b4   :  { %v2596_v18 = vadd.f32 %v1344_v40, %v468_v4  ;;  %v1512_v47 = vshll.u32 %v3818_v9, 30  ;;  %v1567_v43 = vand.u32 31, %v1565_v15  ;;  %v3829_v53 = vadd.s32 3, %v1434_v17 }
 0x3b5   :  { %v1420_v20 = vor.u32 %v1419_v62, %v1418_v37  ;;  %v1423_v59 = vshll.u32 %v1422_v60, 23  ;;  %v881_v56 = vsel %vm3294_vm5, %v3273_v22, %v3823_v45  ;;  %v1505_v33 = vadd.s32 %v3771_v0, %v3777_v16 }
 0x3b6   :  { %2612 = vst [vmem:[%s4774_s4 + $0x18] sm:$0xff] %v2596_v18  ;;  %v3831_v41 = vsub.s32 %v1509_v50, %v1512_v47  ;;  %v1568_v36 = vsub.s32 32, %v1567_v43  ;;  %v3839_v58 = vshll.u32 %v1561_v30, 8  ;;  %v3847_v11 = vadd.f32 %v3844_v25, %v900_v13 }
 0x3b7   :  { %v1424_v4 = vor.u32 4788187, %v1423_v59  ;;  %v1427_v7 = vcvt.s32.f32 %v1420_v20  ;;  %v1566_v28 = vshrl.u32 %v1565_v15, 5  ;;  %v1576_v0 = vshll.u32 %v4808_v49, %v1567_v43 }
 0x3b8   :  { %v1515_v14 = vsub.s32 0, %v3831_v41  ;;  %v1571_v10 = vshrl.u32 %v4807_v61, %v1568_v36  ;;  %v1574_v51 = vshrl.u32 %v4808_v49, %v1568_v36  ;;  %v1577_v16 = vshrl.u32 %v4809_v32, %v1568_v36 }
 0x3b9   :  { %v1425_v12 = vand.u32 2147483647, %v1424_v4  ;;  %v1535_v50 = vsub.s32 4, %v3818_v9  ;;  %v1570_v21 = vshll.u32 %v4806_v46, %v1567_v43  ;;  %v1573_v52 = vshll.u32 %v4807_v61, %v1567_v43 }
 0x3ba   :  { %v2700_v29 = vmin.u32 %v1515_v14, %v3831_v41  ;;  %v1578_v26 = vor.u32 %v1577_v16, %v1576_v0  ;;  %v1579_v17 = vshll.u32 %v4809_v32, %v1567_v43  ;;  %v1580_v1 = vshrl.u32 %v4810_v48, %v1568_v36 }
 0x3bb   :  { %v1428_v35 = vmul.f32 %v1427_v7, %v1425_v12  ;;  %vm1451_vm14 = vcmp.lt.s32.totalorder %v3655_v44, 0  ;;  %v1572_v27 = vor.u32 %v1571_v10, %v1570_v21  ;;  %v1575_v6 = vor.u32 %v1574_v51, %v1573_v52 }
 0x3bc   :  { %v1517_v5 = vclz %v2700_v29  ;;  %vm1585_vm15 = vcmp.lt.s32.totalorder %v1566_v28, 1  ;;  %v1581_v55 = vor.u32 %v1580_v1, %v1579_v17  ;;  %v1582_v13 = vshll.u32 %v4810_v48, %v1567_v43 }
 0x3bd   :  { %v1429_v63 = vxor.u32 2147483648, %v1428_v35  ;;  %v1583_v42 = vshrl.u32 %v4811_v39, %v1568_v36  ;;  %v1569_v15 = vshrl.u32 %v4806_v46, %v1568_v36  ;;  %vm1586_vm0 = vcmp.lt.s32.totalorder %v1566_v28, 2 }
 0x3be   :  { %v2701_v30 = vadd.s32 4294967294, %v1517_v5  ;;  %vm1588_vm1 = vcmp.lt.s32.totalorder %v1566_v28, 4  ;;  %vm1587_vm3 = vcmp.lt.s32.totalorder %v1566_v28, 3  ;;  %v1593_v18 = vsel %vm1585_vm15, %v1572_v27, %v1575_v6 }
 0x3bf   :  { %v1430_v40 = vsel %vm1347_vm6, %v1429_v63, %v1428_v35  ;;  %v1584_v37 = vor.u32 %v1583_v42, %v1582_v13  ;;  %v1590_v62 = vsel %vm1588_vm1, %v1578_v26, 2102212464  ;;  %v1594_v47 = vsel %vm1588_vm1, %v1581_v55, 920167782 }
 0x3c0   :  { %v1433_v60 = vsel %vm3792_vm8, %v3541_v19, %v1430_v40  ;;  %vm2702_vm4 = vcmp.lt.s32.totalorder %v2701_v30, 0  ;;  %v1589_v20 = vsel %vm1585_vm15, %v1569_v15, %v1572_v27  ;;  %v1595_v59 = vsel %vm1587_vm3, %v1578_v26, %v1594_v47 }
 0x3c1   :  { %2950 = vcosq.f32 %v1433_v60  ;;  %v1520_v43 = vsel %vm2702_vm4, 0, %v2701_v30  ;;  %v1591_v7 = vsel %vm1587_vm3, %v1575_v6, %v1590_v62  ;;  %v1596_v2 = vsel %vm1586_vm0, %v1593_v18, %v1595_v59 }
 0x3c2   :  { %2952 = vsinq.f32 %v1433_v60  ;;  %v1521_v36 = vsub.s32 32, %v1520_v43  ;;  %v1525_v4 = vsub.s32 4294967266, %v1520_v43  ;;  %v1522_v14 = vshll.u32 %v3831_v41, %v1520_v43 }
 0x3c3   :  { %v1597_v10 = vsel %vm1585_vm15, %v1575_v6, %v1578_v26  ;;  %v1598_v12 = vsel %vm1588_vm1, %v1584_v37, 1326507024  ;;  %v1660_v29 = vand.u32 2139095040, %v3847_v11  ;;  %v1536_v21 = vsel %vm1451_vm14, %v1535_v50, %v3818_v9 }
 0x3c4   :  { %v1523_v51 = vshrl.u32 %v1505_v33, %v1521_v36  ;;  %v1526_v0 = vadd.s32 127, %v1525_v4  ;;  %v1599_v16 = vsel %vm1587_vm3, %v1581_v55, %v1598_v12  ;;  %v1439_v5 = vand.u32 3, %v3829_v53  ;;  %v3920_v36 = vpop.permute.xlu0 %832 }
 0x3c5   :  { %v1600_v52 = vsel %vm1586_vm0, %v1597_v10, %v1599_v16  ;;  %v3886_v41 = vmul.u32.u64.low %v3839_v58, %v1596_v2  ;;  %v3887_v35 = vmul.u32.u64.high %v3839_v58, %v1596_v2, %v3886_v41  ;;  %v1592_v27 = vsel %vm1586_vm0, %v1589_v20, %v1591_v7 }
 0x3c6   :  { %v1524_v26 = vor.u32 %v1523_v51, %v1522_v14  ;;  %v1527_v17 = vshll.u32 %v1526_v0, 23  ;;  %v3891_v33 = vmul.u32.u64.low %v3839_v58, %v1600_v52  ;;  %v3892_v1 = vmul.u32.u64.high %v3839_v58, %v1600_v52, %v3891_v33 }
 0x3c7   :  { %v1661_v6 = vshrl.u32 %v1660_v29, 23  ;;  %vm3898_vm2 = vcmp.le.f32.partialorder %v1449_v38, 0.7853982  ;;  %v901_v63 = vmul.f32 %v3814_v31, %v881_v56  ;;  %vm1437_vm6 = vweird.f32 %v3541_v19 }
 0x3c8   :  { %v1528_v50 = vor.u32 4788187, %v1527_v17  ;;  %v1538_v53 = vsel %vm3898_vm2, 0, %v1536_v21  ;;  %v1611_v28 = vadd.s32 1, %v3887_v35  ;;  %v1531_v13 = vcvt.s32.f32 %v1524_v26 }
 0x3c9   :  { %v2707_v55 = vadd.s32 4294967169, %v1661_v6  ;;  %v1608_v42 = vmul.u32 %v3839_v58, %v1592_v27  ;;  %vm1610_vm7 = vc.u32 %v3892_v1, %v3886_v41  ;;  %vm1441_vm8 = vcmp.eq.s32.totalorder %v1439_v5, 0 }
 0x3ca   :  { %v1529_v38 = vand.u32 2147483647, %v1528_v50  ;;  %v1612_v22 = vsel %vm1610_vm7, %v1611_v28, %v3887_v35  ;;  %v1657_v45 = vand.u32 2147483647, %v3847_v11  ;;  %v3918_v60 = vadd.f32 %v3844_v25, %v901_v63 }
 0x3cb   :  { %v2951_v30 = vpop.eup %2950  ;;  %v1667_v56 = vadd.s32 1, %v2707_v55  ;;  %v1613_v62 = vadd.s32 %v1612_v22, %v1608_v42  ;;  %vm1444_vm9 = vcmp.eq.s32.totalorder %v1439_v5, 2  ;;  %v1542_v58 = vadd.s32 3, %v1538_v53 }
 0x3cc   :  { %v2953_v15 = vpop.eup %2952  ;;  %v1445_v40 = vxor.u32 2147483648, %v2951_v30  ;;  %v1532_v37 = vmul.f32 %v1531_v13, %v1529_v38  ;;  %vm1440_vm11 = vcmp.lt.s32.totalorder %v1439_v5, 2  ;;  %v1664_v7 = vand.u32 8388607, %v1657_v45 }
 0x3cd   :  { %v1442_v18 = vxor.u32 2147483648, %v2953_v15  ;;  %vm1668_vm10 = vcmp.gt.s32.totalorder %v1667_v56, 0  ;;  %v1614_v20 = vadd.s32 536870912, %v1613_v62  ;;  %v1764_v51 = vand.u32 2139095040, %v3918_v60 }
 0x3ce   :  { %v1446_v47 = vsel %vm1444_vm9, %v1445_v40, %v2953_v15  ;;  %v1533_v43 = vxor.u32 2147483648, %v1532_v37  ;;  %v1669_v59 = vsel %vm1668_vm10, %v1667_v56, 0  ;;  %v882_v21 = vsel %vm3294_vm5, %v3275_v23, %v3920_v36 }
 0x3cf   :  { %v1443_v4 = vsel %vm1441_vm8, %v2951_v30, %v1442_v18  ;;  %v1671_v14 = vand.u32 31, %v1669_v59  ;;  %v3927_v12 = vshrl.u32 %v1614_v20, 30  ;;  %v3940_v35 = vand.u32 3, %v1542_v58 }
 0x3d0   :  { %v1447_v2 = vsel %vm1440_vm11, %v1443_v4, %v1446_v47  ;;  %v1534_v10 = vsel %vm1451_vm14, %v1533_v43, %v1532_v37  ;;  %v1665_v19 = vor.u32 8388608, %v1664_v7  ;;  %v1761_v33 = vand.u32 2147483647, %v3918_v60 }
 0x3d1   :  { %v1448_v0 = vsel %vm1437_vm6, nan, %v1447_v2  ;;  %v1537_v16 = vsel %vm3898_vm2, %v3655_v44, %v1534_v10  ;;  %v1672_v29 = vsub.s32 32, %v1671_v14  ;;  %v1616_v26 = vshll.u32 %v3927_v12, 30 }
 0x3d2   :  { %v2597_v52 = vadd.f32 %v1448_v0, %v3224_v57  ;;  %2954 = vcosq.f32 %v1537_v16  ;;  %v1674_v27 = vshll.u32 %v4806_v46, %v1671_v14  ;;  %v1765_v6 = vshrl.u32 %v1764_v51, 23 }
 0x3d3   :  { %2956 = vsinq.f32 %v1537_v16  ;;  %v1675_v17 = vshrl.u32 %v4807_v61, %v1672_v29  ;;  %v3948_v5 = vsub.s32 %v1613_v62, %v1616_v26  ;;  %v1678_v57 = vshrl.u32 %v4808_v49, %v1672_v29 }
 0x3d4   :  { %2613 = vst [vmem:[%s4774_s4 + $0x20] sm:$0xff] %v2597_v52  ;;  %v3952_v9 = vshrl.u32 %v1669_v59, 5  ;;  %v1677_v50 = vshll.u32 %v4807_v61, %v1671_v14  ;;  %v1680_v63 = vshll.u32 %v4808_v49, %v1671_v14  ;;  %v1681_v53 = vshrl.u32 %v4809_v32, %v1672_v29 }
 0x3d5   :  { %vm1548_vm12 = vcmp.eq.s32.totalorder %v3940_v35, 2  ;;  %v1619_v28 = vsub.s32 0, %v3948_v5  ;;  %v1676_v55 = vor.u32 %v1675_v17, %v1674_v27  ;;  %v1683_v38 = vshll.u32 %v4809_v32, %v1671_v14 }
 0x3d6   :  { %v1684_v13 = vshrl.u32 %v4810_v48, %v1672_v29  ;;  %vm1545_vm13 = vcmp.eq.s32.totalorder %v3940_v35, 0  ;;  %v1679_v42 = vor.u32 %v1678_v57, %v1677_v50  ;;  %v1682_v30 = vor.u32 %v1681_v53, %v1680_v63 }
 0x3d7   :  { %v1686_v22 = vshll.u32 %v4810_v48, %v1671_v14  ;;  %v1687_v56 = vshrl.u32 %v4811_v39, %v1672_v29  ;;  %vm1544_vm14 = vcmp.lt.s32.totalorder %v3940_v35, 2  ;;  %v1609_v15 = vadd.s32 %v3886_v41, %v3892_v1 }
 0x3d8   :  { %v2704_v40 = vmin.u32 %v1619_v28, %v3948_v5  ;;  %v1685_v37 = vor.u32 %v1684_v13, %v1683_v38  ;;  %v3968_v62 = vshll.u32 %v1665_v19, 8  ;;  %vm1541_vm15 = vweird.f32 %v3655_v44 }
 0x3d9   :  { %v1639_v18 = vsub.s32 4, %v3927_v12  ;;  %v1688_v58 = vor.u32 %v1687_v56, %v1686_v22  ;;  %v2711_v47 = vadd.s32 4294967169, %v1765_v6  ;;  %v3974_v43 = vand.u32 8388607, %v1761_v33 }
 0x3da   :  { %vm1555_vm0 = vcmp.lt.s32.totalorder %v3738_v54, 0  ;;  %v1621_v20 = vclz %v2704_v40  ;;  %v1673_v41 = vshrl.u32 %v4806_v46, %v1672_v29  ;;  %vm1689_vm1 = vcmp.lt.s32.totalorder %v3952_v9, 1 }
 0x3db   :  { %vm1692_vm3 = vcmp.lt.s32.totalorder %v3952_v9, 4  ;;  %vm1691_vm4 = vcmp.lt.s32.totalorder %v3952_v9, 3  ;;  %v1697_v1 = vsel %vm1689_vm1, %v1676_v55, %v1679_v42  ;;  %v1701_v4 = vsel %vm1689_vm1, %v1679_v42, %v1682_v30 }
 0x3dc   :  { %v1698_v59 = vsel %vm1692_vm3, %v1685_v37, 920167782  ;;  %v2955_v7 = vpop.eup %2954  ;;  %v2705_v14 = vadd.s32 4294967294, %v1621_v20  ;;  %vm1690_vm2 = vcmp.lt.s32.totalorder %v3952_v9, 2  ;;  %v1702_v10 = vsel %vm1692_vm3, %v1688_v58, 1326507024 }
 0x3dd   :  { %v1699_v2 = vsel %vm1691_vm4, %v1682_v30, %v1698_v59  ;;  %v2957_v51 = vpop.eup %2956  ;;  %v1549_v0 = vxor.u32 2147483648, %v2955_v7  ;;  %v1693_v16 = vsel %vm1689_vm1, %v1673_v41, %v1676_v55  ;;  %v1694_v29 = vsel %vm1692_vm3, %v1682_v30, 2102212464 }
 0x3de   :  { %v1703_v52 = vsel %vm1691_vm4, %v1685_v37, %v1702_v10  ;;  %v1546_v26 = vxor.u32 2147483648, %v2957_v51  ;;  %vm2706_vm6 = vcmp.lt.s32.totalorder %v2705_v14, 0  ;;  %v1700_v19 = vsel %vm1690_vm2, %v1697_v1, %v1699_v2 }
 0x3df   :  { %v1704_v17 = vsel %vm1690_vm2, %v1701_v4, %v1703_v52  ;;  %v1550_v27 = vsel %vm1548_vm12, %v1549_v0, %v2957_v51  ;;  %v1624_v57 = vsel %vm2706_vm6, 0, %v2705_v14  ;;  %v1695_v55 = vsel %vm1691_vm4, %v1679_v42, %v1694_v29 }
 0x3e0   :  { %v3993_v6 = vmul.u32.u64.low %v3968_v62, %v1704_v17  ;;  %v3994_v50 = vmul.u32.u64.high %v3968_v62, %v1704_v17, %v3993_v6  ;;  %v1547_v63 = vsel %vm1545_vm13, %v2955_v7, %v1546_v26  ;;  %v1625_v53 = vsub.s32 32, %v1624_v57 }
 0x3e1   :  { %v1629_v28 = vsub.s32 4294967266, %v1624_v57  ;;  %v1551_v38 = vsel %vm1544_vm14, %v1547_v63, %v1550_v27  ;;  %v4003_v13 = vmul.u32.u64.low %v3968_v62, %v1700_v19  ;;  %v4004_v30 = vmul.u32.u64.high %v3968_v62, %v1700_v19, %v4003_v13 }
 0x3e2   :  { %v1771_v22 = vadd.s32 1, %v2711_v47  ;;  %v1552_v56 = vsel %vm1541_vm15, nan, %v1551_v38  ;;  %v1626_v40 = vshll.u32 %v3948_v5, %v1624_v57  ;;  %v1627_v37 = vshrl.u32 %v1609_v15, %v1625_v53 }
 0x3e3   :  { %v1630_v58 = vadd.s32 127, %v1629_v28  ;;  %v2598_v20 = vadd.f32 %v1552_v56, %v3230_v3  ;;  %v1640_v35 = vsel %vm1555_vm0, %v1639_v18, %v3927_v12  ;;  %v1696_v42 = vsel %vm1690_vm2, %v1693_v16, %v1695_v55 }
 0x3e4   :  { %vm1772_vm7 = vcmp.gt.s32.totalorder %v1771_v22, 0  ;;  %v1628_v41 = vor.u32 %v1627_v37, %v1626_v40  ;;  %vm1714_vm8 = vc.u32 %v3994_v50, %v4003_v13  ;;  %vm4023_vm9 = vcmp.le.f32.partialorder %v1553_v8, 0.7853982 }
 0x3e5   :  { %v1631_v1 = vshll.u32 %v1630_v58, 23  ;;  %v1773_v44 = vsel %vm1772_vm7, %v1771_v22, 0  ;;  %2614 = vst [vmem:[%s4774_s4 + $0x28] sm:$0xff] %v2598_v20  ;;  %v1715_v12 = vadd.s32 1, %v4004_v30  ;;  %v1712_v15 = vmul.u32 %v3968_v62, %v1696_v42 }
 0x3e6   :  { %v1775_v5 = vand.u32 31, %v1773_v44  ;;  %v1769_v18 = vor.u32 8388608, %v3974_v43  ;;  %v902_v47 = vmul.f32 %v3814_v31, %v882_v21  ;;  %v1642_v8 = vsel %vm4023_vm9, 0, %v1640_v35 }
 0x3e7   :  { %v1632_v9 = vor.u32 4788187, %v1631_v1  ;;  %v1716_v59 = vsel %vm1714_vm8, %v1715_v12, %v4004_v30  ;;  %v4039_v4 = vshrl.u32 %v1773_v44, 5  ;;  %v1635_v2 = vcvt.s32.f32 %v1628_v41 }
 0x3e8   :  { %v1776_v7 = vsub.s32 32, %v1775_v5  ;;  %v1717_v62 = vadd.s32 %v1716_v59, %v1712_v15  ;;  %v1778_v43 = vshll.u32 %v4806_v46, %v1775_v5  ;;  %v1781_v51 = vshll.u32 %v4807_v61, %v1775_v5 }
 0x3e9   :  { %v1633_v14 = vand.u32 2147483647, %v1632_v9  ;;  %v1787_v16 = vshll.u32 %v4809_v32, %v1775_v5  ;;  %v1784_v19 = vshll.u32 %v4808_v49, %v1775_v5  ;;  %v1646_v57 = vadd.s32 3, %v1642_v8 }
 0x3ea   :  { %v1779_v10 = vshrl.u32 %v4807_v61, %v1776_v7  ;;  %v1782_v23 = vshrl.u32 %v4808_v49, %v1776_v7  ;;  %v1785_v36 = vshrl.u32 %v4809_v32, %v1776_v7  ;;  %v1718_v0 = vadd.s32 536870912, %v1717_v62 }
 0x3eb   :  { %v1636_v21 = vmul.f32 %v1635_v2, %v1633_v14  ;;  %v1788_v29 = vshrl.u32 %v4810_v48, %v1776_v7  ;;  %v1791_v17 = vshrl.u32 %v4811_v39, %v1776_v7  ;;  %v1790_v28 = vshll.u32 %v4810_v48, %v1775_v5  ;;  %v840_v5 = vpop.permute.xlu1 %839 }
 0x3ec   :  { %v1780_v52 = vor.u32 %v1779_v10, %v1778_v43  ;;  %v1783_v26 = vor.u32 %v1782_v23, %v1781_v51  ;;  %v1719_v6 = vshrl.u32 %v1718_v0, 30  ;;  %v1786_v53 = vor.u32 %v1785_v36, %v1784_v19 }
 0x3ed   :  { %v1637_v27 = vxor.u32 2147483648, %v1636_v21  ;;  %v1789_v63 = vor.u32 %v1788_v29, %v1787_v16  ;;  %v4051_v55 = vshll.u32 %v1769_v18, 8  ;;  %v4054_v38 = vadd.f32 %v3844_v25, %v902_v47 }
 0x3ee   :  { %v1720_v22 = vshll.u32 %v1719_v6, 30  ;;  %vm1793_vm10 = vcmp.lt.s32.totalorder %v4039_v4, 1  ;;  %vm1796_vm11 = vcmp.lt.s32.totalorder %v4039_v4, 4  ;;  %v1792_v40 = vor.u32 %v1791_v17, %v1790_v28 }
 0x3ef   :  { %v1638_v30 = vsel %vm1555_vm0, %v1637_v27, %v1636_v21  ;;  %v1801_v37 = vsel %vm1793_vm10, %v1780_v52, %v1783_v26  ;;  %v1802_v58 = vsel %vm1796_vm11, %v1789_v63, 920167782  ;;  %v1777_v35 = vshrl.u32 %v4806_v46, %v1776_v7 }
 0x3f0   :  { %v1641_v56 = vsel %vm4023_vm9, %v3738_v54, %v1638_v30  ;;  %v4067_v20 = vsub.s32 %v1717_v62, %v1720_v22  ;;  %vm1795_vm12 = vcmp.lt.s32.totalorder %v4039_v4, 3  ;;  %vm1794_vm13 = vcmp.lt.s32.totalorder %v4039_v4, 2 }
 0x3f1   :  { %2958 = vcosq.f32 %v1641_v56  ;;  %v1798_v42 = vsel %vm1796_vm11, %v1786_v53, 2102212464  ;;  %v1803_v41 = vsel %vm1795_vm12, %v1786_v53, %v1802_v58  ;;  %v1743_v44 = vsub.s32 4, %v1719_v6 }
 0x3f2   :  { %2960 = vsinq.f32 %v1641_v56  ;;  %v1723_v1 = vsub.s32 0, %v4067_v20  ;;  %v1804_v3 = vsel %vm1794_vm13, %v1801_v37, %v1803_v41  ;;  %v1805_v12 = vsel %vm1793_vm10, %v1783_v26, %v1786_v53 }
 0x3f3   :  { %v1647_v9 = vand.u32 3, %v1646_v57  ;;  %v1806_v15 = vsel %vm1796_vm11, %v1792_v40, 1326507024  ;;  %v4084_v18 = vmul.u32.u64.low %v4051_v55, %v1804_v3  ;;  %v4085_v47 = vmul.u32.u64.high %v4051_v55, %v1804_v3, %v4084_v18 }
 0x3f4   :  { %v2708_v8 = vmin.u32 %v1723_v1, %v4067_v20  ;;  %v1797_v59 = vsel %vm1793_vm10, %v1777_v35, %v1780_v52  ;;  %v1799_v7 = vsel %vm1795_vm12, %v1783_v26, %v1798_v42  ;;  %v1807_v14 = vsel %vm1795_vm12, %v1789_v63, %v1806_v15 }
 0x3f5   :  { %vm1659_vm14 = vcmp.lt.s32.totalorder %v3847_v11, 0  ;;  %v1808_v2 = vsel %vm1794_vm13, %v1805_v12, %v1807_v14  ;;  %v1868_v62 = vand.u32 2139095040, %v4054_v38  ;;  %v883_v43 = vsel %vm3294_vm5, %v3277_v24, %v840_v5  ;;  %v4835_v5 = vld [vmem:[#allocation2_spill] sm:$0xff] }
 0x3f6   :  { %v1725_v10 = vclz %v2708_v8  ;;  %v1744_v51 = vsel %vm1659_vm14, %v1743_v44, %v1719_v6  ;;  %v1865_v23 = vand.u32 2147483647, %v4054_v38  ;;  %v1800_v36 = vsel %vm1794_vm13, %v1797_v59, %v1799_v7 }
 0x3f7   :  { %v4108_v21 = vmul.u32.u64.low %v4051_v55, %v1808_v2  ;;  %v4109_v0 = vmul.u32.u64.high %v4051_v55, %v1808_v2, %v4108_v21  ;;  %v1869_v16 = vshrl.u32 %v1868_v62, 23  ;;  %vm1648_vm15 = vcmp.lt.s32.totalorder %v1647_v9, 2 }
 0x3f8   :  { %vm4113_vm0 = vcmp.le.f32.partialorder %v1657_v45, 0.7853982  ;;  %v2709_v24 = vadd.s32 4294967294, %v1725_v10  ;;  %v903_v52 = vmul.f32 %v3814_v31, %v883_v43  ;;  %vm1649_vm1 = vcmp.eq.s32.totalorder %v1647_v9, 0 }
 0x3f9   :  { %vm1652_vm3 = vcmp.eq.s32.totalorder %v1647_v9, 2  ;;  %v1819_v4 = vadd.s32 1, %v4085_v47  ;;  %v2715_v26 = vadd.s32 4294967169, %v1869_v16  ;;  %v1713_v17 = vadd.s32 %v4003_v13, %v3994_v50 }
 0x3fa   :  { %vm2710_vm4 = vcmp.lt.s32.totalorder %v2709_v24, 0  ;;  %v1746_v27 = vsel %vm4113_vm0, 0, %v1744_v51  ;;  %v1816_v45 = vmul.u32 %v4051_v55, %v1800_v36  ;;  %vm1818_vm2 = vc.u32 %v4109_v0, %v4084_v18 }
 0x3fb   :  { %v2959_v19 = vpop.eup %2958  ;;  %v1728_v63 = vsel %vm2710_vm4, 0, %v2709_v24  ;;  %v1872_v53 = vand.u32 8388607, %v1865_v23  ;;  %v4129_v50 = vadd.f32 %v3844_v25, %v903_v52  ;;  %v1820_v55 = vsel %vm1818_vm2, %v1819_v4, %v4085_v47 }
 0x3fc   :  { %v2961_v57 = vpop.eup %2960  ;;  %v1653_v6 = vxor.u32 2147483648, %v2959_v19  ;;  %v1729_v30 = vsub.s32 32, %v1728_v63  ;;  %v1733_v22 = vsub.s32 4294967266, %v1728_v63  ;;  %v1730_v56 = vshll.u32 %v4067_v20, %v1728_v63 }
 0x3fd   :  { %v1650_v28 = vxor.u32 2147483648, %v2961_v57  ;;  %v1875_v40 = vadd.s32 1, %v2715_v26  ;;  %v1821_v42 = vadd.s32 %v1820_v55, %v1816_v45  ;;  %vm1645_vm6 = vweird.f32 %v3738_v54 }
 0x3fe   :  { %v1654_v13 = vsel %vm1652_vm3, %v1653_v6, %v2961_v57  ;;  %v1731_v58 = vshrl.u32 %v1713_v17, %v1729_v30  ;;  %v1734_v35 = vadd.s32 127, %v1733_v22  ;;  %v1750_v20 = vadd.s32 3, %v1746_v27 }
 0x3ff   :  { %v1651_v37 = vsel %vm1649_vm1, %v2959_v19, %v1650_v28  ;;  %vm1876_vm7 = vcmp.gt.s32.totalorder %v1875_v40, 0  ;;  %v1822_v12 = vadd.s32 536870912, %v1821_v42  ;;  %v1873_v8 = vor.u32 8388608, %v1872_v53 }
 0x400   :  { %v1655_v41 = vsel %vm1648_vm15, %v1651_v37, %v1654_v13  ;;  %v1732_v44 = vor.u32 %v1731_v58, %v1730_v56  ;;  %v1735_v3 = vshll.u32 %v1734_v35, 23  ;;  %v1877_v47 = vsel %vm1876_vm7, %v1875_v40, 0 }
 0x401   :  { %v1656_v1 = vsel %vm1645_vm6, nan, %v1655_v41  ;;  %v1823_v7 = vshrl.u32 %v1822_v12, 30  ;;  %v1972_v14 = vand.u32 2139095040, %v4129_v50  ;;  %v1879_v54 = vand.u32 31, %v1877_v47 }
 0x402   :  { %v2599_v15 = vadd.f32 %v1656_v1, %v4835_v5  ;;  %v1736_v59 = vor.u32 4788187, %v1735_v3  ;;  %v1739_v2 = vcvt.s32.f32 %v1732_v44  ;;  %v4142_v43 = vand.u32 3, %v1750_v20 }
 0x403   :  { %v1824_v62 = vshll.u32 %v1823_v7, 30  ;;  %v1880_v10 = vsub.s32 32, %v1879_v54  ;;  %v4144_v51 = vshll.u32 %v1873_v8, 8  ;;  %v1817_v21 = vadd.s32 %v4084_v18, %v4109_v0 }
 0x404   :  { %2615 = vst [vmem:[%s4774_s4 + $0x30] sm:$0xff] %v2599_v15  ;;  %v1737_v9 = vand.u32 2147483647, %v1736_v59  ;;  %v1973_v24 = vshrl.u32 %v1972_v14, 23  ;;  %v4150_v52 = vshrl.u32 %v1877_v47, 5  ;;  %v1882_v4 = vshll.u32 %v4806_v46, %v1879_v54 }
 0x405   :  { %v4148_v16 = vsub.s32 %v1821_v42, %v1824_v62  ;;  %v1883_v26 = vshrl.u32 %v4807_v61, %v1880_v10  ;;  %v1886_v19 = vshrl.u32 %v4808_v49, %v1880_v10  ;;  %vm1763_vm8 = vcmp.lt.s32.totalorder %v3918_v60, 0 }
 0x406   :  { %v1740_v36 = vmul.f32 %v1739_v2, %v1737_v9  ;;  %v1885_v45 = vshll.u32 %v4807_v61, %v1879_v54  ;;  %v1889_v18 = vshrl.u32 %v4809_v32, %v1880_v10  ;;  %v1888_v57 = vshll.u32 %v4808_v49, %v1879_v54 }
 0x407   :  { %v1827_v27 = vsub.s32 0, %v4148_v16  ;;  %v1884_v0 = vor.u32 %v1883_v26, %v1882_v4  ;;  %v1891_v6 = vshll.u32 %v4809_v32, %v1879_v54  ;;  %v1892_v63 = vshrl.u32 %v4810_v48, %v1880_v10 }
 0x408   :  { %v1741_v17 = vxor.u32 2147483648, %v1740_v36  ;;  %v1887_v30 = vor.u32 %v1886_v19, %v1885_v45  ;;  %v1894_v22 = vshll.u32 %v4810_v48, %v1879_v54  ;;  %v1890_v56 = vor.u32 %v1889_v18, %v1888_v57  ;;  %v4838_v18 = vld [vmem:[#allocation12_spill] sm:$0xff] }
 0x409   :  { %v2712_v28 = vmin.u32 %v1827_v27, %v4148_v16  ;;  %v1893_v55 = vor.u32 %v1892_v63, %v1891_v6  ;;  %v1895_v40 = vshrl.u32 %v4811_v39, %v1880_v10  ;;  %v1847_v58 = vsub.s32 4, %v1823_v7 }
 0x40a   :  { %v1742_v53 = vsel %vm1659_vm14, %v1741_v17, %v1740_v36  ;;  %v2719_v35 = vadd.s32 4294967169, %v1973_v24  ;;  %v1881_v42 = vshrl.u32 %v4806_v46, %v1880_v10  ;;  %vm1897_vm9 = vcmp.lt.s32.totalorder %v4150_v52, 1  ;;  %v844_v10 = vpop.permute.xlu0 %843 }
 0x40b   :  { %v1745_v13 = vsel %vm4113_vm0, %v3847_v11, %v1742_v53  ;;  %v1829_v37 = vclz %v2712_v28  ;;  %v1896_v41 = vor.u32 %v1895_v40, %v1894_v22  ;;  %vm4174_vm10 = vcmp.le.f32.partialorder %v1761_v33, 0.7853982 }
 0x40c   :  { %2962 = vcosq.f32 %v1745_v13  ;;  %vm1899_vm11 = vcmp.lt.s32.totalorder %v4150_v52, 3  ;;  %vm1900_vm12 = vcmp.lt.s32.totalorder %v4150_v52, 4  ;;  %v1905_v44 = vsel %vm1897_vm9, %v1884_v0, %v1887_v30 }
 0x40d   :  { %2964 = vsinq.f32 %v1745_v13  ;;  %v2713_v29 = vadd.s32 4294967294, %v1829_v37  ;;  %v1902_v3 = vsel %vm1900_vm12, %v1890_v56, 2102212464  ;;  %v1906_v12 = vsel %vm1900_vm12, %v1893_v55, 920167782 }
 0x40e   :  { %v1909_v5 = vsel %vm1897_vm9, %v1887_v30, %v1890_v56  ;;  %v1910_v15 = vsel %vm1900_vm12, %v1896_v41, 1326507024  ;;  %vm1898_vm14 = vcmp.lt.s32.totalorder %v4150_v52, 2  ;;  %v1907_v33 = vsel %vm1899_vm11, %v1890_v56, %v1906_v12 }
 0x40f   :  { %vm2714_vm13 = vcmp.lt.s32.totalorder %v2713_v29, 0  ;;  %v1911_v20 = vsel %vm1899_vm11, %v1893_v55, %v1910_v15  ;;  %v1848_v47 = vsel %vm1763_vm8, %v1847_v58, %v1823_v7  ;;  %v1908_v59 = vsel %vm1898_vm14, %v1905_v44, %v1907_v33 }
 0x410   :  { %v1832_v8 = vsel %vm2714_vm13, 0, %v2713_v29  ;;  %v1912_v14 = vsel %vm1898_vm14, %v1909_v5, %v1911_v20  ;;  %vm1752_vm15 = vcmp.lt.s32.totalorder %v4142_v43, 2  ;;  %v1901_v2 = vsel %vm1897_vm9, %v1881_v42, %v1884_v0 }
 0x411   :  { %v1833_v54 = vsub.s32 32, %v1832_v8  ;;  %v1837_v9 = vsub.s32 4294967266, %v1832_v8  ;;  %v1903_v62 = vsel %vm1899_vm11, %v1887_v30, %v1902_v3  ;;  %vm1749_vm0 = vweird.f32 %v3847_v11 }
 0x412   :  { %v4202_v7 = vmul.u32.u64.low %v4144_v51, %v1912_v14  ;;  %v4203_v36 = vmul.u32.u64.high %v4144_v51, %v1912_v14, %v4202_v7  ;;  %v4206_v24 = vmul.u32.u64.low %v4144_v51, %v1908_v59  ;;  %v4207_v4 = vmul.u32.u64.high %v4144_v51, %v1908_v59, %v4206_v24 }
 0x413   :  { %v1834_v26 = vshll.u32 %v4148_v16, %v1832_v8  ;;  %v1835_v19 = vshrl.u32 %v1817_v21, %v1833_v54  ;;  %v1838_v17 = vadd.s32 127, %v1837_v9  ;;  %v1979_v27 = vadd.s32 1, %v2719_v35  ;;  %v4839_v8 = vld [vmem:[#allocation3_spill] sm:$0xff] }
 0x414   :  { %vm1753_vm1 = vcmp.eq.s32.totalorder %v4142_v43, 0  ;;  %vm1756_vm3 = vcmp.eq.s32.totalorder %v4142_v43, 2  ;;  %v1904_v45 = vsel %vm1898_vm14, %v1901_v2, %v1903_v62  ;;  %v884_v0 = vsel %vm3294_vm5, %v4838_v18, %v844_v10 }
 0x415   :  { %v1836_v6 = vor.u32 %v1835_v19, %v1834_v26  ;;  %v1839_v63 = vshll.u32 %v1838_v17, 23  ;;  %v1969_v53 = vand.u32 2147483647, %v4129_v50  ;;  %vm1980_vm4 = vcmp.gt.s32.totalorder %v1979_v27, 0  ;;  %v851_v26 = vpop.permute.xlu1 %850 }
 0x416   :  { %v2963_v57 = vpop.eup %2962  ;;  %v1850_v28 = vsel %vm4174_vm10, 0, %v1848_v47  ;;  %vm1922_vm2 = vc.u32 %v4203_v36, %v4206_v24  ;;  %v1923_v52 = vadd.s32 1, %v4207_v4  ;;  %v1920_v13 = vmul.u32 %v4144_v51, %v1904_v45 }
 0x417   :  { %v2965_v21 = vpop.eup %2964  ;;  %v1757_v16 = vxor.u32 2147483648, %v2963_v57  ;;  %v1840_v22 = vor.u32 4788187, %v1839_v63  ;;  %v1981_v56 = vsel %vm1980_vm4, %v1979_v27, 0  ;;  %v904_v58 = vmul.f32 %v3814_v31, %v884_v0 }
 0x418   :  { %v1754_v30 = vxor.u32 2147483648, %v2965_v21  ;;  %v1924_v40 = vsel %vm1922_vm2, %v1923_v52, %v4207_v4  ;;  %v1983_v37 = vand.u32 31, %v1981_v56  ;;  %v1843_v41 = vcvt.s32.f32 %v1836_v6 }
 0x419   :  { %v1758_v55 = vsel %vm1756_vm3, %v1757_v16, %v2965_v21  ;;  %v1841_v42 = vand.u32 2147483647, %v1840_v22  ;;  %v1925_v29 = vadd.s32 %v1924_v40, %v1920_v13  ;;  %v1854_v3 = vadd.s32 3, %v1850_v28  ;;  %v4840_v21 = vld [vmem:[#allocation13_spill] sm:$0xff] }
 0x41a   :  { %v1755_v35 = vsel %vm1753_vm1, %v2963_v57, %v1754_v30  ;;  %v1976_v51 = vand.u32 8388607, %v1969_v53  ;;  %v1984_v12 = vsub.s32 32, %v1983_v37  ;;  %v4237_v20 = vshrl.u32 %v1981_v56, 5 }
 0x41b   :  { %v1759_v44 = vsel %vm1752_vm15, %v1755_v35, %v1758_v55  ;;  %v1844_v15 = vmul.f32 %v1843_v41, %v1841_v42  ;;  %v1926_v33 = vadd.s32 536870912, %v1925_v29  ;;  %v1986_v59 = vshll.u32 %v4806_v46, %v1983_v37 }
 0x41c   :  { %v1760_v5 = vsel %vm1749_vm0, nan, %v1759_v44  ;;  %v1987_v14 = vshrl.u32 %v4807_v61, %v1984_v12  ;;  %v1990_v43 = vshrl.u32 %v4808_v49, %v1984_v12  ;;  %v1989_v2 = vshll.u32 %v4807_v61, %v1983_v37 }
 0x41d   :  { %v2600_v47 = vadd.f32 %v1760_v5, %v4839_v8  ;;  %v1845_v54 = vxor.u32 2147483648, %v1844_v15  ;;  %v4243_v9 = vshrl.u32 %v1926_v33, 30  ;;  %v1993_v11 = vshrl.u32 %v4809_v32, %v1984_v12 }
 0x41e   :  { %v1988_v62 = vor.u32 %v1987_v14, %v1986_v59  ;;  %v1992_v10 = vshll.u32 %v4808_v49, %v1983_v37  ;;  %v1995_v7 = vshll.u32 %v4809_v32, %v1983_v37  ;;  %v1996_v4 = vshrl.u32 %v4810_v48, %v1984_v12 }
 0x41f   :  { %2616 = vst [vmem:[%s4774_s4 + $0x38] sm:$0xff] %v2600_v47  ;;  %v1846_v19 = vsel %vm1763_vm8, %v1845_v54, %v1844_v15  ;;  %v1928_v17 = vshll.u32 %v4243_v9, 30  ;;  %v1991_v27 = vor.u32 %v1990_v43, %v1989_v2  ;;  %v1998_v45 = vshll.u32 %v4810_v48, %v1983_v37 }
 0x420   :  { %v1849_v18 = vsel %vm4174_vm10, %v3918_v60, %v1846_v19  ;;  %v1994_v0 = vor.u32 %v1993_v11, %v1992_v10  ;;  %v1997_v57 = vor.u32 %v1996_v4, %v1995_v7  ;;  %v1999_v6 = vshrl.u32 %v4811_v39, %v1984_v12 }
 0x421   :  { %2966 = vcosq.f32 %v1849_v18  ;;  %v4261_v63 = vsub.s32 %v1925_v29, %v1928_v17  ;;  %v885_v16 = vsel %vm3294_vm5, %v4840_v21, %v851_v26  ;;  %v4266_v28 = vand.u32 3, %v1854_v3  ;;  %v855_v21 = vpop.permute.xlu0 %854 }
 0x422   :  { %2968 = vsinq.f32 %v1849_v18  ;;  %v1977_v52 = vor.u32 8388608, %v1976_v51  ;;  %v2000_v30 = vor.u32 %v1999_v6, %v1998_v45  ;;  %vm1867_vm6 = vcmp.lt.s32.totalorder %v4054_v38, 0 }
 0x423   :  { %v1931_v1 = vsub.s32 0, %v4261_v63  ;;  %vm2001_vm7 = vcmp.lt.s32.totalorder %v4237_v20, 1  ;;  %vm2004_vm8 = vcmp.lt.s32.totalorder %v4237_v20, 4  ;;  %v4273_v22 = vadd.f32 %v3844_v25, %v904_v58 }
 0x424   :  { %vm2003_vm9 = vcmp.lt.s32.totalorder %v4237_v20, 3  ;;  %v2006_v13 = vsel %vm2004_vm8, %v1994_v0, 2102212464  ;;  %v2009_v56 = vsel %vm2001_vm7, %v1988_v62, %v1991_v27  ;;  %v2010_v55 = vsel %vm2004_vm8, %v1997_v57, 920167782 }
 0x425   :  { %v2716_v40 = vmin.u32 %v1931_v1, %v4261_v63  ;;  %v1985_v37 = vshrl.u32 %v4806_v46, %v1984_v12  ;;  %vm2002_vm10 = vcmp.lt.s32.totalorder %v4237_v20, 2  ;;  %v2011_v35 = vsel %vm2003_vm9, %v1994_v0, %v2010_v55  ;;  %v4843_v55 = vld [vmem:[#allocation5_spill] sm:$0xff] }
 0x426   :  { %v2012_v25 = vsel %vm2002_vm10, %v2009_v56, %v2011_v35  ;;  %v2013_v58 = vsel %vm2001_vm7, %v1991_v27, %v1994_v0  ;;  %v2014_v42 = vsel %vm2004_vm8, %v2000_v30, 1326507024  ;;  %v2017_v41 = vshll.u32 %v1977_v52, 8  ;;  %v4844_v35 = vld [vmem:[#allocation14_spill] sm:$0xff] }
 0x427   :  { %vm1856_vm11 = vcmp.lt.s32.totalorder %v4266_v28, 2  ;;  %vm1857_vm12 = vcmp.eq.s32.totalorder %v4266_v28, 0  ;;  %vm4291_vm13 = vcmp.le.f32.partialorder %v1865_v23, 0.7853982  ;;  %v1933_v44 = vclz %v2716_v40 }
 0x428   :  { %v2005_v3 = vsel %vm2001_vm7, %v1985_v37, %v1988_v62  ;;  %v2007_v51 = vsel %vm2003_vm9, %v1991_v27, %v2006_v13  ;;  %vm1853_vm14 = vweird.f32 %v3918_v60  ;;  %v1951_v12 = vsub.s32 4, %v4243_v9 }
 0x429   :  { %v2015_v5 = vsel %vm2003_vm9, %v1997_v57, %v2014_v42  ;;  %v4303_v15 = vmul.u32.u64.low %v2017_v41, %v2012_v25  ;;  %v4304_v33 = vmul.u32.u64.high %v2017_v41, %v2012_v25, %v4303_v15  ;;  %vm1860_vm15 = vcmp.eq.s32.totalorder %v4266_v28, 2 }
 0x42a   :  { %v2717_v23 = vadd.s32 4294967294, %v1933_v44  ;;  %v2016_v8 = vsel %vm2002_vm10, %v2013_v58, %v2015_v5  ;;  %v2076_v47 = vand.u32 2139095040, %v4273_v22  ;;  %v2008_v59 = vsel %vm2002_vm10, %v2005_v3, %v2007_v51  ;;  %v4348_v3 = vld [vmem:[%s4772_s3 + $0x4] ss:$0 sm:$0xff] }
 0x42b   :  { %v4312_v14 = vmul.u32.u64.low %v2017_v41, %v2016_v8  ;;  %v4313_v43 = vmul.u32.u64.high %v2017_v41, %v2016_v8, %v4312_v14  ;;  %v905_v54 = vmul.f32 %v3814_v31, %v885_v16  ;;  %v2967_v2 = vpop.eup %2966  ;;  %v1921_v11 = vadd.s32 %v4206_v24, %v4203_v36  ;;  %v4357_v8 = vld [vmem:[%s4772_s3 + $0x3] ss:$0 sm:$0xff] }
 0x42c   :  { %vm2718_vm0 = vcmp.lt.s32.totalorder %v2717_v23, 0  ;;  %v2073_v62 = vand.u32 2147483647, %v4273_v22  ;;  %v2077_v10 = vshrl.u32 %v2076_v47, 23  ;;  %v2969_v7 = vpop.eup %2968  ;;  %v1861_v4 = vxor.u32 2147483648, %v2967_v2 }
 0x42d   :  { %v1936_v26 = vsel %vm2718_vm0, 0, %v2717_v23  ;;  %v1952_v20 = vsel %vm1867_vm6, %v1951_v12, %v4243_v9  ;;  %v2027_v19 = vadd.s32 1, %v4304_v33  ;;  %v1858_v17 = vxor.u32 2147483648, %v2969_v7 }
 0x42e   :  { %v1937_v27 = vsub.s32 32, %v1936_v26  ;;  %v1941_v31 = vsub.s32 4294967266, %v1936_v26  ;;  %v2024_v45 = vmul.u32 %v2017_v41, %v2008_v59  ;;  %v1862_v36 = vsel %vm1860_vm15, %v1861_v4, %v2969_v7 }
 0x42f   :  { %v1938_v24 = vshll.u32 %v4261_v63, %v1936_v26  ;;  %vm2026_vm1 = vc.u32 %v4313_v43, %v4303_v15  ;;  %v2723_v18 = vadd.s32 4294967169, %v2077_v10  ;;  %v1859_v0 = vsel %vm1857_vm12, %v2967_v2, %v1858_v17 }
 0x430   :  { %v1939_v57 = vshrl.u32 %v1921_v11, %v1937_v27  ;;  %v1942_v6 = vadd.s32 127, %v1941_v31  ;;  %v2028_v9 = vsel %vm2026_vm1, %v2027_v19, %v4304_v33  ;;  %v1863_v16 = vsel %vm1856_vm11, %v1859_v0, %v1862_v36 }
 0x431   :  { %v1954_v52 = vsel %vm4291_vm13, 0, %v1952_v20  ;;  %v2029_v30 = vadd.s32 %v2028_v9, %v2024_v45  ;;  %v2083_v1 = vadd.s32 1, %v2723_v18  ;;  %v1864_v63 = vsel %vm1853_vm14, nan, %v1863_v16 }
 0x432   :  { %v1940_v13 = vor.u32 %v1939_v57, %v1938_v24  ;;  %v1943_v56 = vshll.u32 %v1942_v6, 23  ;;  %v2601_v40 = vadd.f32 %v1864_v63, %v4843_v55  ;;  %v886_v25 = vsel %vm3294_vm5, %v4844_v35, %v855_v21 }
 0x433   :  { %v2030_v37 = vadd.s32 536870912, %v2029_v30  ;;  %vm2084_vm3 = vcmp.gt.s32.totalorder %v2083_v1, 0  ;;  %v1958_v58 = vadd.s32 3, %v1954_v52  ;;  %v2080_v42 = vand.u32 8388607, %v2073_v62 }
 0x434   :  { %v1944_v28 = vor.u32 4788187, %v1943_v56  ;;  %v2085_v41 = vsel %vm2084_vm3, %v2083_v1, 0  ;;  %2617 = vst [vmem:[%s4774_s4 + $0x40] sm:$0xff] %v2601_v40  ;;  %v4351_v51 = vadd.f32 %v4348_v3, %v905_v54  ;;  %v1947_v5 = vcvt.s32.f32 %v1940_v13 }
 0x435   :  { %v2031_v60 = vshrl.u32 %v2030_v37, 30  ;;  %v2087_v44 = vand.u32 31, %v2085_v41  ;;  %vm1971_vm4 = vcmp.lt.s32.totalorder %v4129_v50, 0  ;;  %v4360_v47 = vmul.f32 %v4357_v8, %v886_v25 }
 0x436   :  { %v1945_v12 = vand.u32 2147483647, %v1944_v28  ;;  %v4362_v14 = vand.u32 3, %v1958_v58  ;;  %v2025_v54 = vadd.s32 %v4303_v15, %v4313_v43  ;;  %v2081_v2 = vor.u32 8388608, %v2080_v42 }
 0x437   :  { %v2032_v33 = vshll.u32 %v2031_v60, 30  ;;  %v2088_v23 = vsub.s32 32, %v2087_v44  ;;  %v4367_v10 = vshrl.u32 %v2085_v41, 5  ;;  %v2180_v4 = vand.u32 2139095040, %v4351_v51 }
 0x438   :  { %v1948_v59 = vmul.f32 %v1947_v5, %v1945_v12  ;;  %v2090_v20 = vshll.u32 %v4806_v46, %v2087_v44  ;;  %v2093_v15 = vshll.u32 %v4807_v61, %v2087_v44  ;;  %v2096_v43 = vshll.u32 %v4808_v49, %v2087_v44 }
 0x439   :  { %v4365_v11 = vsub.s32 %v2029_v30, %v2032_v33  ;;  %v2091_v7 = vshrl.u32 %v4807_v61, %v2088_v23  ;;  %v2094_v19 = vshrl.u32 %v4808_v49, %v2088_v23  ;;  %v2097_v17 = vshrl.u32 %v4809_v32, %v2088_v23 }
 0x43a   :  { %v1949_v26 = vxor.u32 2147483648, %v1948_v59  ;;  %v2100_v31 = vshrl.u32 %v4810_v48, %v2088_v23  ;;  %v2055_v36 = vsub.s32 4, %v2031_v60  ;;  %v2099_v18 = vshll.u32 %v4809_v32, %v2087_v44 }
 0x43b   :  { %v2035_v27 = vsub.s32 0, %v4365_v11  ;;  %v2092_v24 = vor.u32 %v2091_v7, %v2090_v20  ;;  %v2095_v6 = vor.u32 %v2094_v19, %v2093_v15  ;;  %v2098_v9 = vor.u32 %v2097_v17, %v2096_v43 }
 0x43c   :  { %v1950_v45 = vsel %vm1867_vm6, %v1949_v26, %v1948_v59  ;;  %v2101_v21 = vor.u32 %v2100_v31, %v2099_v18  ;;  %v2102_v16 = vshll.u32 %v4810_v48, %v2087_v44  ;;  %v2103_v52 = vshrl.u32 %v4811_v39, %v2088_v23 }
 0x43d   :  { %v1953_v0 = vsel %vm4291_vm13, %v4054_v38, %v1950_v45  ;;  %v2720_v57 = vmin.u32 %v2035_v27, %v4365_v11  ;;  %v4387_v1 = vshll.u32 %v2081_v2, 8  ;;  %v2181_v63 = vshrl.u32 %v2180_v4, 23 }
 0x43e   :  { %2970 = vcosq.f32 %v1953_v0  ;;  %v2056_v13 = vsel %vm1971_vm4, %v2055_v36, %v2031_v60  ;;  %v2089_v29 = vshrl.u32 %v4806_v46, %v2088_v23  ;;  %v2104_v56 = vor.u32 %v2103_v52, %v2102_v16 }
 0x43f   :  { %2972 = vsinq.f32 %v1953_v0  ;;  %v2037_v30 = vclz %v2720_v57  ;;  %vm2105_vm2 = vcmp.lt.s32.totalorder %v4367_v10, 1  ;;  %vm4395_vm6 = vcmp.le.f32.partialorder %v1969_v53, 0.7853982 }
 0x440   :  { %vm2107_vm7 = vcmp.lt.s32.totalorder %v4367_v10, 3  ;;  %vm2108_vm8 = vcmp.lt.s32.totalorder %v4367_v10, 4  ;;  %v2113_v37 = vsel %vm2105_vm2, %v2092_v24, %v2095_v6  ;;  %v2117_v28 = vsel %vm2105_vm2, %v2095_v6, %v2098_v9 }
 0x441   :  { %v2721_v40 = vadd.s32 4294967294, %v2037_v30  ;;  %v2110_v35 = vsel %vm2108_vm8, %v2098_v9, 2102212464  ;;  %v2114_v25 = vsel %vm2108_vm8, %v2101_v21, 920167782  ;;  %vm2106_vm10 = vcmp.lt.s32.totalorder %v4367_v10, 2 }
 0x442   :  { %v2118_v58 = vsel %vm2108_vm8, %v2104_v56, 1326507024  ;;  %v2115_v53 = vsel %vm2107_vm7, %v2098_v9, %v2114_v25  ;;  %vm1960_vm11 = vcmp.lt.s32.totalorder %v4362_v14, 2  ;;  %v2109_v60 = vsel %vm2105_vm2, %v2089_v29, %v2092_v24  ;;  %v4847_v25 = vld [vmem:[#allocation7_spill] sm:$0xff] }
 0x443   :  { %vm2722_vm9 = vcmp.lt.s32.totalorder %v2721_v40, 0  ;;  %v2119_v42 = vsel %vm2107_vm7, %v2101_v21, %v2118_v58  ;;  %v2116_v44 = vsel %vm2106_vm10, %v2113_v37, %v2115_v53  ;;  %vm1957_vm12 = vweird.f32 %v4054_v38 }
 0x444   :  { %v2040_v41 = vsel %vm2722_vm9, 0, %v2721_v40  ;;  %v2120_v12 = vsel %vm2106_vm10, %v2117_v28, %v2119_v42  ;;  %v2111_v23 = vsel %vm2107_vm7, %v2095_v6, %v2110_v35  ;;  %v2727_v59 = vadd.s32 4294967169, %v2181_v63 }
 0x445   :  { %v2041_v5 = vsub.s32 32, %v2040_v41  ;;  %v2045_v33 = vsub.s32 4294967266, %v2040_v41  ;;  %v4421_v2 = vmul.u32.u64.low %v4387_v1, %v2120_v12  ;;  %v4422_v7 = vmul.u32.u64.high %v4387_v1, %v2120_v12, %v4421_v2 }
 0x446   :  { %v4425_v4 = vmul.u32.u64.low %v4387_v1, %v2116_v44  ;;  %v4426_v26 = vmul.u32.u64.high %v4387_v1, %v2116_v44, %v4425_v4  ;;  %v2042_v20 = vshll.u32 %v4365_v11, %v2040_v41  ;;  %v2187_v27 = vadd.s32 1, %v2727_v59 }
 0x447   :  { %v2043_v19 = vshrl.u32 %v2025_v54, %v2041_v5  ;;  %v2046_v17 = vadd.s32 127, %v2045_v33  ;;  %vm1961_vm13 = vcmp.eq.s32.totalorder %v4362_v14, 0  ;;  %vm1964_vm14 = vcmp.eq.s32.totalorder %v4362_v14, 2 }
 0x448   :  { %v2971_v15 = vpop.eup %2970  ;;  %v2112_v43 = vsel %vm2106_vm10, %v2109_v60, %v2111_v23  ;;  %v2177_v31 = vand.u32 2147483647, %v4351_v51  ;;  %vm2188_vm15 = vcmp.gt.s32.totalorder %v2187_v27, 0  ;;  %v2058_v54 = vsel %vm4395_vm6, 0, %v2056_v13 }
 0x449   :  { %v2973_v45 = vpop.eup %2972  ;;  %v1965_v36 = vxor.u32 2147483648, %v2971_v15  ;;  %v2044_v24 = vor.u32 %v2043_v19, %v2042_v20  ;;  %v2047_v18 = vshll.u32 %v2046_v17, 23  ;;  %vm2130_vm0 = vc.u32 %v4422_v7, %v4425_v4 }
 0x44a   :  { %v1962_v0 = vxor.u32 2147483648, %v2973_v45  ;;  %v2131_v11 = vadd.s32 1, %v4426_v26  ;;  %v2128_v10 = vmul.u32 %v4387_v1, %v2112_v43  ;;  %v2189_v9 = vsel %vm2188_vm15, %v2187_v27, 0 }
 0x44b   :  { %v1966_v57 = vsel %vm1964_vm14, %v1965_v36, %v2973_v45  ;;  %v2048_v6 = vor.u32 4788187, %v2047_v18  ;;  %v2191_v52 = vand.u32 31, %v2189_v9  ;;  %v4446_v30 = vadd.f32 %v4348_v3, %v4360_v47 }
 0x44c   :  { %v1963_v21 = vsel %vm1961_vm13, %v2971_v15, %v1962_v0  ;;  %v2132_v16 = vsel %vm2130_vm0, %v2131_v11, %v4426_v26  ;;  %v2051_v29 = vcvt.s32.f32 %v2044_v24  ;;  %v2062_v40 = vadd.s32 3, %v2058_v54 }
 0x44d   :  { %v1967_v63 = vsel %vm1960_vm11, %v1963_v21, %v1966_v57  ;;  %v2049_v13 = vand.u32 2147483647, %v2048_v6  ;;  %v2133_v56 = vadd.s32 %v2132_v16, %v2128_v10  ;;  %v2184_v37 = vand.u32 8388607, %v2177_v31 }
 0x44e   :  { %v1968_v1 = vsel %vm1957_vm12, nan, %v1967_v63  ;;  %v2192_v35 = vsub.s32 32, %v2191_v52  ;;  %v2194_v47 = vshll.u32 %v4806_v46, %v2191_v52  ;;  %v2197_v42 = vshll.u32 %v4807_v61, %v2191_v52 }
 0x44f   :  { %v2602_v28 = vadd.f32 %v1968_v1, %v4847_v25  ;;  %v2052_v58 = vmul.f32 %v2051_v29, %v2049_v13  ;;  %v2134_v53 = vadd.s32 536870912, %v2133_v56  ;;  %v2200_v12 = vshll.u32 %v4808_v49, %v2191_v52 }
 0x450   :  { %v2195_v14 = vshrl.u32 %v4807_v61, %v2192_v35  ;;  %v2198_v41 = vshrl.u32 %v4808_v49, %v2192_v35  ;;  %v2201_v38 = vshrl.u32 %v4809_v32, %v2192_v35  ;;  %v2204_v5 = vshrl.u32 %v4810_v48, %v2192_v35 }
 0x451   :  { %2618 = vst [vmem:[%s4774_s4 + $0x48] sm:$0xff] %v2602_v28  ;;  %v2053_v60 = vxor.u32 2147483648, %v2052_v58  ;;  %v2135_v44 = vshrl.u32 %v2134_v53, 30  ;;  %v2185_v33 = vor.u32 8388608, %v2184_v37  ;;  %v2190_v23 = vshrl.u32 %v2189_v9, 5 }
 0x452   :  { %v2196_v59 = vor.u32 %v2195_v14, %v2194_v47  ;;  %v2203_v2 = vshll.u32 %v4809_v32, %v2191_v52  ;;  %v2199_v19 = vor.u32 %v2198_v41, %v2197_v42  ;;  %v2202_v17 = vor.u32 %v2201_v38, %v2200_v12 }
 0x453   :  { %v2054_v26 = vsel %vm1971_vm4, %v2053_v60, %v2052_v58  ;;  %v2136_v20 = vshll.u32 %v2135_v44, 30  ;;  %v2206_v43 = vshll.u32 %v4810_v48, %v2191_v52  ;;  %v2207_v45 = vshrl.u32 %v4811_v39, %v2192_v35 }
 0x454   :  { %v2057_v27 = vsel %vm4395_vm6, %v4129_v50, %v2054_v26  ;;  %v2205_v15 = vor.u32 %v2204_v5, %v2203_v2  ;;  %v2281_v24 = vand.u32 2147483647, %v4446_v30  ;;  %v4476_v18 = vand.u32 3, %v2062_v40 }
 0x455   :  { %2974 = vcosq.f32 %v2057_v27  ;;  %v4473_v36 = vsub.s32 %v2133_v56, %v2136_v20  ;;  %vm2075_vm1 = vcmp.lt.s32.totalorder %v4273_v22, 0  ;;  %v2208_v0 = vor.u32 %v2207_v45, %v2206_v43 }
 0x456   :  { %2976 = vsinq.f32 %v2057_v27  ;;  %v2284_v54 = vand.u32 2139095040, %v4446_v30  ;;  %vm2209_vm3 = vcmp.lt.s32.totalorder %v2190_v23, 1  ;;  %vm2212_vm4 = vcmp.lt.s32.totalorder %v2190_v23, 4 }
 0x457   :  { %v2139_v55 = vsub.s32 0, %v4473_v36  ;;  %v2225_v11 = vshll.u32 %v2185_v33, 8  ;;  %vm2211_vm2 = vcmp.lt.s32.totalorder %v2190_v23, 3  ;;  %v2214_v57 = vsel %vm2212_vm4, %v2202_v17, 2102212464 }
 0x458   :  { %v2217_v6 = vsel %vm2209_vm3, %v2196_v59, %v2199_v19  ;;  %v2218_v10 = vsel %vm2212_vm4, %v2205_v15, 920167782  ;;  %v2193_v21 = vshrl.u32 %v4806_v46, %v2192_v35  ;;  %vm2210_vm6 = vcmp.lt.s32.totalorder %v2190_v23, 2 }
 0x459   :  { %v2724_v9 = vmin.u32 %v2139_v55, %v4473_v36  ;;  %v2219_v16 = vsel %vm2211_vm2, %v2202_v17, %v2218_v10  ;;  %v2221_v63 = vsel %vm2209_vm3, %v2199_v19, %v2202_v17  ;;  %v2222_v13 = vsel %vm2212_vm4, %v2208_v0, 1326507024 }
 0x45a   :  { %v2220_v52 = vsel %vm2210_vm6, %v2217_v6, %v2219_v16  ;;  %v2285_v29 = vshrl.u32 %v2284_v54, 23  ;;  %vm2064_vm7 = vcmp.lt.s32.totalorder %v4476_v18, 2  ;;  %vm4490_vm8 = vcmp.le.f32.partialorder %v2073_v62, 0.7853982 }
 0x45b   :  { %v2141_v1 = vclz %v2724_v9  ;;  %v2159_v40 = vsub.s32 4, %v2135_v44  ;;  %v2213_v37 = vsel %vm2209_vm3, %v2193_v21, %v2196_v59  ;;  %v2215_v35 = vsel %vm2211_vm2, %v2199_v19, %v2214_v57  ;;  %v4850_v21 = vld [vmem:[#allocation4_spill] sm:$0xff] }
 0x45c   :  { %vm2061_vm9 = vweird.f32 %v4129_v50  ;;  %v2223_v25 = vsel %vm2211_vm2, %v2205_v15, %v2222_v13  ;;  %v4498_v28 = vmul.u32.u64.low %v2225_v11, %v2220_v52  ;;  %v4499_v58 = vmul.u32.u64.high %v2225_v11, %v2220_v52, %v4498_v28 }
 0x45d   :  { %v2731_v53 = vadd.s32 4294967169, %v2285_v29  ;;  %vm2065_vm10 = vcmp.eq.s32.totalorder %v4476_v18, 0  ;;  %vm2068_vm11 = vcmp.eq.s32.totalorder %v4476_v18, 2  ;;  %v2725_v62 = vadd.s32 4294967294, %v2141_v1  ;;  %v4851_v1 = vld [vmem:[#allocation15_spill] sm:$0xff] }
 0x45e   :  { %v2224_v47 = vsel %vm2210_vm6, %v2221_v63, %v2223_v25  ;;  %v2216_v14 = vsel %vm2210_vm6, %v2213_v37, %v2215_v35  ;;  %v2129_v12 = vadd.s32 %v4425_v4, %v4422_v7  ;;  %v2160_v5 = vsel %vm2075_vm1, %v2159_v40, %v2135_v44 }
 0x45f   :  { %v4506_v42 = vmul.u32.u64.low %v2225_v11, %v2224_v47  ;;  %v4507_v41 = vmul.u32.u64.high %v2225_v11, %v2224_v47, %v4506_v42  ;;  %v2291_v38 = vadd.s32 1, %v2731_v53  ;;  %v2975_v60 = vpop.eup %2974  ;;  %vm2726_vm12 = vcmp.lt.s32.totalorder %v2725_v62, 0 }
 0x460   :  { %v2288_v33 = vand.u32 8388607, %v2281_v24  ;;  %v2977_v59 = vpop.eup %2976  ;;  %v2069_v2 = vxor.u32 2147483648, %v2975_v60  ;;  %v2144_v26 = vsel %vm2726_vm12, 0, %v2725_v62  ;;  %v2235_v23 = vadd.s32 1, %v4499_v58 }
 0x461   :  { %vm2292_vm13 = vcmp.gt.s32.totalorder %v2291_v38, 0  ;;  %v2066_v20 = vxor.u32 2147483648, %v2977_v59  ;;  %v2145_v19 = vsub.s32 32, %v2144_v26  ;;  %v2149_v17 = vsub.s32 4294967266, %v2144_v26 }
 0x462   :  { %v2232_v27 = vmul.u32 %v2225_v11, %v2216_v14  ;;  %v2070_v7 = vsel %vm2068_vm11, %v2069_v2, %v2977_v59  ;;  %v2146_v4 = vshll.u32 %v4473_v36, %v2144_v26  ;;  %vm2234_vm14 = vc.u32 %v4507_v41, %v4498_v28  ;;  %v862_v36 = vpop.permute.xlu1 %861 }
 0x463   :  { %v2293_v44 = vsel %vm2292_vm13, %v2291_v38, 0  ;;  %v2067_v15 = vsel %vm2065_vm10, %v2975_v60, %v2066_v20  ;;  %v2147_v43 = vshrl.u32 %v2129_v12, %v2145_v19  ;;  %v2150_v45 = vadd.s32 127, %v2149_v17 }
 0x464   :  { %v2236_v0 = vsel %vm2234_vm14, %v2235_v23, %v4499_v58  ;;  %v2071_v54 = vsel %vm2064_vm7, %v2067_v15, %v2070_v7  ;;  %v2162_v55 = vsel %vm4490_vm8, 0, %v2160_v5  ;;  %v2295_v57 = vand.u32 31, %v2293_v44 }
 0x465   :  { %v2237_v11 = vadd.s32 %v2236_v0, %v2232_v27  ;;  %v2072_v6 = vsel %vm2061_vm9, nan, %v2071_v54  ;;  %v2148_v10 = vor.u32 %v2147_v43, %v2146_v4  ;;  %v2151_v9 = vshll.u32 %v2150_v45, 23 }
 0x466   :  { %v2603_v16 = vadd.f32 %v2072_v6, %v4850_v21  ;;  %v2296_v63 = vsub.s32 32, %v2295_v57  ;;  %v2166_v29 = vadd.s32 3, %v2162_v55  ;;  %v887_v18 = vsel %vm3294_vm5, %v4851_v1, %v862_v36 }
 0x467   :  { %v2238_v52 = vadd.s32 536870912, %v2237_v11  ;;  %v2152_v13 = vor.u32 4788187, %v2151_v9  ;;  %v2155_v40 = vcvt.s32.f32 %v2148_v10  ;;  %v2289_v50 = vor.u32 8388608, %v2288_v33 }
 0x468   :  { %2619 = vst [vmem:[%s4774_s4 + $0x50] sm:$0xff] %v2603_v16  ;;  %v2299_v35 = vshrl.u32 %v4807_v61, %v2296_v63  ;;  %v2302_v58 = vshrl.u32 %v4808_v49, %v2296_v63  ;;  %v2305_v53 = vshrl.u32 %v4809_v32, %v2296_v63  ;;  %v2308_v62 = vshrl.u32 %v4810_v48, %v2296_v63 }
 0x469   :  { %v2239_v37 = vshrl.u32 %v2238_v52, 30  ;;  %v2153_v25 = vand.u32 2147483647, %v2152_v13  ;;  %v2298_v14 = vshll.u32 %v4806_v46, %v2295_v57  ;;  %v2304_v42 = vshll.u32 %v4808_v49, %v2295_v57 }
 0x46a   :  { %v907_v38 = vmul.f32 %v4357_v8, %v887_v18  ;;  %v2294_v12 = vshrl.u32 %v2293_v44, 5  ;;  %v2301_v5 = vshll.u32 %v4807_v61, %v2295_v57  ;;  %v2307_v33 = vshll.u32 %v4809_v32, %v2295_v57  ;;  %v866_v18 = vpop.permute.xlu0 %865 }
 0x46b   :  { %v2240_v47 = vshll.u32 %v2239_v37, 30  ;;  %v2156_v60 = vmul.f32 %v2155_v40, %v2153_v25  ;;  %vm2179_vm15 = vcmp.lt.s32.totalorder %v4351_v51, 0  ;;  %v2300_v2 = vor.u32 %v2299_v35, %v2298_v14  ;;  %v4854_v14 = vld [vmem:[#allocation16_spill] sm:$0xff] }
 0x46c   :  { %v2306_v26 = vor.u32 %v2305_v53, %v2304_v42  ;;  %v2311_v23 = vshrl.u32 %v4811_v39, %v2296_v63  ;;  %v2303_v19 = vor.u32 %v2302_v58, %v2301_v5  ;;  %v2309_v17 = vor.u32 %v2308_v62, %v2307_v33 }
 0x46d   :  { %v4547_v59 = vsub.s32 %v2237_v11, %v2240_v47  ;;  %v2157_v20 = vxor.u32 2147483648, %v2156_v60  ;;  %v2310_v27 = vshll.u32 %v4810_v48, %v2295_v57  ;;  %v2297_v4 = vshrl.u32 %v4806_v46, %v2296_v63 }
 0x46e   :  { %v2329_v44 = vshll.u32 %v2289_v50, 8  ;;  %v4554_v15 = vadd.f32 %v4348_v3, %v907_v38  ;;  %v2263_v45 = vsub.s32 4, %v2239_v37  ;;  %vm2316_vm0 = vcmp.lt.s32.totalorder %v2294_v12, 4 }
 0x46f   :  { %v2243_v7 = vsub.s32 0, %v4547_v59  ;;  %v2158_v43 = vsel %vm2075_vm1, %v2157_v20, %v2156_v60  ;;  %v2312_v0 = vor.u32 %v2311_v23, %v2310_v27  ;;  %vm2313_vm3 = vcmp.lt.s32.totalorder %v2294_v12, 1 }
 0x470   :  { %v2161_v54 = vsel %vm4490_vm8, %v4273_v22, %v2158_v43  ;;  %v2318_v11 = vsel %vm2316_vm0, %v2306_v26, 2102212464  ;;  %vm2314_vm4 = vcmp.lt.s32.totalorder %v2294_v12, 2  ;;  %v2321_v57 = vsel %vm2313_vm3, %v2300_v2, %v2303_v19 }
 0x471   :  { %v2728_v55 = vmin.u32 %v2243_v7, %v4547_v59  ;;  %2978 = vcosq.f32 %v2161_v54  ;;  %v2322_v36 = vsel %vm2316_vm0, %v2309_v17, 920167782  ;;  %vm2315_vm1 = vcmp.lt.s32.totalorder %v2294_v12, 3 }
 0x472   :  { %2980 = vsinq.f32 %v2161_v54  ;;  %v2325_v10 = vsel %vm2313_vm3, %v2303_v19, %v2306_v26  ;;  %v2317_v9 = vsel %vm2313_vm3, %v2297_v4, %v2300_v2  ;;  %v2319_v21 = vsel %vm2315_vm1, %v2303_v19, %v2318_v11 }
 0x473   :  { %v2245_v6 = vclz %v2728_v55  ;;  %v2323_v16 = vsel %vm2315_vm1, %v2306_v26, %v2322_v36  ;;  %v2326_v56 = vsel %vm2316_vm0, %v2312_v0, 1326507024  ;;  %v2167_v52 = vand.u32 3, %v2166_v29 }
 0x474   :  { %v2324_v13 = vsel %vm2314_vm4, %v2321_v57, %v2323_v16  ;;  %v2327_v1 = vsel %vm2315_vm1, %v2309_v17, %v2326_v56  ;;  %v2264_v40 = vsel %vm2179_vm15, %v2263_v45, %v2239_v37  ;;  %v2320_v58 = vsel %vm2314_vm4, %v2317_v9, %v2319_v21 }
 0x475   :  { %v2729_v63 = vadd.s32 4294967294, %v2245_v6  ;;  %v2328_v50 = vsel %vm2314_vm4, %v2325_v10, %v2327_v1  ;;  %v4569_v35 = vmul.u32.u64.low %v2329_v44, %v2324_v13  ;;  %v4570_v25 = vmul.u32.u64.high %v2329_v44, %v2324_v13, %v4569_v35 }
 0x476   :  { %v4574_v53 = vmul.u32.u64.low %v2329_v44, %v2328_v50  ;;  %v4575_v62 = vmul.u32.u64.high %v2329_v44, %v2328_v50, %v4574_v53  ;;  %vm4579_vm6 = vcmp.le.f32.partialorder %v2177_v31, 0.7853982  ;;  %v2388_v37 = vand.u32 2139095040, %v4554_v15 }
 0x477   :  { %vm2730_vm2 = vcmp.lt.s32.totalorder %v2729_v63, 0  ;;  %v888_v42 = vsel %vm3294_vm5, %v4854_v14, %v866_v18  ;;  %vm2165_vm7 = vweird.f32 %v4273_v22  ;;  %vm2168_vm8 = vcmp.lt.s32.totalorder %v2167_v52, 2 }
 0x478   :  { %v2248_v47 = vsel %vm2730_vm2, 0, %v2729_v63  ;;  %v2233_v38 = vadd.s32 %v4498_v28, %v4507_v41  ;;  %v2266_v31 = vsel %vm4579_vm6, 0, %v2264_v40  ;;  %v2336_v5 = vmul.u32 %v2329_v44, %v2320_v58  ;;  %v4855_v63 = vld [vmem:[#allocation6_spill] sm:$0xff] }
 0x479   :  { %v2249_v60 = vsub.s32 32, %v2248_v47  ;;  %v2253_v12 = vsub.s32 4294967266, %v2248_v47  ;;  %v2339_v33 = vadd.s32 1, %v4570_v25  ;;  %v2389_v2 = vshrl.u32 %v2388_v37, 23 }
 0x47a   :  { %v2250_v26 = vshll.u32 %v4547_v59, %v2248_v47  ;;  %vm2338_vm5 = vc.u32 %v4575_v62, %v4569_v35  ;;  %vm2169_vm9 = vcmp.eq.s32.totalorder %v2167_v52, 0  ;;  %v908_v19 = vmul.f32 %v4357_v8, %v888_v42 }
 0x47b   :  { %v2251_v23 = vshrl.u32 %v2233_v38, %v2249_v60  ;;  %v2254_v34 = vadd.s32 127, %v2253_v12  ;;  %v2979_v20 = vpop.eup %2978  ;;  %v2340_v28 = vsel %vm2338_vm5, %v2339_v33, %v4570_v25  ;;  %v2735_v41 = vadd.s32 4294967169, %v2389_v2 }
 0x47c   :  { %v2981_v17 = vpop.eup %2980  ;;  %v2173_v27 = vxor.u32 2147483648, %v2979_v20  ;;  %v2341_v44 = vadd.s32 %v2340_v28, %v2336_v5  ;;  %vm2172_vm10 = vcmp.eq.s32.totalorder %v2167_v52, 2  ;;  %v2270_v59 = vadd.s32 3, %v2266_v31 }
 0x47d   :  { %v2252_v7 = vor.u32 %v2251_v23, %v2250_v26  ;;  %v2255_v4 = vshll.u32 %v2254_v34, 23  ;;  %v2170_v43 = vxor.u32 2147483648, %v2981_v17  ;;  %v2395_v45 = vadd.s32 1, %v2735_v41 }
 0x47e   :  { %v2174_v0 = vsel %vm2172_vm10, %v2173_v27, %v2981_v17  ;;  %v2342_v55 = vadd.s32 536870912, %v2341_v44  ;;  %v2385_v11 = vand.u32 2147483647, %v4554_v15  ;;  %v4601_v8 = vadd.f32 %v4348_v3, %v908_v19 }
 0x47f   :  { %v2256_v54 = vor.u32 4788187, %v2255_v4  ;;  %v2171_v57 = vsel %vm2169_vm9, %v2979_v20, %v2170_v43  ;;  %v2259_v36 = vcvt.s32.f32 %v2252_v7  ;;  %vm2396_vm11 = vcmp.gt.s32.totalorder %v2395_v45, 0 }
 0x480   :  { %v2175_v6 = vsel %vm2168_vm8, %v2171_v57, %v2174_v0  ;;  %v4604_v9 = vshrl.u32 %v2342_v55, 30  ;;  %v2397_v21 = vsel %vm2396_vm11, %v2395_v45, 0  ;;  %v4610_v40 = vand.u32 3, %v2270_v59 }
 0x481   :  { %v2257_v10 = vand.u32 2147483647, %v2256_v54  ;;  %v2176_v16 = vsel %vm2165_vm7, nan, %v2175_v6  ;;  %v2399_v56 = vand.u32 31, %v2397_v21  ;;  %v2392_v3 = vand.u32 8388607, %v2385_v11 }
 0x482   :  { %v2604_v13 = vadd.f32 %v2176_v16, %v4855_v63  ;;  %v2344_v18 = vshll.u32 %v4604_v9, 30  ;;  %v4619_v22 = vshrl.u32 %v2397_v21, 5  ;;  %v2492_v58 = vand.u32 2139095040, %v4601_v8 }
 0x483   :  { %v2260_v1 = vmul.f32 %v2259_v36, %v2257_v10  ;;  %v2400_v52 = vsub.s32 32, %v2399_v56  ;;  %v2402_v53 = vshll.u32 %v4806_v46, %v2399_v56  ;;  %v2405_v37 = vshll.u32 %v4807_v61, %v2399_v56 }
 0x484   :  { %2620 = vst [vmem:[%s4774_s4 + $0x58] sm:$0xff] %v2604_v13  ;;  %v4617_v25 = vsub.s32 %v2341_v44, %v2344_v18  ;;  %v2408_v60 = vshll.u32 %v4808_v49, %v2399_v56  ;;  %v2411_v33 = vshll.u32 %v4809_v32, %v2399_v56  ;;  %v2414_v28 = vshll.u32 %v4810_v48, %v2399_v56 }
 0x485   :  { %v2261_v50 = vxor.u32 2147483648, %v2260_v1  ;;  %v2403_v47 = vshrl.u32 %v4807_v61, %v2400_v52  ;;  %v2406_v14 = vshrl.u32 %v4808_v49, %v2400_v52  ;;  %v2409_v12 = vshrl.u32 %v4809_v32, %v2400_v52 }
 0x486   :  { %v2347_v38 = vsub.s32 0, %v4617_v25  ;;  %v2412_v2 = vshrl.u32 %v4810_v48, %v2400_v52  ;;  %v2415_v41 = vshrl.u32 %v4811_v39, %v2400_v52  ;;  %v2337_v29 = vadd.s32 %v4569_v35, %v4575_v62 }
 0x487   :  { %v2262_v42 = vsel %vm2179_vm15, %v2261_v50, %v2260_v1  ;;  %v2404_v5 = vor.u32 %v2403_v47, %v2402_v53  ;;  %v2407_v23 = vor.u32 %v2406_v14, %v2405_v37  ;;  %v2410_v34 = vor.u32 %v2409_v12, %v2408_v60 }
 0x488   :  { %v2265_v31 = vsel %vm4579_vm6, %v4351_v51, %v2262_v42  ;;  %v2732_v26 = vmin.u32 %v2347_v38, %v4617_v25  ;;  %v2413_v20 = vor.u32 %v2412_v2, %v2411_v33  ;;  %v2393_v17 = vor.u32 8388608, %v2392_v3 }
 0x489   :  { %2982 = vcosq.f32 %v2265_v31  ;;  %v2401_v27 = vshrl.u32 %v4806_v46, %v2400_v52  ;;  %v2416_v7 = vor.u32 %v2415_v41, %v2414_v28  ;;  %vm2417_vm12 = vcmp.lt.s32.totalorder %v4619_v22, 1 }
 0x48a   :  { %2984 = vsinq.f32 %v2265_v31  ;;  %v2349_v19 = vclz %v2732_v26  ;;  %v2493_v4 = vshrl.u32 %v2492_v58, 23  ;;  %vm2419_vm13 = vcmp.lt.s32.totalorder %v4619_v22, 3 }
 0x48b   :  { %vm2420_vm14 = vcmp.lt.s32.totalorder %v4619_v22, 4  ;;  %v2425_v43 = vsel %vm2417_vm12, %v2404_v5, %v2407_v23  ;;  %vm2273_vm15 = vcmp.eq.s32.totalorder %v4610_v40, 0  ;;  %v2429_v62 = vsel %vm2417_vm12, %v2407_v23, %v2410_v34 }
 0x48c   :  { %v2733_v44 = vadd.s32 4294967294, %v2349_v19  ;;  %v2422_v59 = vsel %vm2420_vm14, %v2410_v34, 2102212464  ;;  %v2426_v35 = vsel %vm2420_vm14, %v2413_v20, 920167782  ;;  %vm2272_vm0 = vcmp.lt.s32.totalorder %v4610_v40, 2 }
 0x48d   :  { %v2430_v45 = vsel %vm2420_vm14, %v2416_v7, 1326507024  ;;  %vm2283_vm3 = vcmp.lt.s32.totalorder %v4446_v30, 0  ;;  %vm2418_vm1 = vcmp.lt.s32.totalorder %v4619_v22, 2  ;;  %v2427_v0 = vsel %vm2419_vm13, %v2410_v34, %v2426_v35 }
 0x48e   :  { %vm2734_vm4 = vcmp.lt.s32.totalorder %v2733_v44, 0  ;;  %v2431_v54 = vsel %vm2419_vm13, %v2413_v20, %v2430_v45  ;;  %vm2269_vm2 = vweird.f32 %v4351_v51  ;;  %v2428_v57 = vsel %vm2418_vm1, %v2425_v43, %v2427_v0 }
 0x48f   :  { %v2352_v55 = vsel %vm2734_vm4, 0, %v2733_v44  ;;  %v2432_v36 = vsel %vm2418_vm1, %v2429_v62, %v2431_v54  ;;  %v2433_v6 = vshll.u32 %v2393_v17, 8  ;;  %v2421_v16 = vsel %vm2417_vm12, %v2401_v27, %v2404_v5  ;;  %v4856_v27 = vld [vmem:[#allocation9_spill] sm:$0xff] }
 0x490   :  { %v2353_v10 = vsub.s32 32, %v2352_v55  ;;  %v2357_v21 = vsub.s32 4294967266, %v2352_v55  ;;  %v2423_v56 = vsel %vm2419_vm13, %v2407_v23, %v2422_v59  ;;  %v2354_v52 = vshll.u32 %v4617_v25, %v2352_v55 }
 0x491   :  { %v4666_v63 = vmul.u32.u64.low %v2433_v6, %v2432_v36  ;;  %v4667_v13 = vmul.u32.u64.high %v2433_v6, %v2432_v36, %v4666_v63  ;;  %v4669_v1 = vmul.u32.u64.low %v2433_v6, %v2428_v57  ;;  %v4670_v18 = vmul.u32.u64.high %v2433_v6, %v2428_v57, %v4669_v1 }
 0x492   :  { %v2355_v50 = vshrl.u32 %v2337_v29, %v2353_v10  ;;  %v2358_v58 = vadd.s32 127, %v2357_v21  ;;  %v2739_v53 = vadd.s32 4294967169, %v2493_v4  ;;  %vm2276_vm6 = vcmp.eq.s32.totalorder %v4610_v40, 2 }
 0x493   :  { %v2983_v3 = vpop.eup %2982  ;;  %v2367_v14 = vsub.s32 4, %v4604_v9  ;;  %v2424_v42 = vsel %vm2418_vm1, %v2421_v16, %v2423_v56  ;;  %vm2442_vm7 = vc.u32 %v4667_v13, %v4669_v1  ;;  %v2443_v25 = vadd.s32 1, %v4670_v18 }
 0x494   :  { %v2985_v47 = vpop.eup %2984  ;;  %v2277_v37 = vxor.u32 2147483648, %v2983_v3  ;;  %v2356_v60 = vor.u32 %v2355_v50, %v2354_v52  ;;  %v2359_v12 = vshll.u32 %v2358_v58, 23  ;;  %v2499_v31 = vadd.s32 1, %v2739_v53 }
 0x495   :  { %v2274_v38 = vxor.u32 2147483648, %v2985_v47  ;;  %v2489_v33 = vand.u32 2147483647, %v4601_v8  ;;  %v2440_v23 = vmul.u32 %v2433_v6, %v2424_v42  ;;  %v2368_v34 = vsel %vm2283_vm3, %v2367_v14, %v4604_v9 }
 0x496   :  { %v2278_v5 = vsel %vm2276_vm6, %v2277_v37, %v2985_v47  ;;  %v2360_v26 = vor.u32 4788187, %v2359_v12  ;;  %vm2500_vm8 = vcmp.gt.s32.totalorder %v2499_v31, 0  ;;  %v2444_v20 = vsel %vm2442_vm7, %v2443_v25, %v4670_v18 }
 0x497   :  { %v2275_v2 = vsel %vm2273_vm15, %v2983_v3, %v2274_v38  ;;  %v2501_v28 = vsel %vm2500_vm8, %v2499_v31, 0  ;;  %v2363_v19 = vcvt.s32.f32 %v2356_v60  ;;  %v2445_v17 = vadd.s32 %v2444_v20, %v2440_v23 }
 0x498   :  { %v2279_v22 = vsel %vm2272_vm0, %v2275_v2, %v2278_v5  ;;  %v2361_v29 = vand.u32 2147483647, %v2360_v26  ;;  %v2503_v4 = vand.u32 31, %v2501_v28  ;;  %vm4695_vm5 = vcmp.le.f32.partialorder %v2281_v24, 0.7853982 }
 0x499   :  { %v2280_v41 = vsel %vm2269_vm2, nan, %v2279_v22  ;;  %v2446_v9 = vadd.s32 536870912, %v2445_v17  ;;  %v2370_v51 = vsel %vm4695_vm5, 0, %v2368_v34  ;;  %v2496_v43 = vand.u32 8388607, %v2489_v33 }
 0x49a   :  { %v2605_v7 = vadd.f32 %v2280_v41, %v4856_v27  ;;  %v2364_v44 = vmul.f32 %v2363_v19, %v2361_v29  ;;  %v2502_v59 = vshrl.u32 %v2501_v28, 5  ;;  %v2504_v35 = vsub.s32 32, %v2503_v4 }
 0x49b   :  { %v4706_v45 = vshrl.u32 %v2446_v9, 30  ;;  %v2506_v24 = vshll.u32 %v4806_v46, %v2503_v4  ;;  %v2509_v0 = vshll.u32 %v4807_v61, %v2503_v4  ;;  %v2512_v57 = vshll.u32 %v4808_v49, %v2503_v4 }
 0x49c   :  { %2621 = vst [vmem:[%s4774_s4 + $0x60] sm:$0xff] %v2605_v7  ;;  %v2365_v62 = vxor.u32 2147483648, %v2364_v44  ;;  %v2507_v54 = vshrl.u32 %v4807_v61, %v2504_v35  ;;  %v2510_v55 = vshrl.u32 %v4808_v49, %v2504_v35  ;;  %v2513_v36 = vshrl.u32 %v4809_v32, %v2504_v35 }
 0x49d   :  { %v2448_v10 = vshll.u32 %v4706_v45, 30  ;;  %v2515_v21 = vshll.u32 %v4809_v32, %v2503_v4  ;;  %v2516_v16 = vshrl.u32 %v4810_v48, %v2504_v35  ;;  %v2374_v61 = vadd.s32 3, %v2370_v51 }
 0x49e   :  { %v2366_v6 = vsel %vm2283_vm3, %v2365_v62, %v2364_v44  ;;  %v2508_v63 = vor.u32 %v2507_v54, %v2506_v24  ;;  %v2511_v18 = vor.u32 %v2510_v55, %v2509_v0  ;;  %v2514_v3 = vor.u32 %v2513_v36, %v2512_v57 }
 0x49f   :  { %v2369_v56 = vsel %vm4695_vm5, %v4446_v30, %v2366_v6  ;;  %v2449_v49 = vsub.s32 %v2445_v17, %v2448_v10  ;;  %v2517_v52 = vor.u32 %v2516_v16, %v2515_v21  ;;  %v2497_v50 = vor.u32 8388608, %v2496_v43  ;;  %v4859_v10 = vld [vmem:[#allocation11_spill] sm:$0xff] }
 0x4a0   :  { %2986 = vcosq.f32 %v2369_v56  ;;  %v2518_v58 = vshll.u32 %v4810_v48, %v2503_v4  ;;  %v2519_v53 = vshrl.u32 %v4811_v39, %v2504_v35  ;;  %vm2521_vm9 = vcmp.lt.s32.totalorder %v2502_v59, 1 }
 0x4a1   :  { %2988 = vsinq.f32 %v2369_v56  ;;  %v2451_v32 = vsub.s32 0, %v2449_v49  ;;  %vm2522_vm10 = vcmp.lt.s32.totalorder %v2502_v59, 2  ;;  %vm2524_vm11 = vcmp.lt.s32.totalorder %v2502_v59, 4 }
 0x4a2   :  { %v2520_v47 = vor.u32 %v2519_v53, %v2518_v58  ;;  %vm2523_vm12 = vcmp.lt.s32.totalorder %v2502_v59, 3  ;;  %v2529_v37 = vsel %vm2521_vm9, %v2508_v63, %v2511_v18  ;;  %v2530_v14 = vsel %vm2524_vm11, %v2517_v52, 920167782 }
 0x4a3   :  { %v2736_v42 = vmin.u32 %v2451_v32, %v2449_v49  ;;  %v2505_v38 = vshrl.u32 %v4806_v46, %v2504_v35  ;;  %v2526_v60 = vsel %vm2524_vm11, %v2514_v3, 2102212464  ;;  %v2531_v12 = vsel %vm2523_vm12, %v2514_v3, %v2530_v14 }
 0x4a4   :  { %v2532_v31 = vsel %vm2522_vm10, %v2529_v37, %v2531_v12  ;;  %v2533_v48 = vsel %vm2521_vm9, %v2511_v18, %v2514_v3  ;;  %v2534_v5 = vsel %vm2524_vm11, %v2520_v47, 1326507024  ;;  %v2537_v39 = vshll.u32 %v2497_v50, 8 }
 0x4a5   :  { %v2375_v25 = vand.u32 3, %v2374_v61  ;;  %v2453_v2 = vclz %v2736_v42  ;;  %v2525_v26 = vsel %vm2521_vm9, %v2505_v38, %v2508_v63  ;;  %v2527_v23 = vsel %vm2523_vm12, %v2511_v18, %v2526_v60 }
 0x4a6   :  { %v2535_v22 = vsel %vm2523_vm12, %v2517_v52, %v2534_v5  ;;  %v4729_v34 = vmul.u32.u64.low %v2537_v39, %v2532_v31  ;;  %v4730_v20 = vmul.u32.u64.high %v2537_v39, %v2532_v31, %v4729_v34  ;;  %v2528_v17 = vsel %vm2522_vm10, %v2525_v26, %v2527_v23 }
 0x4a7   :  { %v2737_v28 = vadd.s32 4294967294, %v2453_v2  ;;  %v2536_v46 = vsel %vm2522_vm10, %v2533_v48, %v2535_v22  ;;  %vm2376_vm13 = vcmp.lt.s32.totalorder %v2375_v25, 2  ;;  %vm2377_vm14 = vcmp.eq.s32.totalorder %v2375_v25, 0 }
 0x4a8   :  { %v4733_v41 = vmul.u32.u64.low %v2537_v39, %v2536_v46  ;;  %v4734_v29 = vmul.u32.u64.high %v2537_v39, %v2536_v46, %v4733_v41  ;;  %vm2380_vm0 = vcmp.eq.s32.totalorder %v2375_v25, 2  ;;  %v2547_v40 = vadd.s32 1, %v4730_v20 }
 0x4a9   :  { %vm2738_vm15 = vcmp.lt.s32.totalorder %v2737_v28, 0  ;;  %v2441_v9 = vadd.s32 %v4669_v1, %v4667_v13  ;;  %v2544_v24 = vmul.u32 %v2537_v39, %v2528_v17  ;;  %vm2373_vm4 = vweird.f32 %v4446_v30 }
 0x4aa   :  { %v2987_v19 = vpop.eup %2986  ;;  %v2456_v4 = vsel %vm2738_vm15, 0, %v2737_v28  ;;  %vm2546_vm3 = vc.u32 %v4734_v29, %v4729_v34  ;;  %v2471_v30 = vsub.s32 4, %v4706_v45  ;;  %vm2387_vm1 = vcmp.lt.s32.totalorder %v4554_v15, 0 }
 0x4ab   :  { %v2989_v27 = vpop.eup %2988  ;;  %v2381_v7 = vxor.u32 2147483648, %v2987_v19  ;;  %v2457_v51 = vsub.s32 32, %v2456_v4  ;;  %v2461_v43 = vsub.s32 4294967266, %v2456_v4  ;;  %v2458_v62 = vshll.u32 %v2449_v49, %v2456_v4 }
 0x4ac   :  { %v2378_v44 = vxor.u32 2147483648, %v2989_v27  ;;  %v2548_v55 = vsel %vm2546_vm3, %v2547_v40, %v4730_v20  ;;  %vm2386_vm2 = vcmp.le.f32.partialorder %v2385_v11, 0.7853982  ;;  %v2472_v32 = vsel %vm2387_vm1, %v2471_v30, %v4706_v45 }
 0x4ad   :  { %v2382_v35 = vsel %vm2380_vm0, %v2381_v7, %v2989_v27  ;;  %v2459_v0 = vshrl.u32 %v2441_v9, %v2457_v51  ;;  %v2462_v54 = vadd.s32 127, %v2461_v43  ;;  %v2549_v36 = vadd.s32 %v2548_v55, %v2544_v24  ;;  %v4860_v7 = vld [vmem:[#allocation8_spill] sm:$0xff] }
 0x4ae   :  { %v2379_v59 = vsel %vm2377_vm14, %v2987_v19, %v2378_v44  ;;  %v2474_v14 = vsel %vm2386_vm2, 0, %v2472_v32  ;;  %v2545_v31 = vadd.s32 %v4729_v34, %v4734_v29  ;;  %vm2477_vm9 = vweird.f32 %v4554_v15 }
 0x4af   :  { %v2383_v57 = vsel %vm2376_vm13, %v2379_v59, %v2382_v35  ;;  %v2460_v13 = vor.u32 %v2459_v0, %v2458_v62  ;;  %v2463_v1 = vshll.u32 %v2462_v54, 23  ;;  %v2550_v16 = vadd.s32 536870912, %v2549_v36 }
 0x4b0   :  { %v2384_v6 = vsel %vm2373_vm4, nan, %v2383_v57  ;;  %v2478_v60 = vadd.s32 3, %v2474_v14  ;;  %vm2491_vm10 = vcmp.lt.s32.totalorder %v4601_v8, 0  ;;  %vm2490_vm11 = vcmp.le.f32.partialorder %v2489_v33, 0.7853982 }
 0x4b1   :  { %v2606_v21 = vadd.f32 %v2384_v6, %v4859_v10  ;;  %v2464_v56 = vor.u32 4788187, %v2463_v1  ;;  %v2551_v61 = vshrl.u32 %v2550_v16, 30  ;;  %v2467_v18 = vcvt.s32.f32 %v2460_v13  ;;  %v4861_v13 = vld [vmem:[#allocation10_spill] sm:$0xff] }
 0x4b2   :  { %v2479_v39 = vand.u32 3, %v2478_v60  ;;  %vm2581_vm15 = vweird.f32 %v4601_v8 }
 0x4b3   :  { %2622 = vst [vmem:[%s4774_s4 + $0x68] sm:$0xff] %v2606_v21  ;;  %v2465_v63 = vand.u32 2147483647, %v2464_v56  ;;  %v2552_v49 = vshll.u32 %v2551_v61, 30  ;;  %v2575_v44 = vsub.s32 4, %v2551_v61 }
 0x4b4   :  { %vm2484_vm7 = vcmp.eq.s32.totalorder %v2479_v39, 2  ;;  %vm2481_vm8 = vcmp.eq.s32.totalorder %v2479_v39, 0  ;;  %vm2480_vm5 = vcmp.lt.s32.totalorder %v2479_v39, 2 }
 0x4b5   :  { %v2468_v3 = vmul.f32 %v2467_v18, %v2465_v63  ;;  %v2553_v52 = vsub.s32 %v2549_v36, %v2552_v49 }
 0x4b7   :  { %v2469_v50 = vxor.u32 2147483648, %v2468_v3  ;;  %v2555_v58 = vsub.s32 0, %v2553_v52 }
 0x4b9   :  { %v2470_v53 = vsel %vm2387_vm1, %v2469_v50, %v2468_v3  ;;  %v2740_v37 = vmin.u32 %v2555_v58, %v2553_v52 }
 0x4ba   :  { %v2473_v47 = vsel %vm2386_vm2, %v4554_v15, %v2470_v53  ;;  %v2576_v15 = vsel %vm2491_vm10, %v2575_v44, %v2551_v61 }
 0x4bb   :  { %2990 = vcosq.f32 %v2473_v47  ;;  %v2557_v42 = vclz %v2740_v37  ;;  %v2578_v35 = vsel %vm2490_vm11, 0, %v2576_v15 }
 0x4bc   :  { %2992 = vsinq.f32 %v2473_v47  ;;  %v2582_v62 = vadd.s32 3, %v2578_v35 }
 0x4bd   :  { %v2741_v38 = vadd.s32 4294967294, %v2557_v42 }
 0x4be   :  { %v2583_v24 = vand.u32 3, %v2582_v62 }
 0x4bf   :  { %vm2742_vm6 = vcmp.lt.s32.totalorder %v2741_v38, 0 }
 0x4c0   :  { %v2560_v12 = vsel %vm2742_vm6, 0, %v2741_v38  ;;  %vm2588_vm12 = vcmp.eq.s32.totalorder %v2583_v24, 2  ;;  %vm2585_vm13 = vcmp.eq.s32.totalorder %v2583_v24, 0  ;;  %vm2584_vm14 = vcmp.lt.s32.totalorder %v2583_v24, 2 }
 0x4c1   :  { %v2561_v48 = vsub.s32 32, %v2560_v12  ;;  %v2565_v5 = vsub.s32 4294967266, %v2560_v12  ;;  %v2562_v11 = vshll.u32 %v2553_v52, %v2560_v12 }
 0x4c3   :  { %v2563_v25 = vshrl.u32 %v2545_v31, %v2561_v48  ;;  %v2566_v2 = vadd.s32 127, %v2565_v5 }
 0x4c5   :  { %v2991_v45 = vpop.eup %2990  ;;  %v2564_v22 = vor.u32 %v2563_v25, %v2562_v11  ;;  %v2567_v20 = vshll.u32 %v2566_v2, 23 }
 0x4c6   :  { %v2993_v26 = vpop.eup %2992  ;;  %v2485_v23 = vxor.u32 2147483648, %v2991_v45 }
 0x4c7   :  { %v2482_v28 = vxor.u32 2147483648, %v2993_v26  ;;  %v2568_v41 = vor.u32 4788187, %v2567_v20  ;;  %v2571_v17 = vcvt.s32.f32 %v2564_v22 }
 0x4c8   :  { %v2486_v46 = vsel %vm2484_vm7, %v2485_v23, %v2993_v26 }
 0x4c9   :  { %v2483_v19 = vsel %vm2481_vm8, %v2991_v45, %v2482_v28  ;;  %v2569_v29 = vand.u32 2147483647, %v2568_v41 }
 0x4ca   :  { %v2487_v34 = vsel %vm2480_vm5, %v2483_v19, %v2486_v46 }
 0x4cb   :  { %v2488_v27 = vsel %vm2477_vm9, nan, %v2487_v34  ;;  %v2572_v40 = vmul.f32 %v2571_v17, %v2569_v29 }
 0x4cc   :  { %v2607_v4 = vadd.f32 %v2488_v27, %v4860_v7 }
 0x4cd   :  { %v2573_v9 = vxor.u32 2147483648, %v2572_v40 }
 0x4ce   :  { %2623 = vst [vmem:[%s4774_s4 + $0x70] sm:$0xff] %v2607_v4 }
 0x4cf   :  { %v2574_v51 = vsel %vm2491_vm10, %v2573_v9, %v2572_v40 }
 0x4d0   :  { %v2577_v43 = vsel %vm2490_vm11, %v4601_v8, %v2574_v51 }
 0x4d1   :  { %2994 = vcosq.f32 %v2577_v43 }
 0x4d2   :  { %2996 = vsinq.f32 %v2577_v43 }
 0x4db   :  { %v2995_v59 = vpop.eup %2994 }
 0x4dc   :  { %v2997_v0 = vpop.eup %2996  ;;  %v2589_v54 = vxor.u32 2147483648, %v2995_v59 }
 0x4dd   :  { %v2586_v55 = vxor.u32 2147483648, %v2997_v0 }
 0x4de   :  { %v2590_v57 = vsel %vm2588_vm12, %v2589_v54, %v2997_v0 }
 0x4df   :  { %v2587_v36 = vsel %vm2585_vm13, %v2995_v59, %v2586_v55 }
 0x4e0   :  { %v2591_v33 = vsel %vm2584_vm14, %v2587_v36, %v2590_v57 }
 0x4e1   :  { %v2592_v6 = vsel %vm2581_vm15, nan, %v2591_v33 }
 0x4e2   :  { %v2608_v1 = vadd.f32 %v2592_v6, %v4861_v13 }
 0x4e4   :  { %2624 = vst [vmem:[%s4774_s4 + $0x78] sm:$0xff] %v2608_v1 }

</bundles_post_ra>
